<compile_context>
chip_gen: v7x
topology: tpu7x:2x2x1
jax: 0.10.0
libtpu: 0.0.40
codegen_flags: <defaults>
</compile_context>

<pallas_src>
import functools
import math

import jax
import jax.numpy as jnp
from jax import lax
from jax.experimental import pallas as pl
from jax.experimental.pallas import tpu as pltpu

_GELU_C = math.sqrt(2.0 / math.pi)
_BN_EPS = 1e-5


def _gelu(x):
    # tanh approximation — lowers to EUP tanh inside Pallas.
    return 0.5 * x * (1.0 + jnp.tanh(_GELU_C * (x + 0.044715 * (x * x * x))))


def _sigmoid(x):
    return 1.0 / (1.0 + jnp.exp(-x))


def _apply_act(y, act):
    if act == "gelu":
        return _gelu(y)
    if act == "sigmoid":
        return _sigmoid(y)
    return y


# ---------------------------------------------------------------------------
# Generic fused linear:  y = act(x @ W^T + b)
# ---------------------------------------------------------------------------
def _linear_kernel(x_ref, w_ref, b_ref, o_ref, *, act):
    y = jnp.dot(x_ref[...], w_ref[...], preferred_element_type=jnp.float32)
    y = y + b_ref[...]
    o_ref[...] = _apply_act(y, act).astype(o_ref.dtype)


def fused_linear(x, w, b, act=None):
    """x: (M, K), w: (N, K) (PyTorch Linear layout), b: (N,) -> (M, N)."""
    m, _ = x.shape
    n = w.shape[0]
    return pl.pallas_call(
        functools.partial(_linear_kernel, act=act),
        out_shape=jax.ShapeDtypeStruct((m, n), x.dtype),
    )(x, w.T, b.reshape(1, n))


# ---------------------------------------------------------------------------
# Depthwise 3x3 conv (stride 1, pad 1) + GELU, NHWC layout (channels on lanes)
# ---------------------------------------------------------------------------
def _dwconv3x3_gelu_kernel(x_ref, w_ref, b_ref, o_ref):
    _, h, w, _ = o_ref.shape
    x = x_ref[...]                                  # (B, H+2, W+2, C)
    acc = jnp.zeros(o_ref.shape, jnp.float32)
    for t in range(9):                              # static, unrolled
        di, dj = divmod(t, 3)
        acc = acc + x[:, di:di + h, dj:dj + w, :] * w_ref[t]
    acc = acc + b_ref[...]
    o_ref[...] = _gelu(acc).astype(o_ref.dtype)


def dwconv3x3_gelu(x_nhwc, w_dw, b):
    """x: (B, H, W, C); w_dw: (C, 1, 3, 3) (PyTorch depthwise); b: (C,)."""
    bsz, h, w, c = x_nhwc.shape
    xp = jnp.pad(x_nhwc, ((0, 0), (1, 1), (1, 1), (0, 0)))
    wt = w_dw.reshape(c, 9).T                       # (9, C), row = 3*di + dj
    return pl.pallas_call(
        _dwconv3x3_gelu_kernel,
        out_shape=jax.ShapeDtypeStruct((bsz, h, w, c), x_nhwc.dtype),
    )(xp, wt, b.reshape(1, c))


# ---------------------------------------------------------------------------
# Multi-head attention core: softmax(q k^T * scale) v over a short L axis.
# q, k, v: (L, N*heads, head_dim); independent axis on sublanes, head_dim on
# lanes; L is small (== batch size, nn.MultiheadAttention with batch_first=False).
# ---------------------------------------------------------------------------
def _mha_core_kernel(q_ref, k_ref, v_ref, o_ref, *, scale):
    seq = q_ref.shape[0]
    ks = [k_ref[m] for m in range(seq)]
    vs = [v_ref[m] for m in range(seq)]
    for l in range(seq):                            # static, unrolled (L == 2)
        ql = q_ref[l]                               # (NH, hd)
        logits = [jnp.sum(ql * km, axis=-1, keepdims=True) * scale for km in ks]
        mx = logits[0]
        for s in logits[1:]:
            mx = jnp.maximum(mx, s)
        exps = [jnp.exp(s - mx) for s in logits]
        denom = exps[0]
        for e in exps[1:]:
            denom = denom + e
        inv = 1.0 / denom
        out = (exps[0] * inv) * vs[0]
        for m in range(1, seq):
            out = out + (exps[m] * inv) * vs[m]
        o_ref[l] = out.astype(o_ref.dtype)


def mha_core(q, k, v, *, scale):
    return pl.pallas_call(
        functools.partial(_mha_core_kernel, scale=scale),
        out_shape=jax.ShapeDtypeStruct(q.shape, q.dtype),
    )(q, k, v)


# ---------------------------------------------------------------------------
# PatchAggregation: Conv2d(k=3, s=2, p=0) as a space-to-depth im2col matmul.
# ---------------------------------------------------------------------------
def _conv_s2d_kernel(x_ref, w_ref, b_ref, o_ref, *, wh, apply_gelu):
    """x_ref: (B_TILE, 4*Cin, Lpad)  w_ref: (Cout, 16*Cin)  b_ref: (Cout, 1)
    o_ref: (B_TILE, Cout, L), L = Hh*Wh (s2d grid; border cropped in wrapper)."""
    b_tile, cout, l_out = o_ref.shape
    wmat = w_ref[...]                                   # resident across loop
    bias = jnp.broadcast_to(b_ref[...], (cout, l_out))  # hoisted out of loop
    offs = (0, 1, wh, wh + 1)                           # 2x2 shifts on s2d grid
    for b in range(b_tile):                             # static, unrolled
        xb = x_ref[b]                                   # (4*Cin, Lpad)
        patches = jnp.concatenate(
            [xb[:, off:off + l_out] for off in offs], axis=0)     # (16*Cin, L)
        acc = jnp.dot(wmat, patches, preferred_element_type=jnp.float32)
        y = acc + bias
        if apply_gelu:
            y = _gelu(y)
        o_ref[b] = y.astype(o_ref.dtype)                # (Cout, L), lane-dense


def _pick_batch_tile(n):
    """Largest tile <= 8 dividing n that still leaves >=2 grid steps."""
    for bt in range(min(n, 8), 0, -1):
        if n % bt == 0 and n // bt >= 2:
            return bt
    for bt in range(min(n, 8), 0, -1):
        if n % bt == 0:
            return bt
    return 1


def patch_aggregation(x_nchw, weight, bias, *, stride=2, apply_gelu=False):
    """Conv2d(Cin, Cout, kernel_size=3, stride=2, padding=0), NCHW in/out."""
    n, cin, h, w = x_nchw.shape
    cout, cin_w, kh, kw = weight.shape
    assert cin_w == cin
    assert stride == 2 and kh == 3 and kw == 3 and h % 2 == 0 and w % 2 == 0, (
        "kernel specialised to the MixFormer PatchAggregation config (k=3,s=2)")
    hh, wh = h // 2, w // 2
    h_out = (h - kh) // stride + 1
    w_out = (w - kw) // stride + 1
    l_out = hh * wh
    l_pad = l_out + wh + 1

    # Input: NCHW -> space-to-depth phase channels, flat lane-major spatial.
    xs = x_nchw.reshape(n, cin, hh, 2, wh, 2)
    xs = xs.transpose(0, 3, 5, 1, 2, 4)                 # (N, pi, pj, Cin, Hh, Wh)
    xs = xs.reshape(n, 4 * cin, l_out)
    xs = jnp.pad(xs, ((0, 0), (0, 0), (0, l_pad - l_out)))

    # Weight: OIHW -> effective 2x2-s2d matrix (Cout, 16*Cin).
    w_pad = jnp.pad(weight, ((0, 0), (0, 0), (0, 4 - kh), (0, 4 - kw)))
    w6 = w_pad.reshape(cout, cin, 2, 2, 2, 2)           # (o, c, di, pi, dj, pj)
    wmat = w6.transpose(0, 2, 4, 3, 5, 1).reshape(cout, 16 * cin)
    b_col = bias.reshape(cout, 1).astype(jnp.float32)

    b_tile = _pick_batch_tile(n)
    grid = (n // b_tile,)

    out_flat = pl.pallas_call(
        functools.partial(_conv_s2d_kernel, wh=wh, apply_gelu=apply_gelu),
        out_shape=jax.ShapeDtypeStruct((n, cout, l_out), x_nchw.dtype),
        grid_spec=pltpu.PrefetchScalarGridSpec(
            num_scalar_prefetch=0,
            grid=grid,
            in_specs=[
                pl.BlockSpec((b_tile, 4 * cin, l_pad), lambda g: (g, 0, 0)),
                pl.BlockSpec((cout, 16 * cin), lambda g: (0, 0)),
                pl.BlockSpec((cout, 1), lambda g: (0, 0)),
            ],
            out_specs=pl.BlockSpec((b_tile, cout, l_out), lambda g: (g, 0, 0)),
        ),
        compiler_params=pltpu.CompilerParams(
            dimension_semantics=("parallel",),
            vmem_limit_bytes=32 * 1024 * 1024,
        ),
    )(xs, wmat, b_col)

    # Output already channel-major (NCHW); un-flatten s2d grid, crop border.
    return out_flat.reshape(n, cout, hh, wh)[:, :, :h_out, :w_out]


# ---------------------------------------------------------------------------
# Full MixFormer forward (Pallas path)
# ---------------------------------------------------------------------------
def mixformer_forward_pallas(params, x, *, heads, H1, W1):
    n, c_in, _, _ = x.shape
    dim = params["embed_w"].shape[0]
    patt = params["embed_w"].shape[2]
    hidden = params["ci1_w"].shape[0]
    hw = H1 * W1
    hd = dim // heads

    # ---- Image2Patch_Embedding: k=s conv == per-patch matmul (+GELU fused)
    xp = x.reshape(n, c_in, H1, patt, W1, patt)
    xp = xp.transpose(0, 2, 4, 1, 3, 5).reshape(n * hw, c_in * patt * patt)
    w_e = params["embed_w"].reshape(dim, c_in * patt * patt)
    x_flat = fused_linear(xp, w_e, params["embed_b"], act="gelu")   # (n*hw, dim)

    # ---- MixerBlock: depthwise conv + GELU (channel-last layout)
    x0 = dwconv3x3_gelu(x_flat.reshape(n, H1, W1, dim),
                        params["dw_w"], params["dw_b"])             # (n,H1,W1,dim)
    pooled = jnp.mean(x0, axis=(1, 2))                              # (n, dim)

    # ---- channel_interaction (eval-mode BN folded into the 1x1-conv weights)
    bn_scale = 1.0 / math.sqrt(1.0 + _BN_EPS)
    ci1_w = params["ci1_w"].reshape(hidden, dim) * bn_scale
    ci1_b = params["ci1_b"] * bn_scale
    ci2_w = params["ci2_w"].reshape(dim, hidden)
    ci2_b = params["ci2_b"]
    ca = fused_linear(fused_linear(pooled, ci1_w, ci1_b, act="gelu"),
                      ci2_w, ci2_b, act="sigmoid")                  # (n, dim)

    # ---- AttentionBlock: proj1/2/3 share the input -> single fused matmul
    qkv_w = jnp.concatenate(
        [params["proj1_w"], params["proj2_w"], params["proj3_w"]], axis=0)
    qkv_b = jnp.concatenate(
        [params["proj1_b"], params["proj2_b"], params["proj3_b"]], axis=0)
    qkv = fused_linear(x_flat, qkv_w, qkv_b)                        # (n*hw, 3*dim)
    q_in, k_in, v_in = qkv[:, :dim], qkv[:, dim:2 * dim], qkv[:, 2 * dim:]
    v_in = (v_in.reshape(n, hw, dim) * ca[:, None, :]).reshape(n * hw, dim)

    # nn.MultiheadAttention, batch_first=False: tensors read as (L=n, N=hw, E).
    wq, wk, wv = (params["in_proj_w"][i * dim:(i + 1) * dim] for i in range(3))
    bq, bk, bv = (params["in_proj_b"][i * dim:(i + 1) * dim] for i in range(3))
    q = fused_linear(q_in, wq, bq).reshape(n, hw * heads, hd)
    k = fused_linear(k_in, wk, bk).reshape(n, hw * heads, hd)
    v = fused_linear(v_in, wv, bv).reshape(n, hw * heads, hd)
    attn = mha_core(q, k, v, scale=1.0 / math.sqrt(hd)).reshape(n * hw, dim)
    attn = fused_linear(attn, params["out_proj_w"], params["out_proj_b"])
    x1 = x_flat + attn
    mlp = fused_linear(
        fused_linear(x1, params["mlp1_w"], params["mlp1_b"], act="gelu"),
        params["mlp2_w"], params["mlp2_b"])
    out_1 = x1 + mlp                                                # (n*hw, dim)

    # ---- spatial_interaction (shared 1x1-conv weights), gated by pooled x0
    out_2 = fused_linear(fused_linear(out_1, ci1_w, ci1_b, act="gelu"),
                         ci2_w, ci2_b, act="sigmoid").reshape(n, hw, dim)
    out_3 = pooled[:, None, :] * out_2                              # (n, hw, dim)

    # ---- PatchAggregation conv (Pallas s2d kernel) + GELU, global mean
    x_nchw = out_3.reshape(n, H1, W1, dim).transpose(0, 3, 1, 2)
    y = patch_aggregation(x_nchw, params["pa_w"], params["pa_b"], apply_gelu=True)
    feat = jnp.mean(y, axis=(2, 3))                                 # (n, 3*dim)

    # ---- descriptor fc + GELU, classifier head
    feat = fused_linear(feat, params["fc_w"], params["fc_b"], act="gelu")
    return fused_linear(feat, params["head_w"], params["head_b"])


# ---------------------------------------------------------------------------
# Pure-JAX reference (same math, XLA ops) for correctness checking
# ---------------------------------------------------------------------------
def mixformer_forward_ref(params, x, *, heads, H1, W1):
    n = x.shape[0]
    dim = params["embed_w"].shape[0]
    patt = params["embed_w"].shape[2]
    hidden = params["ci1_w"].shape[0]
    hw = H1 * W1
    hd = dim // heads

    y = lax.conv_general_dilated(x, params["embed_w"], (patt, patt), "VALID",
                                 dimension_numbers=("NCHW", "OIHW", "NCHW"))
    y = _gelu(y + params["embed_b"].reshape(1, dim, 1, 1))
    x_seq = y.reshape(n, dim, hw).transpose(0, 2, 1)                # b (h w) c

    x0 = x_seq.transpose(0, 2, 1).reshape(n, dim, H1, W1)
    x0 = lax.conv_general_dilated(x0, params["dw_w"], (1, 1), ((1, 1), (1, 1)),
                                  dimension_numbers=("NCHW", "OIHW", "NCHW"),
                                  feature_group_count=dim)
    x0 = _gelu(x0 + params["dw_b"].reshape(1, dim, 1, 1))
    pooled = jnp.mean(x0, axis=(2, 3))                              # (n, dim)

    bn_scale = 1.0 / math.sqrt(1.0 + _BN_EPS)

    def conv1x1_path(z):                                            # (M, dim)
        h = _gelu((z @ params["ci1_w"].reshape(hidden, dim).T
                   + params["ci1_b"]) * bn_scale)
        return _sigmoid(h @ params["ci2_w"].reshape(dim, hidden).T
                        + params["ci2_b"])

    ca = conv1x1_path(pooled)                                       # (n, dim)

    q_in = x_seq @ params["proj1_w"].T + params["proj1_b"]
    k_in = x_seq @ params["proj2_w"].T + params["proj2_b"]
    v_in = (x_seq @ params["proj3_w"].T + params["proj3_b"]) * ca[:, None, :]

    wq, wk, wv = (params["in_proj_w"][i * dim:(i + 1) * dim] for i in range(3))
    bq, bk, bv = (params["in_proj_b"][i * dim:(i + 1) * dim] for i in range(3))
    q = q_in @ wq.T + bq
    k = k_in @ wk.T + bk
    v = v_in @ wv.T + bv

    def split(t):  # (L, B, E) -> (B*heads, L, hd)
        return t.reshape(n, hw, heads, hd).transpose(1, 2, 0, 3).reshape(
            hw * heads, n, hd)

    qh, kh, vh = split(q), split(k), split(v)
    logits = jnp.einsum("bld,bmd->blm", qh, kh) / math.sqrt(hd)
    pattn = jax.nn.softmax(logits, axis=-1)
    oh = jnp.einsum("blm,bmd->bld", pattn, vh)
    o = oh.reshape(hw, heads, n, hd).transpose(2, 0, 1, 3).reshape(n, hw, dim)
    o = o @ params["out_proj_w"].T + params["out_proj_b"]
    x1 = x_seq + o
    mlp = (_gelu(x1 @ params["mlp1_w"].T + params["mlp1_b"])
           @ params["mlp2_w"].T + params["mlp2_b"])
    out_1 = x1 + mlp

    out_2 = conv1x1_path(out_1.reshape(n * hw, dim)).reshape(n, hw, dim)
    out_3 = pooled[:, None, :] * out_2

    z = out_3.transpose(0, 2, 1).reshape(n, dim, H1, W1)
    z = lax.conv_general_dilated(z, params["pa_w"], (2, 2), "VALID",
                                 dimension_numbers=("NCHW", "OIHW", "NCHW"))
    z = _gelu(z + params["pa_b"].reshape(1, -1, 1, 1))
    feat = jnp.mean(z, axis=(2, 3))
    feat = _gelu(feat @ params["fc_w"].T + params["fc_b"])
    return feat @ params["head_w"].T + params["head_b"]


# ---------------------------------------------------------------------------
# Deterministic synthetic parameters (PyTorch layouts/shapes)
# ---------------------------------------------------------------------------
def init_params(key, *, channels, dim, heads, hidden, pattern, classes):
    assert dim % heads == 0
    ks = iter(jax.random.split(key, 32))

    def nrm(shape, scale=0.1):
        return jax.random.normal(next(ks), shape, dtype=jnp.float32) * scale

    return dict(
        embed_w=nrm((dim, channels, pattern, pattern)), embed_b=nrm((dim,)),
        dw_w=nrm((dim, 1, 3, 3)), dw_b=nrm((dim,)),
        ci1_w=nrm((hidden, dim, 1, 1)), ci1_b=nrm((hidden,)),
        ci2_w=nrm((dim, hidden, 1, 1)), ci2_b=nrm((dim,)),
        proj1_w=nrm((dim, dim)), proj1_b=nrm((dim,)),
        proj2_w=nrm((dim, dim)), proj2_b=nrm((dim,)),
        proj3_w=nrm((dim, dim)), proj3_b=nrm((dim,)),
        in_proj_w=nrm((3 * dim, dim)), in_proj_b=nrm((3 * dim,)),
        out_proj_w=nrm((dim, dim)), out_proj_b=nrm((dim,)),
        mlp1_w=nrm((hidden, dim)), mlp1_b=nrm((hidden,)),
        mlp2_w=nrm((dim, hidden)), mlp2_b=nrm((dim,)),
        pa_w=nrm((3 * dim, dim, 3, 3)), pa_b=nrm((3 * dim,)),
        fc_w=nrm((dim, 3 * dim)), fc_b=nrm((dim,)),
        head_w=nrm((classes, dim)), head_b=nrm((classes,)),
    )


if __name__ == "__main__":
    image_size, pattern_size, channels = 16, 4, 4
    dim, heads, hidden_channels, classes = 32, 4, 64, 10
    h1 = w1 = image_size // pattern_size

    key = jax.random.PRNGKey(0)
    k_x, k_p = jax.random.split(key)
    x = jax.random.normal(k_x, (2, channels, image_size, image_size),
                          dtype=jnp.float32)
    params = init_params(k_p, channels=channels, dim=dim, heads=heads,
                         hidden=hidden_channels, pattern=pattern_size,
                         classes=classes)

    fwd = jax.jit(functools.partial(
        mixformer_forward_pallas, heads=heads, H1=h1, W1=w1))
    ref_fwd = jax.jit(functools.partial(
        mixformer_forward_ref, heads=heads, H1=h1, W1=w1))

    out = jax.block_until_ready(fwd(params, x))
    assert out.shape == (2, classes), out.shape

    expected = jax.block_until_ready(ref_fwd(params, x))
    err = float(jnp.max(jnp.abs(out - expected)))
    assert err < 2e-3, f"max |pallas - ref| = {err}"

    print("KERNEL_OK")
</pallas_src>

<mosaic_0001>
module attributes {stable_mosaic.version = 11 : i64} {
  func.func @_linear_kernel(%arg0: memref<32x64xf32, #tpu.memory_space<vmem>>, %arg1: memref<64x32xf32, #tpu.memory_space<vmem>>, %arg2: memref<1x32xf32, #tpu.memory_space<vmem>>, %arg3: memref<32x32xf32, #tpu.memory_space<vmem>>) attributes {dimension_semantics = [], scalar_prefetch = 0 : i64, scratch_operands = 0 : i64, tpu.core_type = #tpu.core_type<tc>} {
    %c0 = arith.constant 0 : index
    %c0_0 = arith.constant 0 : index
    %0 = vector.load %arg0[%c0, %c0_0] : memref<32x64xf32, #tpu.memory_space<vmem>>, vector<32x64xf32>
    %c0_1 = arith.constant 0 : index
    %c0_2 = arith.constant 0 : index
    %1 = vector.load %arg1[%c0_1, %c0_2] : memref<64x32xf32, #tpu.memory_space<vmem>>, vector<64x32xf32>
    %cst = arith.constant dense<0.000000e+00> : vector<32x32xf32>
    %2 = tpu.matmul %0, %1, %cst {dimension_numbers = #tpu.dot_dimension_numbers<[1], [0], [0], [1], [0, 0, 1, 1], [], []>} : vector<32x64xf32>, vector<64x32xf32>, vector<32x32xf32> -> vector<32x32xf32>
    %c0_3 = arith.constant 0 : index
    %c0_4 = arith.constant 0 : index
    %3 = vector.load %arg2[%c0_3, %c0_4] : memref<1x32xf32, #tpu.memory_space<vmem>>, vector<1x32xf32>
    %4 = vector.broadcast %3 : vector<1x32xf32> to vector<32x32xf32>
    %5 = arith.addf %2, %4 : vector<32x32xf32>
    %cst_5 = arith.constant 5.000000e-01 : f32
    %6 = vector.broadcast %cst_5 : f32 to vector<32x32xf32>
    %7 = arith.mulf %6, %5 : vector<32x32xf32>
    %8 = arith.mulf %5, %5 : vector<32x32xf32>
    %9 = arith.mulf %8, %5 : vector<32x32xf32>
    %cst_6 = arith.constant 4.471500e-02 : f32
    %10 = vector.broadcast %cst_6 : f32 to vector<32x32xf32>
    %11 = arith.mulf %10, %9 : vector<32x32xf32>
    %12 = arith.addf %5, %11 : vector<32x32xf32>
    %cst_7 = arith.constant 0.797884583 : f32
    %13 = vector.broadcast %cst_7 : f32 to vector<32x32xf32>
    %14 = arith.mulf %13, %12 : vector<32x32xf32>
    %15 = math.tanh %14 : vector<32x32xf32>
    %cst_8 = arith.constant 1.000000e+00 : f32
    %16 = vector.broadcast %cst_8 : f32 to vector<32x32xf32>
    %17 = arith.addf %16, %15 : vector<32x32xf32>
    %18 = arith.mulf %7, %17 : vector<32x32xf32>
    %c0_9 = arith.constant 0 : index
    %c0_10 = arith.constant 0 : index
    %19 = vector.load %arg3[%c0_9, %c0_10] : memref<32x32xf32, #tpu.memory_space<vmem>>, vector<32x32xf32>
    tpu.vector_store %arg3[%c0_9, %c0_10], %18 {strides = array<i32>} : memref<32x32xf32, #tpu.memory_space<vmem>>, vector<32x32xf32>,
    return
  }
}

module attributes {stable_mosaic.version = 11 : i64} {
  func.func @_dwconv3x3_gelu_kernel(%arg0: memref<2x6x6x32xf32, #tpu.memory_space<vmem>>, %arg1: memref<9x32xf32, #tpu.memory_space<vmem>>, %arg2: memref<1x32xf32, #tpu.memory_space<vmem>>, %arg3: memref<2x4x4x32xf32, #tpu.memory_space<vmem>>) attributes {dimension_semantics = [], scalar_prefetch = 0 : i64, scratch_operands = 0 : i64, tpu.core_type = #tpu.core_type<tc>} {
    %c0 = arith.constant 0 : index
    %c0_0 = arith.constant 0 : index
    %c0_1 = arith.constant 0 : index
    %c0_2 = arith.constant 0 : index
    %0 = vector.load %arg0[%c0, %c0_0, %c0_1, %c0_2] : memref<2x6x6x32xf32, #tpu.memory_space<vmem>>, vector<2x6x6x32xf32>
    %cst = arith.constant 0.000000e+00 : f32
    %1 = vector.broadcast %cst : f32 to vector<2x4x4x32xf32>
    %2 = vector.extract_strided_slice %0 {offsets = [0, 0, 0, 0], sizes = [2, 4, 4, 32], strides = [1, 1, 1, 1]} : vector<2x6x6x32xf32> to vector<2x4x4x32xf32>
    %c0_3 = arith.constant 0 : index
    %c0_4 = arith.constant 0 : index
    %3 = vector.load %arg1[%c0_3, %c0_4] : memref<9x32xf32, #tpu.memory_space<vmem>>, vector<1x32xf32>
    %4 = vector.shape_cast %3 : vector<1x32xf32> to vector<32xf32>
    %5 = vector.shape_cast %4 : vector<32xf32> to vector<1x1x1x32xf32>
    %6 = vector.broadcast %5 : vector<1x1x1x32xf32> to vector<2x4x4x32xf32>
    %7 = arith.mulf %2, %6 : vector<2x4x4x32xf32>
    %8 = arith.addf %1, %7 : vector<2x4x4x32xf32>
    %9 = vector.extract_strided_slice %0 {offsets = [0, 0, 1, 0], sizes = [2, 4, 4, 32], strides = [1, 1, 1, 1]} : vector<2x6x6x32xf32> to vector<2x4x4x32xf32>
    %c1 = arith.constant 1 : index
    %c0_5 = arith.constant 0 : index
    %10 = vector.load %arg1[%c1, %c0_5] : memref<9x32xf32, #tpu.memory_space<vmem>>, vector<1x32xf32>
    %11 = vector.shape_cast %10 : vector<1x32xf32> to vector<32xf32>
    %12 = vector.shape_cast %11 : vector<32xf32> to vector<1x1x1x32xf32>
    %13 = vector.broadcast %12 : vector<1x1x1x32xf32> to vector<2x4x4x32xf32>
    %14 = arith.mulf %9, %13 : vector<2x4x4x32xf32>
    %15 = arith.addf %8, %14 : vector<2x4x4x32xf32>
    %16 = vector.extract_strided_slice %0 {offsets = [0, 0, 2, 0], sizes = [2, 4, 4, 32], strides = [1, 1, 1, 1]} : vector<2x6x6x32xf32> to vector<2x4x4x32xf32>
    %c2 = arith.constant 2 : index
    %c0_6 = arith.constant 0 : index
    %17 = vector.load %arg1[%c2, %c0_6] : memref<9x32xf32, #tpu.memory_space<vmem>>, vector<1x32xf32>
    %18 = vector.shape_cast %17 : vector<1x32xf32> to vector<32xf32>
    %19 = vector.shape_cast %18 : vector<32xf32> to vector<1x1x1x32xf32>
    %20 = vector.broadcast %19 : vector<1x1x1x32xf32> to vector<2x4x4x32xf32>
    %21 = arith.mulf %16, %20 : vector<2x4x4x32xf32>
    %22 = arith.addf %15, %21 : vector<2x4x4x32xf32>
    %23 = vector.extract_strided_slice %0 {offsets = [0, 1, 0, 0], sizes = [2, 4, 4, 32], strides = [1, 1, 1, 1]} : vector<2x6x6x32xf32> to vector<2x4x4x32xf32>
    %c3 = arith.constant 3 : index
    %c0_7 = arith.constant 0 : index
    %24 = vector.load %arg1[%c3, %c0_7] : memref<9x32xf32, #tpu.memory_space<vmem>>, vector<1x32xf32>
    %25 = vector.shape_cast %24 : vector<1x32xf32> to vector<32xf32>
    %26 = vector.shape_cast %25 : vector<32xf32> to vector<1x1x1x32xf32>
    %27 = vector.broadcast %26 : vector<1x1x1x32xf32> to vector<2x4x4x32xf32>
    %28 = arith.mulf %23, %27 : vector<2x4x4x32xf32>
    %29 = arith.addf %22, %28 : vector<2x4x4x32xf32>
    %30 = vector.extract_strided_slice %0 {offsets = [0, 1, 1, 0], sizes = [2, 4, 4, 32], strides = [1, 1, 1, 1]} : vector<2x6x6x32xf32> to vector<2x4x4x32xf32>
    %c4 = arith.constant 4 : index
    %c0_8 = arith.constant 0 : index
    %31 = vector.load %arg1[%c4, %c0_8] : memref<9x32xf32, #tpu.memory_space<vmem>>, vector<1x32xf32>
    %32 = vector.shape_cast %31 : vector<1x32xf32> to vector<32xf32>
    %33 = vector.shape_cast %32 : vector<32xf32> to vector<1x1x1x32xf32>
    %34 = vector.broadcast %33 : vector<1x1x1x32xf32> to vector<2x4x4x32xf32>
    %35 = arith.mulf %30, %34 : vector<2x4x4x32xf32>
    %36 = arith.addf %29, %35 : vector<2x4x4x32xf32>
    %37 = vector.extract_strided_slice %0 {offsets = [0, 1, 2, 0], sizes = [2, 4, 4, 32], strides = [1, 1, 1, 1]} : vector<2x6x6x32xf32> to vector<2x4x4x32xf32>
    %c5 = arith.constant 5 : index
    %c0_9 = arith.constant 0 : index
    %38 = vector.load %arg1[%c5, %c0_9] : memref<9x32xf32, #tpu.memory_space<vmem>>, vector<1x32xf32>
    %39 = vector.shape_cast %38 : vector<1x32xf32> to vector<32xf32>
    %40 = vector.shape_cast %39 : vector<32xf32> to vector<1x1x1x32xf32>
    %41 = vector.broadcast %40 : vector<1x1x1x32xf32> to vector<2x4x4x32xf32>
    %42 = arith.mulf %37, %41 : vector<2x4x4x32xf32>
    %43 = arith.addf %36, %42 : vector<2x4x4x32xf32>
    %44 = vector.extract_strided_slice %0 {offsets = [0, 2, 0, 0], sizes = [2, 4, 4, 32], strides = [1, 1, 1, 1]} : vector<2x6x6x32xf32> to vector<2x4x4x32xf32>
    %c6 = arith.constant 6 : index
    %c0_10 = arith.constant 0 : index
    %45 = vector.load %arg1[%c6, %c0_10] : memref<9x32xf32, #tpu.memory_space<vmem>>, vector<1x32xf32>
    %46 = vector.shape_cast %45 : vector<1x32xf32> to vector<32xf32>
    %47 = vector.shape_cast %46 : vector<32xf32> to vector<1x1x1x32xf32>
    %48 = vector.broadcast %47 : vector<1x1x1x32xf32> to vector<2x4x4x32xf32>
    %49 = arith.mulf %44, %48 : vector<2x4x4x32xf32>
    %50 = arith.addf %43, %49 : vector<2x4x4x32xf32>
    %51 = vector.extract_strided_slice %0 {offsets = [0, 2, 1, 0], sizes = [2, 4, 4, 32], strides = [1, 1, 1, 1]} : vector<2x6x6x32xf32> to vector<2x4x4x32xf32>
    %c7 = arith.constant 7 : index
    %c0_11 = arith.constant 0 : index
    %52 = vector.load %arg1[%c7, %c0_11] : memref<9x32xf32, #tpu.memory_space<vmem>>, vector<1x32xf32>
    %53 = vector.shape_cast %52 : vector<1x32xf32> to vector<32xf32>
    %54 = vector.shape_cast %53 : vector<32xf32> to vector<1x1x1x32xf32>
    %55 = vector.broadcast %54 : vector<1x1x1x32xf32> to vector<2x4x4x32xf32>
    %56 = arith.mulf %51, %55 : vector<2x4x4x32xf32>
    %57 = arith.addf %50, %56 : vector<2x4x4x32xf32>
    %58 = vector.extract_strided_slice %0 {offsets = [0, 2, 2, 0], sizes = [2, 4, 4, 32], strides = [1, 1, 1, 1]} : vector<2x6x6x32xf32> to vector<2x4x4x32xf32>
    %c8 = arith.constant 8 : index
    %c0_12 = arith.constant 0 : index
    %59 = vector.load %arg1[%c8, %c0_12] : memref<9x32xf32, #tpu.memory_space<vmem>>, vector<1x32xf32>
    %60 = vector.shape_cast %59 : vector<1x32xf32> to vector<32xf32>
    %61 = vector.shape_cast %60 : vector<32xf32> to vector<1x1x1x32xf32>
    %62 = vector.broadcast %61 : vector<1x1x1x32xf32> to vector<2x4x4x32xf32>
    %63 = arith.mulf %58, %62 : vector<2x4x4x32xf32>
    %64 = arith.addf %57, %63 : vector<2x4x4x32xf32>
    %c0_13 = arith.constant 0 : index
    %c0_14 = arith.constant 0 : index
    %65 = vector.load %arg2[%c0_13, %c0_14] : memref<1x32xf32, #tpu.memory_space<vmem>>, vector<1x32xf32>
    %66 = vector.shape_cast %65 : vector<1x32xf32> to vector<1x1x1x32xf32>
    %67 = vector.broadcast %66 : vector<1x1x1x32xf32> to vector<2x4x4x32xf32>
    %68 = arith.addf %64, %67 : vector<2x4x4x32xf32>
    %cst_15 = arith.constant 5.000000e-01 : f32
    %69 = vector.broadcast %cst_15 : f32 to vector<2x4x4x32xf32>
    %70 = arith.mulf %69, %68 : vector<2x4x4x32xf32>
    %71 = arith.mulf %68, %68 : vector<2x4x4x32xf32>
    %72 = arith.mulf %71, %68 : vector<2x4x4x32xf32>
    %cst_16 = arith.constant 4.471500e-02 : f32
    %73 = vector.broadcast %cst_16 : f32 to vector<2x4x4x32xf32>
    %74 = arith.mulf %73, %72 : vector<2x4x4x32xf32>
    %75 = arith.addf %68, %74 : vector<2x4x4x32xf32>
    %cst_17 = arith.constant 0.797884583 : f32
    %76 = vector.broadcast %cst_17 : f32 to vector<2x4x4x32xf32>
    %77 = arith.mulf %76, %75 : vector<2x4x4x32xf32>
    %78 = math.tanh %77 : vector<2x4x4x32xf32>
    %cst_18 = arith.constant 1.000000e+00 : f32
    %79 = vector.broadcast %cst_18 : f32 to vector<2x4x4x32xf32>
    %80 = arith.addf %79, %78 : vector<2x4x4x32xf32>
    %81 = arith.mulf %70, %80 : vector<2x4x4x32xf32>
    %c0_19 = arith.constant 0 : index
    %c0_20 = arith.constant 0 : index
    %c0_21 = arith.constant 0 : index
    %c0_22 = arith.constant 0 : index
    %82 = vector.load %arg3[%c0_19, %c0_20, %c0_21, %c0_22] : memref<2x4x4x32xf32, #tpu.memory_space<vmem>>, vector<2x4x4x32xf32>
    tpu.vector_store %arg3[%c0_19, %c0_20, %c0_21, %c0_22], %81 {strides = array<i32>} : memref<2x4x4x32xf32, #tpu.memory_space<vmem>>, vector<2x4x4x32xf32>,
    return
  }
}

module attributes {stable_mosaic.version = 11 : i64} {
  func.func @_linear_kernel(%arg0: memref<2x32xf32, #tpu.memory_space<vmem>>, %arg1: memref<32x64xf32, #tpu.memory_space<vmem>>, %arg2: memref<1x64xf32, #tpu.memory_space<vmem>>, %arg3: memref<2x64xf32, #tpu.memory_space<vmem>>) attributes {dimension_semantics = [], scalar_prefetch = 0 : i64, scratch_operands = 0 : i64, tpu.core_type = #tpu.core_type<tc>} {
    %c0 = arith.constant 0 : index
    %c0_0 = arith.constant 0 : index
    %0 = vector.load %arg0[%c0, %c0_0] : memref<2x32xf32, #tpu.memory_space<vmem>>, vector<2x32xf32>
    %c0_1 = arith.constant 0 : index
    %c0_2 = arith.constant 0 : index
    %1 = vector.load %arg1[%c0_1, %c0_2] : memref<32x64xf32, #tpu.memory_space<vmem>>, vector<32x64xf32>
    %cst = arith.constant dense<0.000000e+00> : vector<2x64xf32>
    %2 = tpu.matmul %0, %1, %cst {dimension_numbers = #tpu.dot_dimension_numbers<[1], [0], [0], [1], [0, 0, 1, 1], [], []>} : vector<2x32xf32>, vector<32x64xf32>, vector<2x64xf32> -> vector<2x64xf32>
    %c0_3 = arith.constant 0 : index
    %c0_4 = arith.constant 0 : index
    %3 = vector.load %arg2[%c0_3, %c0_4] : memref<1x64xf32, #tpu.memory_space<vmem>>, vector<1x64xf32>
    %4 = vector.broadcast %3 : vector<1x64xf32> to vector<2x64xf32>
    %5 = arith.addf %2, %4 : vector<2x64xf32>
    %cst_5 = arith.constant 5.000000e-01 : f32
    %6 = vector.broadcast %cst_5 : f32 to vector<2x64xf32>
    %7 = arith.mulf %6, %5 : vector<2x64xf32>
    %8 = arith.mulf %5, %5 : vector<2x64xf32>
    %9 = arith.mulf %8, %5 : vector<2x64xf32>
    %cst_6 = arith.constant 4.471500e-02 : f32
    %10 = vector.broadcast %cst_6 : f32 to vector<2x64xf32>
    %11 = arith.mulf %10, %9 : vector<2x64xf32>
    %12 = arith.addf %5, %11 : vector<2x64xf32>
    %cst_7 = arith.constant 0.797884583 : f32
    %13 = vector.broadcast %cst_7 : f32 to vector<2x64xf32>
    %14 = arith.mulf %13, %12 : vector<2x64xf32>
    %15 = math.tanh %14 : vector<2x64xf32>
    %cst_8 = arith.constant 1.000000e+00 : f32
    %16 = vector.broadcast %cst_8 : f32 to vector<2x64xf32>
    %17 = arith.addf %16, %15 : vector<2x64xf32>
    %18 = arith.mulf %7, %17 : vector<2x64xf32>
    %c0_9 = arith.constant 0 : index
    %c0_10 = arith.constant 0 : index
    %19 = vector.load %arg3[%c0_9, %c0_10] : memref<2x64xf32, #tpu.memory_space<vmem>>, vector<2x64xf32>
    tpu.vector_store %arg3[%c0_9, %c0_10], %18 {strides = array<i32>} : memref<2x64xf32, #tpu.memory_space<vmem>>, vector<2x64xf32>,
    return
  }
}

module attributes {stable_mosaic.version = 11 : i64} {
  func.func @_linear_kernel(%arg0: memref<2x64xf32, #tpu.memory_space<vmem>>, %arg1: memref<64x32xf32, #tpu.memory_space<vmem>>, %arg2: memref<1x32xf32, #tpu.memory_space<vmem>>, %arg3: memref<2x32xf32, #tpu.memory_space<vmem>>) attributes {dimension_semantics = [], scalar_prefetch = 0 : i64, scratch_operands = 0 : i64, tpu.core_type = #tpu.core_type<tc>} {
    %c0 = arith.constant 0 : index
    %c0_0 = arith.constant 0 : index
    %0 = vector.load %arg0[%c0, %c0_0] : memref<2x64xf32, #tpu.memory_space<vmem>>, vector<2x64xf32>
    %c0_1 = arith.constant 0 : index
    %c0_2 = arith.constant 0 : index
    %1 = vector.load %arg1[%c0_1, %c0_2] : memref<64x32xf32, #tpu.memory_space<vmem>>, vector<64x32xf32>
    %cst = arith.constant dense<0.000000e+00> : vector<2x32xf32>
    %2 = tpu.matmul %0, %1, %cst {dimension_numbers = #tpu.dot_dimension_numbers<[1], [0], [0], [1], [0, 0, 1, 1], [], []>} : vector<2x64xf32>, vector<64x32xf32>, vector<2x32xf32> -> vector<2x32xf32>
    %c0_3 = arith.constant 0 : index
    %c0_4 = arith.constant 0 : index
    %3 = vector.load %arg2[%c0_3, %c0_4] : memref<1x32xf32, #tpu.memory_space<vmem>>, vector<1x32xf32>
    %4 = vector.broadcast %3 : vector<1x32xf32> to vector<2x32xf32>
    %5 = arith.addf %2, %4 : vector<2x32xf32>
    %cst_5 = arith.constant 0.000000e+00 : f32
    %6 = vector.broadcast %cst_5 : f32 to vector<2x32xf32>
    %7 = arith.subf %6, %5 : vector<2x32xf32>
    %8 = math.exp %7 : vector<2x32xf32>
    %cst_6 = arith.constant 1.000000e+00 : f32
    %9 = vector.broadcast %cst_6 : f32 to vector<2x32xf32>
    %10 = arith.addf %9, %8 : vector<2x32xf32>
    %cst_7 = arith.constant 1.000000e+00 : f32
    %11 = vector.broadcast %cst_7 : f32 to vector<2x32xf32>
    %12 = arith.divf %11, %10 : vector<2x32xf32>
    %c0_8 = arith.constant 0 : index
    %c0_9 = arith.constant 0 : index
    %13 = vector.load %arg3[%c0_8, %c0_9] : memref<2x32xf32, #tpu.memory_space<vmem>>, vector<2x32xf32>
    tpu.vector_store %arg3[%c0_8, %c0_9], %12 {strides = array<i32>} : memref<2x32xf32, #tpu.memory_space<vmem>>, vector<2x32xf32>,
    return
  }
}

module attributes {stable_mosaic.version = 11 : i64} {
  func.func @_linear_kernel(%arg0: memref<32x32xf32, #tpu.memory_space<vmem>>, %arg1: memref<32x96xf32, #tpu.memory_space<vmem>>, %arg2: memref<1x96xf32, #tpu.memory_space<vmem>>, %arg3: memref<32x96xf32, #tpu.memory_space<vmem>>) attributes {dimension_semantics = [], scalar_prefetch = 0 : i64, scratch_operands = 0 : i64, tpu.core_type = #tpu.core_type<tc>} {
    %c0 = arith.constant 0 : index
    %c0_0 = arith.constant 0 : index
    %0 = vector.load %arg0[%c0, %c0_0] : memref<32x32xf32, #tpu.memory_space<vmem>>, vector<32x32xf32>
    %c0_1 = arith.constant 0 : index
    %c0_2 = arith.constant 0 : index
    %1 = vector.load %arg1[%c0_1, %c0_2] : memref<32x96xf32, #tpu.memory_space<vmem>>, vector<32x96xf32>
    %cst = arith.constant dense<0.000000e+00> : vector<32x96xf32>
    %2 = tpu.matmul %0, %1, %cst {dimension_numbers = #tpu.dot_dimension_numbers<[1], [0], [0], [1], [0, 0, 1, 1], [], []>} : vector<32x32xf32>, vector<32x96xf32>, vector<32x96xf32> -> vector<32x96xf32>
    %c0_3 = arith.constant 0 : index
    %c0_4 = arith.constant 0 : index
    %3 = vector.load %arg2[%c0_3, %c0_4] : memref<1x96xf32, #tpu.memory_space<vmem>>, vector<1x96xf32>
    %4 = vector.broadcast %3 : vector<1x96xf32> to vector<32x96xf32>
    %5 = arith.addf %2, %4 : vector<32x96xf32>
    %c0_5 = arith.constant 0 : index
    %c0_6 = arith.constant 0 : index
    %6 = vector.load %arg3[%c0_5, %c0_6] : memref<32x96xf32, #tpu.memory_space<vmem>>, vector<32x96xf32>
    tpu.vector_store %arg3[%c0_5, %c0_6], %5 {strides = array<i32>} : memref<32x96xf32, #tpu.memory_space<vmem>>, vector<32x96xf32>,
    return
  }
}

module attributes {stable_mosaic.version = 11 : i64} {
  func.func @_linear_kernel(%arg0: memref<32x32xf32, #tpu.memory_space<vmem>>, %arg1: memref<32x32xf32, #tpu.memory_space<vmem>>, %arg2: memref<1x32xf32, #tpu.memory_space<vmem>>, %arg3: memref<32x32xf32, #tpu.memory_space<vmem>>) attributes {dimension_semantics = [], scalar_prefetch = 0 : i64, scratch_operands = 0 : i64, tpu.core_type = #tpu.core_type<tc>} {
    %c0 = arith.constant 0 : index
    %c0_0 = arith.constant 0 : index
    %0 = vector.load %arg0[%c0, %c0_0] : memref<32x32xf32, #tpu.memory_space<vmem>>, vector<32x32xf32>
    %c0_1 = arith.constant 0 : index
    %c0_2 = arith.constant 0 : index
    %1 = vector.load %arg1[%c0_1, %c0_2] : memref<32x32xf32, #tpu.memory_space<vmem>>, vector<32x32xf32>
    %cst = arith.constant dense<0.000000e+00> : vector<32x32xf32>
    %2 = tpu.matmul %0, %1, %cst {dimension_numbers = #tpu.dot_dimension_numbers<[1], [0], [0], [1], [0, 0, 1, 1], [], []>} : vector<32x32xf32>, vector<32x32xf32>, vector<32x32xf32> -> vector<32x32xf32>
    %c0_3 = arith.constant 0 : index
    %c0_4 = arith.constant 0 : index
    %3 = vector.load %arg2[%c0_3, %c0_4] : memref<1x32xf32, #tpu.memory_space<vmem>>, vector<1x32xf32>
    %4 = vector.broadcast %3 : vector<1x32xf32> to vector<32x32xf32>
    %5 = arith.addf %2, %4 : vector<32x32xf32>
    %c0_5 = arith.constant 0 : index
    %c0_6 = arith.constant 0 : index
    %6 = vector.load %arg3[%c0_5, %c0_6] : memref<32x32xf32, #tpu.memory_space<vmem>>, vector<32x32xf32>
    tpu.vector_store %arg3[%c0_5, %c0_6], %5 {strides = array<i32>} : memref<32x32xf32, #tpu.memory_space<vmem>>, vector<32x32xf32>,
    return
  }
}

module attributes {stable_mosaic.version = 11 : i64} {
  func.func @_mha_core_kernel(%arg0: memref<2x64x8xf32, #tpu.memory_space<vmem>>, %arg1: memref<2x64x8xf32, #tpu.memory_space<vmem>>, %arg2: memref<2x64x8xf32, #tpu.memory_space<vmem>>, %arg3: memref<2x64x8xf32, #tpu.memory_space<vmem>>) attributes {dimension_semantics = [], scalar_prefetch = 0 : i64, scratch_operands = 0 : i64, tpu.core_type = #tpu.core_type<tc>} {
    %c0 = arith.constant 0 : index
    %c0_0 = arith.constant 0 : index
    %c0_1 = arith.constant 0 : index
    %0 = vector.load %arg1[%c0, %c0_0, %c0_1] : memref<2x64x8xf32, #tpu.memory_space<vmem>>, vector<1x64x8xf32>
    %1 = vector.shape_cast %0 : vector<1x64x8xf32> to vector<64x8xf32>
    %c1 = arith.constant 1 : index
    %c0_2 = arith.constant 0 : index
    %c0_3 = arith.constant 0 : index
    %2 = vector.load %arg1[%c1, %c0_2, %c0_3] : memref<2x64x8xf32, #tpu.memory_space<vmem>>, vector<1x64x8xf32>
    %3 = vector.shape_cast %2 : vector<1x64x8xf32> to vector<64x8xf32>
    %c0_4 = arith.constant 0 : index
    %c0_5 = arith.constant 0 : index
    %c0_6 = arith.constant 0 : index
    %4 = vector.load %arg2[%c0_4, %c0_5, %c0_6] : memref<2x64x8xf32, #tpu.memory_space<vmem>>, vector<1x64x8xf32>
    %5 = vector.shape_cast %4 : vector<1x64x8xf32> to vector<64x8xf32>
    %c1_7 = arith.constant 1 : index
    %c0_8 = arith.constant 0 : index
    %c0_9 = arith.constant 0 : index
    %6 = vector.load %arg2[%c1_7, %c0_8, %c0_9] : memref<2x64x8xf32, #tpu.memory_space<vmem>>, vector<1x64x8xf32>
    %7 = vector.shape_cast %6 : vector<1x64x8xf32> to vector<64x8xf32>
    %c0_10 = arith.constant 0 : index
    %c0_11 = arith.constant 0 : index
    %c0_12 = arith.constant 0 : index
    %8 = vector.load %arg0[%c0_10, %c0_11, %c0_12] : memref<2x64x8xf32, #tpu.memory_space<vmem>>, vector<1x64x8xf32>
    %9 = vector.shape_cast %8 : vector<1x64x8xf32> to vector<64x8xf32>
    %10 = arith.mulf %9, %1 : vector<64x8xf32>
    %cst = arith.constant dense<0.000000e+00> : vector<64xf32>
    %11 = vector.multi_reduction <add>, %10, %cst [1] : vector<64x8xf32> to vector<64xf32>
    %12 = vector.shape_cast %11 : vector<64xf32> to vector<64x1xf32>
    %cst_13 = arith.constant 0.353553385 : f32
    %13 = vector.broadcast %cst_13 : f32 to vector<64x1xf32>
    %14 = arith.mulf %12, %13 : vector<64x1xf32>
    %15 = arith.mulf %9, %3 : vector<64x8xf32>
    %cst_14 = arith.constant dense<0.000000e+00> : vector<64xf32>
    %16 = vector.multi_reduction <add>, %15, %cst_14 [1] : vector<64x8xf32> to vector<64xf32>
    %17 = vector.shape_cast %16 : vector<64xf32> to vector<64x1xf32>
    %cst_15 = arith.constant 0.353553385 : f32
    %18 = vector.broadcast %cst_15 : f32 to vector<64x1xf32>
    %19 = arith.mulf %17, %18 : vector<64x1xf32>
    %20 = arith.maximumf %14, %19 : vector<64x1xf32>
    %21 = arith.subf %14, %20 : vector<64x1xf32>
    %22 = math.exp %21 : vector<64x1xf32>
    %23 = arith.subf %19, %20 : vector<64x1xf32>
    %24 = math.exp %23 : vector<64x1xf32>
    %25 = arith.addf %22, %24 : vector<64x1xf32>
    %cst_16 = arith.constant 1.000000e+00 : f32
    %26 = vector.broadcast %cst_16 : f32 to vector<64x1xf32>
    %27 = arith.divf %26, %25 : vector<64x1xf32>
    %28 = arith.mulf %22, %27 : vector<64x1xf32>
    %29 = vector.broadcast %28 : vector<64x1xf32> to vector<64x8xf32>
    %30 = arith.mulf %29, %5 : vector<64x8xf32>
    %31 = arith.mulf %24, %27 : vector<64x1xf32>
    %32 = vector.broadcast %31 : vector<64x1xf32> to vector<64x8xf32>
    %33 = arith.mulf %32, %7 : vector<64x8xf32>
    %34 = arith.addf %30, %33 : vector<64x8xf32>
    %c0_17 = arith.constant 0 : index
    %c0_18 = arith.constant 0 : index
    %c0_19 = arith.constant 0 : index
    %35 = vector.load %arg3[%c0_17, %c0_18, %c0_19] : memref<2x64x8xf32, #tpu.memory_space<vmem>>, vector<1x64x8xf32>
    %36 = vector.shape_cast %35 : vector<1x64x8xf32> to vector<64x8xf32>
    %37 = vector.shape_cast %34 : vector<64x8xf32> to vector<1x64x8xf32>
    tpu.vector_store %arg3[%c0_17, %c0_18, %c0_19], %37 {strides = array<i32>} : memref<2x64x8xf32, #tpu.memory_space<vmem>>, vector<1x64x8xf32>,
    %c1_20 = arith.constant 1 : index
    %c0_21 = arith.constant 0 : index
    %c0_22 = arith.constant 0 : index
    %38 = vector.load %arg0[%c1_20, %c0_21, %c0_22] : memref<2x64x8xf32, #tpu.memory_space<vmem>>, vector<1x64x8xf32>
    %39 = vector.shape_cast %38 : vector<1x64x8xf32> to vector<64x8xf32>
    %40 = arith.mulf %39, %1 : vector<64x8xf32>
    %cst_23 = arith.constant dense<0.000000e+00> : vector<64xf32>
    %41 = vector.multi_reduction <add>, %40, %cst_23 [1] : vector<64x8xf32> to vector<64xf32>
    %42 = vector.shape_cast %41 : vector<64xf32> to vector<64x1xf32>
    %cst_24 = arith.constant 0.353553385 : f32
    %43 = vector.broadcast %cst_24 : f32 to vector<64x1xf32>
    %44 = arith.mulf %42, %43 : vector<64x1xf32>
    %45 = arith.mulf %39, %3 : vector<64x8xf32>
    %cst_25 = arith.constant dense<0.000000e+00> : vector<64xf32>
    %46 = vector.multi_reduction <add>, %45, %cst_25 [1] : vector<64x8xf32> to vector<64xf32>
    %47 = vector.shape_cast %46 : vector<64xf32> to vector<64x1xf32>
    %cst_26 = arith.constant 0.353553385 : f32
    %48 = vector.broadcast %cst_26 : f32 to vector<64x1xf32>
    %49 = arith.mulf %47, %48 : vector<64x1xf32>
    %50 = arith.maximumf %44, %49 : vector<64x1xf32>
    %51 = arith.subf %44, %50 : vector<64x1xf32>
    %52 = math.exp %51 : vector<64x1xf32>
    %53 = arith.subf %49, %50 : vector<64x1xf32>
    %54 = math.exp %53 : vector<64x1xf32>
    %55 = arith.addf %52, %54 : vector<64x1xf32>
    %cst_27 = arith.constant 1.000000e+00 : f32
    %56 = vector.broadcast %cst_27 : f32 to vector<64x1xf32>
    %57 = arith.divf %56, %55 : vector<64x1xf32>
    %58 = arith.mulf %52, %57 : vector<64x1xf32>
    %59 = vector.broadcast %58 : vector<64x1xf32> to vector<64x8xf32>
    %60 = arith.mulf %59, %5 : vector<64x8xf32>
    %61 = arith.mulf %54, %57 : vector<64x1xf32>
    %62 = vector.broadcast %61 : vector<64x1xf32> to vector<64x8xf32>
    %63 = arith.mulf %62, %7 : vector<64x8xf32>
    %64 = arith.addf %60, %63 : vector<64x8xf32>
    %c1_28 = arith.constant 1 : index
    %c0_29 = arith.constant 0 : index
    %c0_30 = arith.constant 0 : index
    %65 = vector.load %arg3[%c1_28, %c0_29, %c0_30] : memref<2x64x8xf32, #tpu.memory_space<vmem>>, vector<1x64x8xf32>
    %66 = vector.shape_cast %65 : vector<1x64x8xf32> to vector<64x8xf32>
    %67 = vector.shape_cast %64 : vector<64x8xf32> to vector<1x64x8xf32>
    tpu.vector_store %arg3[%c1_28, %c0_29, %c0_30], %67 {strides = array<i32>} : memref<2x64x8xf32, #tpu.memory_space<vmem>>, vector<1x64x8xf32>,
    return
  }
}

module attributes {stable_mosaic.version = 11 : i64} {
  func.func @_linear_kernel(%arg0: memref<32x32xf32, #tpu.memory_space<vmem>>, %arg1: memref<32x64xf32, #tpu.memory_space<vmem>>, %arg2: memref<1x64xf32, #tpu.memory_space<vmem>>, %arg3: memref<32x64xf32, #tpu.memory_space<vmem>>) attributes {dimension_semantics = [], scalar_prefetch = 0 : i64, scratch_operands = 0 : i64, tpu.core_type = #tpu.core_type<tc>} {
    %c0 = arith.constant 0 : index
    %c0_0 = arith.constant 0 : index
    %0 = vector.load %arg0[%c0, %c0_0] : memref<32x32xf32, #tpu.memory_space<vmem>>, vector<32x32xf32>
    %c0_1 = arith.constant 0 : index
    %c0_2 = arith.constant 0 : index
    %1 = vector.load %arg1[%c0_1, %c0_2] : memref<32x64xf32, #tpu.memory_space<vmem>>, vector<32x64xf32>
    %cst = arith.constant dense<0.000000e+00> : vector<32x64xf32>
    %2 = tpu.matmul %0, %1, %cst {dimension_numbers = #tpu.dot_dimension_numbers<[1], [0], [0], [1], [0, 0, 1, 1], [], []>} : vector<32x32xf32>, vector<32x64xf32>, vector<32x64xf32> -> vector<32x64xf32>
    %c0_3 = arith.constant 0 : index
    %c0_4 = arith.constant 0 : index
    %3 = vector.load %arg2[%c0_3, %c0_4] : memref<1x64xf32, #tpu.memory_space<vmem>>, vector<1x64xf32>
    %4 = vector.broadcast %3 : vector<1x64xf32> to vector<32x64xf32>
    %5 = arith.addf %2, %4 : vector<32x64xf32>
    %cst_5 = arith.constant 5.000000e-01 : f32
    %6 = vector.broadcast %cst_5 : f32 to vector<32x64xf32>
    %7 = arith.mulf %6, %5 : vector<32x64xf32>
    %8 = arith.mulf %5, %5 : vector<32x64xf32>
    %9 = arith.mulf %8, %5 : vector<32x64xf32>
    %cst_6 = arith.constant 4.471500e-02 : f32
    %10 = vector.broadcast %cst_6 : f32 to vector<32x64xf32>
    %11 = arith.mulf %10, %9 : vector<32x64xf32>
    %12 = arith.addf %5, %11 : vector<32x64xf32>
    %cst_7 = arith.constant 0.797884583 : f32
    %13 = vector.broadcast %cst_7 : f32 to vector<32x64xf32>
    %14 = arith.mulf %13, %12 : vector<32x64xf32>
    %15 = math.tanh %14 : vector<32x64xf32>
    %cst_8 = arith.constant 1.000000e+00 : f32
    %16 = vector.broadcast %cst_8 : f32 to vector<32x64xf32>
    %17 = arith.addf %16, %15 : vector<32x64xf32>
    %18 = arith.mulf %7, %17 : vector<32x64xf32>
    %c0_9 = arith.constant 0 : index
    %c0_10 = arith.constant 0 : index
    %19 = vector.load %arg3[%c0_9, %c0_10] : memref<32x64xf32, #tpu.memory_space<vmem>>, vector<32x64xf32>
    tpu.vector_store %arg3[%c0_9, %c0_10], %18 {strides = array<i32>} : memref<32x64xf32, #tpu.memory_space<vmem>>, vector<32x64xf32>,
    return
  }
}

module attributes {stable_mosaic.version = 11 : i64} {
  func.func @_linear_kernel(%arg0: memref<32x64xf32, #tpu.memory_space<vmem>>, %arg1: memref<64x32xf32, #tpu.memory_space<vmem>>, %arg2: memref<1x32xf32, #tpu.memory_space<vmem>>, %arg3: memref<32x32xf32, #tpu.memory_space<vmem>>) attributes {dimension_semantics = [], scalar_prefetch = 0 : i64, scratch_operands = 0 : i64, tpu.core_type = #tpu.core_type<tc>} {
    %c0 = arith.constant 0 : index
    %c0_0 = arith.constant 0 : index
    %0 = vector.load %arg0[%c0, %c0_0] : memref<32x64xf32, #tpu.memory_space<vmem>>, vector<32x64xf32>
    %c0_1 = arith.constant 0 : index
    %c0_2 = arith.constant 0 : index
    %1 = vector.load %arg1[%c0_1, %c0_2] : memref<64x32xf32, #tpu.memory_space<vmem>>, vector<64x32xf32>
    %cst = arith.constant dense<0.000000e+00> : vector<32x32xf32>
    %2 = tpu.matmul %0, %1, %cst {dimension_numbers = #tpu.dot_dimension_numbers<[1], [0], [0], [1], [0, 0, 1, 1], [], []>} : vector<32x64xf32>, vector<64x32xf32>, vector<32x32xf32> -> vector<32x32xf32>
    %c0_3 = arith.constant 0 : index
    %c0_4 = arith.constant 0 : index
    %3 = vector.load %arg2[%c0_3, %c0_4] : memref<1x32xf32, #tpu.memory_space<vmem>>, vector<1x32xf32>
    %4 = vector.broadcast %3 : vector<1x32xf32> to vector<32x32xf32>
    %5 = arith.addf %2, %4 : vector<32x32xf32>
    %c0_5 = arith.constant 0 : index
    %c0_6 = arith.constant 0 : index
    %6 = vector.load %arg3[%c0_5, %c0_6] : memref<32x32xf32, #tpu.memory_space<vmem>>, vector<32x32xf32>
    tpu.vector_store %arg3[%c0_5, %c0_6], %5 {strides = array<i32>} : memref<32x32xf32, #tpu.memory_space<vmem>>, vector<32x32xf32>,
    return
  }
}

module attributes {stable_mosaic.version = 11 : i64} {
  func.func @_linear_kernel(%arg0: memref<32x64xf32, #tpu.memory_space<vmem>>, %arg1: memref<64x32xf32, #tpu.memory_space<vmem>>, %arg2: memref<1x32xf32, #tpu.memory_space<vmem>>, %arg3: memref<32x32xf32, #tpu.memory_space<vmem>>) attributes {dimension_semantics = [], scalar_prefetch = 0 : i64, scratch_operands = 0 : i64, tpu.core_type = #tpu.core_type<tc>} {
    %c0 = arith.constant 0 : index
    %c0_0 = arith.constant 0 : index
    %0 = vector.load %arg0[%c0, %c0_0] : memref<32x64xf32, #tpu.memory_space<vmem>>, vector<32x64xf32>
    %c0_1 = arith.constant 0 : index
    %c0_2 = arith.constant 0 : index
    %1 = vector.load %arg1[%c0_1, %c0_2] : memref<64x32xf32, #tpu.memory_space<vmem>>, vector<64x32xf32>
    %cst = arith.constant dense<0.000000e+00> : vector<32x32xf32>
    %2 = tpu.matmul %0, %1, %cst {dimension_numbers = #tpu.dot_dimension_numbers<[1], [0], [0], [1], [0, 0, 1, 1], [], []>} : vector<32x64xf32>, vector<64x32xf32>, vector<32x32xf32> -> vector<32x32xf32>
    %c0_3 = arith.constant 0 : index
    %c0_4 = arith.constant 0 : index
    %3 = vector.load %arg2[%c0_3, %c0_4] : memref<1x32xf32, #tpu.memory_space<vmem>>, vector<1x32xf32>
    %4 = vector.broadcast %3 : vector<1x32xf32> to vector<32x32xf32>
    %5 = arith.addf %2, %4 : vector<32x32xf32>
    %cst_5 = arith.constant 0.000000e+00 : f32
    %6 = vector.broadcast %cst_5 : f32 to vector<32x32xf32>
    %7 = arith.subf %6, %5 : vector<32x32xf32>
    %8 = math.exp %7 : vector<32x32xf32>
    %cst_6 = arith.constant 1.000000e+00 : f32
    %9 = vector.broadcast %cst_6 : f32 to vector<32x32xf32>
    %10 = arith.addf %9, %8 : vector<32x32xf32>
    %cst_7 = arith.constant 1.000000e+00 : f32
    %11 = vector.broadcast %cst_7 : f32 to vector<32x32xf32>
    %12 = arith.divf %11, %10 : vector<32x32xf32>
    %c0_8 = arith.constant 0 : index
    %c0_9 = arith.constant 0 : index
    %13 = vector.load %arg3[%c0_8, %c0_9] : memref<32x32xf32, #tpu.memory_space<vmem>>, vector<32x32xf32>
    tpu.vector_store %arg3[%c0_8, %c0_9], %12 {strides = array<i32>} : memref<32x32xf32, #tpu.memory_space<vmem>>, vector<32x32xf32>,
    return
  }
}

module attributes {stable_mosaic.version = 11 : i64} {
  func.func @_conv_s2d_kernel(%arg0: i32, %arg1: memref<1x128x7xf32, #tpu.memory_space<vmem>>, %arg2: memref<96x512xf32, #tpu.memory_space<vmem>>, %arg3: memref<96x1xf32, #tpu.memory_space<vmem>>, %arg4: memref<1x96x4xf32, #tpu.memory_space<vmem>>) attributes {dimension_semantics = [#tpu.dimension_semantics<parallel>], iteration_bounds = array<i64: 2>, scalar_prefetch = 0 : i64, scratch_operands = 0 : i64, tpu.core_type = #tpu.core_type<tc>, window_params = [{transform_indices = @transform_0, window_bounds = array<i64: 1, 128, 7>}, {pipeline_mode = #tpu.pipeline_mode<synchronous>, transform_indices = @transform_1, window_bounds = array<i64: 96, 512>}, {pipeline_mode = #tpu.pipeline_mode<synchronous>, transform_indices = @transform_2, window_bounds = array<i64: 96, 1>}, {transform_indices = @transform_3, window_bounds = array<i64: 1, 96, 4>}]} {
    %c0 = arith.constant 0 : index
    %c0_0 = arith.constant 0 : index
    %0 = vector.load %arg2[%c0, %c0_0] : memref<96x512xf32, #tpu.memory_space<vmem>>, vector<96x512xf32>
    %c0_1 = arith.constant 0 : index
    %c0_2 = arith.constant 0 : index
    %1 = vector.load %arg3[%c0_1, %c0_2] : memref<96x1xf32, #tpu.memory_space<vmem>>, vector<96x1xf32>
    %2 = vector.shape_cast %1 : vector<96x1xf32> to vector<96x1xf32>
    %3 = vector.broadcast %2 : vector<96x1xf32> to vector<96x4xf32>
    %c0_3 = arith.constant 0 : index
    %c0_4 = arith.constant 0 : index
    %c0_5 = arith.constant 0 : index
    %4 = vector.load %arg1[%c0_3, %c0_4, %c0_5] : memref<1x128x7xf32, #tpu.memory_space<vmem>>, vector<1x128x7xf32>
    %5 = vector.shape_cast %4 : vector<1x128x7xf32> to vector<128x7xf32>
    %6 = vector.extract_strided_slice %5 {offsets = [0, 0], sizes = [128, 4], strides = [1, 1]} : vector<128x7xf32> to vector<128x4xf32>
    %7 = vector.extract_strided_slice %5 {offsets = [0, 1], sizes = [128, 4], strides = [1, 1]} : vector<128x7xf32> to vector<128x4xf32>
    %8 = vector.extract_strided_slice %5 {offsets = [0, 2], sizes = [128, 4], strides = [1, 1]} : vector<128x7xf32> to vector<128x4xf32>
    %9 = vector.extract_strided_slice %5 {offsets = [0, 3], sizes = [128, 4], strides = [1, 1]} : vector<128x7xf32> to vector<128x4xf32>
    %10 = tpu.concatenate %6, %7, %8, %9 in 0 : vector<128x4xf32>, vector<128x4xf32>, vector<128x4xf32>, vector<128x4xf32> -> vector<512x4xf32>
    %cst = arith.constant dense<0.000000e+00> : vector<96x4xf32>
    %11 = tpu.matmul %0, %10, %cst {dimension_numbers = #tpu.dot_dimension_numbers<[1], [0], [0], [1], [0, 0, 1, 1], [], []>} : vector<96x512xf32>, vector<512x4xf32>, vector<96x4xf32> -> vector<96x4xf32>
    %12 = arith.addf %11, %3 : vector<96x4xf32>
    %cst_6 = arith.constant 5.000000e-01 : f32
    %13 = vector.broadcast %cst_6 : f32 to vector<96x4xf32>
    %14 = arith.mulf %13, %12 : vector<96x4xf32>
    %15 = arith.mulf %12, %12 : vector<96x4xf32>
    %16 = arith.mulf %15, %12 : vector<96x4xf32>
    %cst_7 = arith.constant 4.471500e-02 : f32
    %17 = vector.broadcast %cst_7 : f32 to vector<96x4xf32>
    %18 = arith.mulf %17, %16 : vector<96x4xf32>
    %19 = arith.addf %12, %18 : vector<96x4xf32>
    %cst_8 = arith.constant 0.797884583 : f32
    %20 = vector.broadcast %cst_8 : f32 to vector<96x4xf32>
    %21 = arith.mulf %20, %19 : vector<96x4xf32>
    %22 = math.tanh %21 : vector<96x4xf32>
    %cst_9 = arith.constant 1.000000e+00 : f32
    %23 = vector.broadcast %cst_9 : f32 to vector<96x4xf32>
    %24 = arith.addf %23, %22 : vector<96x4xf32>
    %25 = arith.mulf %14, %24 : vector<96x4xf32>
    %c0_10 = arith.constant 0 : index
    %c0_11 = arith.constant 0 : index
    %c0_12 = arith.constant 0 : index
    %26 = vector.load %arg4[%c0_10, %c0_11, %c0_12] : memref<1x96x4xf32, #tpu.memory_space<vmem>>, vector<1x96x4xf32>
    %27 = vector.shape_cast %26 : vector<1x96x4xf32> to vector<96x4xf32>
    %28 = vector.shape_cast %25 : vector<96x4xf32> to vector<1x96x4xf32>
    tpu.vector_store %arg4[%c0_10, %c0_11, %c0_12], %28 {strides = array<i32>} : memref<1x96x4xf32, #tpu.memory_space<vmem>>, vector<1x96x4xf32>,
    return
  }
  func.func @transform_0(%arg0: i32) -> (i32, i32, i32) {
    %c0_i32 = arith.constant 0 : i32
    %c0_i32_0 = arith.constant 0 : i32
    %c0_i32_1 = arith.constant 0 : i32
    return %arg0, %c0_i32, %c0_i32_0 : i32, i32, i32
  }
  func.func @transform_1(%arg0: i32) -> (i32, i32) {
    %c0_i32 = arith.constant 0 : i32
    %c0_i32_0 = arith.constant 0 : i32
    %c0_i32_1 = arith.constant 0 : i32
    return %c0_i32, %c0_i32_0 : i32, i32
  }
  func.func @transform_2(%arg0: i32) -> (i32, i32) {
    %c0_i32 = arith.constant 0 : i32
    %c0_i32_0 = arith.constant 0 : i32
    %c0_i32_1 = arith.constant 0 : i32
    return %c0_i32, %c0_i32_0 : i32, i32
  }
  func.func @transform_3(%arg0: i32) -> (i32, i32, i32) {
    %c0_i32 = arith.constant 0 : i32
    %c0_i32_0 = arith.constant 0 : i32
    %c0_i32_1 = arith.constant 0 : i32
    return %arg0, %c0_i32, %c0_i32_0 : i32, i32, i32
  }
}

module attributes {stable_mosaic.version = 11 : i64} {
  func.func @_linear_kernel(%arg0: memref<2x96xf32, #tpu.memory_space<vmem>>, %arg1: memref<96x32xf32, #tpu.memory_space<vmem>>, %arg2: memref<1x32xf32, #tpu.memory_space<vmem>>, %arg3: memref<2x32xf32, #tpu.memory_space<vmem>>) attributes {dimension_semantics = [], scalar_prefetch = 0 : i64, scratch_operands = 0 : i64, tpu.core_type = #tpu.core_type<tc>} {
    %c0 = arith.constant 0 : index
    %c0_0 = arith.constant 0 : index
    %0 = vector.load %arg0[%c0, %c0_0] : memref<2x96xf32, #tpu.memory_space<vmem>>, vector<2x96xf32>
    %c0_1 = arith.constant 0 : index
    %c0_2 = arith.constant 0 : index
    %1 = vector.load %arg1[%c0_1, %c0_2] : memref<96x32xf32, #tpu.memory_space<vmem>>, vector<96x32xf32>
    %cst = arith.constant dense<0.000000e+00> : vector<2x32xf32>
    %2 = tpu.matmul %0, %1, %cst {dimension_numbers = #tpu.dot_dimension_numbers<[1], [0], [0], [1], [0, 0, 1, 1], [], []>} : vector<2x96xf32>, vector<96x32xf32>, vector<2x32xf32> -> vector<2x32xf32>
    %c0_3 = arith.constant 0 : index
    %c0_4 = arith.constant 0 : index
    %3 = vector.load %arg2[%c0_3, %c0_4] : memref<1x32xf32, #tpu.memory_space<vmem>>, vector<1x32xf32>
    %4 = vector.broadcast %3 : vector<1x32xf32> to vector<2x32xf32>
    %5 = arith.addf %2, %4 : vector<2x32xf32>
    %cst_5 = arith.constant 5.000000e-01 : f32
    %6 = vector.broadcast %cst_5 : f32 to vector<2x32xf32>
    %7 = arith.mulf %6, %5 : vector<2x32xf32>
    %8 = arith.mulf %5, %5 : vector<2x32xf32>
    %9 = arith.mulf %8, %5 : vector<2x32xf32>
    %cst_6 = arith.constant 4.471500e-02 : f32
    %10 = vector.broadcast %cst_6 : f32 to vector<2x32xf32>
    %11 = arith.mulf %10, %9 : vector<2x32xf32>
    %12 = arith.addf %5, %11 : vector<2x32xf32>
    %cst_7 = arith.constant 0.797884583 : f32
    %13 = vector.broadcast %cst_7 : f32 to vector<2x32xf32>
    %14 = arith.mulf %13, %12 : vector<2x32xf32>
    %15 = math.tanh %14 : vector<2x32xf32>
    %cst_8 = arith.constant 1.000000e+00 : f32
    %16 = vector.broadcast %cst_8 : f32 to vector<2x32xf32>
    %17 = arith.addf %16, %15 : vector<2x32xf32>
    %18 = arith.mulf %7, %17 : vector<2x32xf32>
    %c0_9 = arith.constant 0 : index
    %c0_10 = arith.constant 0 : index
    %19 = vector.load %arg3[%c0_9, %c0_10] : memref<2x32xf32, #tpu.memory_space<vmem>>, vector<2x32xf32>
    tpu.vector_store %arg3[%c0_9, %c0_10], %18 {strides = array<i32>} : memref<2x32xf32, #tpu.memory_space<vmem>>, vector<2x32xf32>,
    return
  }
}

module attributes {stable_mosaic.version = 11 : i64} {
  func.func @_linear_kernel(%arg0: memref<2x32xf32, #tpu.memory_space<vmem>>, %arg1: memref<32x10xf32, #tpu.memory_space<vmem>>, %arg2: memref<1x10xf32, #tpu.memory_space<vmem>>, %arg3: memref<2x10xf32, #tpu.memory_space<vmem>>) attributes {dimension_semantics = [], scalar_prefetch = 0 : i64, scratch_operands = 0 : i64, tpu.core_type = #tpu.core_type<tc>} {
    %c0 = arith.constant 0 : index
    %c0_0 = arith.constant 0 : index
    %0 = vector.load %arg0[%c0, %c0_0] : memref<2x32xf32, #tpu.memory_space<vmem>>, vector<2x32xf32>
    %c0_1 = arith.constant 0 : index
    %c0_2 = arith.constant 0 : index
    %1 = vector.load %arg1[%c0_1, %c0_2] : memref<32x10xf32, #tpu.memory_space<vmem>>, vector<32x10xf32>
    %cst = arith.constant dense<0.000000e+00> : vector<2x10xf32>
    %2 = tpu.matmul %0, %1, %cst {dimension_numbers = #tpu.dot_dimension_numbers<[1], [0], [0], [1], [0, 0, 1, 1], [], []>} : vector<2x32xf32>, vector<32x10xf32>, vector<2x10xf32> -> vector<2x10xf32>
    %c0_3 = arith.constant 0 : index
    %c0_4 = arith.constant 0 : index
    %3 = vector.load %arg2[%c0_3, %c0_4] : memref<1x10xf32, #tpu.memory_space<vmem>>, vector<1x10xf32>
    %4 = vector.broadcast %3 : vector<1x10xf32> to vector<2x10xf32>
    %5 = arith.addf %2, %4 : vector<2x10xf32>
    %c0_5 = arith.constant 0 : index
    %c0_6 = arith.constant 0 : index
    %6 = vector.load %arg3[%c0_5, %c0_6] : memref<2x10xf32, #tpu.memory_space<vmem>>, vector<2x10xf32>
    tpu.vector_store %arg3[%c0_5, %c0_6], %5 {strides = array<i32>} : memref<2x10xf32, #tpu.memory_space<vmem>>, vector<2x10xf32>,
    return
  }
}

</mosaic_0001>

<bundles_post_ra>
// kernel: mixformer_forward_pallas.17
= control target key start
LH: loop header
LB: loop body
LE: loop exit
PB: predicated region body
PF: predicated region fallthrough
CT: control target
= control target key end

     0   :  { %vm33_vm0 = vcmask 523264   ;;  %vm167_vm1 = vcmask 261120   ;;  %s322_s1 = inlined_call_operand.vmem [shape: f32[64,32], index: 1, kind: input, shape index: {}]   ;;  %s323_s0 = inlined_call_operand.vmem [shape: f32[32,64], index: 0, kind: input, shape index: {}]   ;;  %s324_s2 = inlined_call_operand.vmem [shape: f32[1,32], index: 2, kind: input, shape index: {}]   ;;  %s325_s3 = inlined_call_operand.vmem [shape: f32[32,32], index: 3, kind: output, shape index: {}]  }
   0x1   :  { %v18_v0 = vld [vmem:[%s322_s1] sm:$0xff]  ;;  %v19_v1 = vld [vmem:[%s322_s1 + $0x8] sm:$0xff]  ;;  %v20_v2 = vld [vmem:[%s322_s1 + $0x10] sm:$0xff] }
   0x2   :  { %v215_v3 = vpack.c.bf16 %v19_v1, %v18_v0  ;;  %v21_v4 = vld [vmem:[%s322_s1 + $0x18] sm:$0xff]  ;;  %v22_v6 = vld [vmem:[%s322_s1 + $0x20] sm:$0xff]  ;;  %v23_v7 = vld [vmem:[%s322_s1 + $0x28] sm:$0xff] }
   0x3   :  { %v219_v5 = vpack.c.bf16 %v21_v4, %v20_v2  ;;  %v14_v8 = vld [vmem:[%s323_s0] sm:$0xff]  ;;  %v16_v9 = vld [vmem:[%s323_s0 + $0x10] sm:$0xff]  ;;  %v223_v10 = vpack.c.bf16 %v23_v7, %v22_v6  ;;  %v25_v12 = vld [vmem:[%s322_s1 + $0x38] sm:$0xff] }
   0x4   :  { %216 = vmatprep.subr.bf16.mxu0 %v215_v3  ;;  %231 = vmatprep.subr.bf16.mxu1 %v215_v3  ;;  %v24_v11 = vld [vmem:[%s322_s1 + $0x30] sm:$0xff]  ;;  %v15_v14 = vld [vmem:[%s323_s0 + $0x8] sm:$0xff]  ;;  %v17_v15 = vld [vmem:[%s323_s0 + $0x18] sm:$0xff] }
   0x5   :  { %218 = vmatpush3.bf16.msra.mxu0 %v215_v3  ;;  %235 = vmatpush3.bf16.msra.mxu1 %v215_v3  ;;  %v227_v13 = vpack.c.bf16 %v25_v12, %v24_v11  ;;  %v176_v16 = vld [vmem:[%s324_s2] ss:$0 sm:$0xff] }
   0x6   :  { %220 = vmatprep.subr.bf16.mxu0 %v219_v5  ;;  %232 = vmatprep.subr.bf16.mxu1 %v219_v5 }
   0x7   :  { %209 = vmatprep.mubr.msk.f32.mxu0 %vm33_vm0, %v14_v8  ;;  %212 = vmatprep.mubr.msk.f32.mxu1 %vm33_vm0, %v16_v9 }
   0x9   :  { %222 = vmatpush3.bf16.msra.mxu0 %v219_v5  ;;  %236 = vmatpush3.bf16.msra.mxu1 %v219_v5 }
   0xa   :  { %224 = vmatprep.subr.bf16.mxu0 %v223_v10  ;;  %233 = vmatprep.subr.bf16.mxu1 %v223_v10 }
   0xd   :  { %226 = vmatpush3.bf16.msra.mxu0 %v223_v10  ;;  %237 = vmatpush3.bf16.msra.mxu1 %v223_v10 }
   0xe   :  { %228 = vmatprep.subr.bf16.mxu0 %v227_v13  ;;  %234 = vmatprep.subr.bf16.mxu1 %v227_v13 }
  0x11   :  { %230 = vmatpush3.bf16.msra.mxu0 %v227_v13  ;;  %238 = vmatpush3.bf16.msra.mxu1 %v227_v13 }
  0x14   :  { %210 = vmatmul.mubr.msk.f32.vlgmr.msra.gmra.mrb[0].mxu0 %vm33_vm0, %v15_v14  ;;  %213 = vmatmul.mubr.msk.f32.vlgmr.msra.gmra.mrb[0].mxu1 %vm33_vm0, %v17_v15 }
  0xe7   :  { %v211_v17 = vpop.f32.mrb[0].mxu0  ;;  %v214_v18 = vpop.f32.mrb[0].mxu1 }
  0xe8   :  { %v118_v19 = vadd.f32 %v211_v17, %v176_v16  ;;  %v128_v20 = vadd.f32 %v214_v18, %v176_v16  ;;  %v112_v21 = vpop.f32.mrb[1].mxu0  ;;  %v122_v22 = vpop.f32.mrb[1].mxu1 }
  0xe9   :  { %v113_v23 = vadd.f32 %v176_v16, %v112_v21  ;;  %v123_v24 = vadd.f32 %v176_v16, %v122_v22 }
  0xea   :  { %v136_v25 = vmul.f32 %v118_v19, %v118_v19  ;;  %v138_v26 = vmul.f32 %v128_v20, %v128_v20  ;;  %v132_v47 = vmul.f32 0.5, %v118_v19  ;;  %v134_v50 = vmul.f32 0.5, %v128_v20 }
  0xeb   :  { %v135_v27 = vmul.f32 %v113_v23, %v113_v23  ;;  %v137_v28 = vmul.f32 %v123_v24, %v123_v24  ;;  %v131_v54 = vmul.f32 0.5, %v113_v23  ;;  %v133_v57 = vmul.f32 0.5, %v123_v24 }
  0xec   :  { %v140_v29 = vmul.f32 %v136_v25, %v118_v19  ;;  %v142_v30 = vmul.f32 %v138_v26, %v128_v20 }
  0xed   :  { %v139_v31 = vmul.f32 %v135_v27, %v113_v23  ;;  %v141_v32 = vmul.f32 %v137_v28, %v123_v24 }
  0xee   :  { %v144_v33 = vmul.f32 0.044715, %v140_v29  ;;  %v146_v34 = vmul.f32 0.044715, %v142_v30 }
  0xef   :  { %v143_v35 = vmul.f32 0.044715, %v139_v31  ;;  %v145_v36 = vmul.f32 0.044715, %v141_v32 }
  0xf0   :  { %v148_v37 = vadd.f32 %v144_v33, %v118_v19  ;;  %v150_v38 = vadd.f32 %v146_v34, %v128_v20 }
  0xf1   :  { %v147_v39 = vadd.f32 %v143_v35, %v113_v23  ;;  %v149_v40 = vadd.f32 %v145_v36, %v123_v24 }
  0xf2   :  { %v152_v41 = vmul.f32 0.7978846, %v148_v37  ;;  %v154_v42 = vmul.f32 0.7978846, %v150_v38 }
  0xf3   :  { %v151_v43 = vmul.f32 0.7978846, %v147_v39  ;;  %v153_v44 = vmul.f32 0.7978846, %v149_v40 }
  0xf4   :  { %239 = vtanh.f32 %v152_v41 }
  0xf5   :  { %241 = vtanh.f32 %v154_v42 }
  0xf6   :  { %243 = vtanh.f32 %v151_v43 }
  0xf7   :  { %245 = vtanh.f32 %v153_v44 }
  0xfe   :  { %v240_v45 = vpop.eup %239 }
  0xff   :  { %v242_v46 = vpop.eup %241  ;;  %v160_v48 = vadd.f32 1.0, %v240_v45 }
 0x100   :  { %v244_v49 = vpop.eup %243  ;;  %v162_v51 = vadd.f32 1.0, %v242_v46 }
 0x101   :  { %v246_v52 = vpop.eup %245  ;;  %v164_v53 = vmul.f32 %v160_v48, %v132_v47  ;;  %v159_v55 = vadd.f32 1.0, %v244_v49 }
 0x102   :  { %v166_v56 = vmul.f32 %v162_v51, %v134_v50  ;;  %v161_v58 = vadd.f32 1.0, %v246_v52 }
 0x103   :  { %169 = vst.msk [vmem:[%s325_s3 + $0x8] sm:$0xff] %vm167_vm1, %v164_v53  ;;  %v163_v59 = vmul.f32 %v159_v55, %v131_v54 }
 0x104   :  { %171 = vst.msk [vmem:[%s325_s3 + $0x18] sm:$0xff] %vm167_vm1, %v166_v56  ;;  %v165_v60 = vmul.f32 %v161_v58, %v133_v57 }
 0x105   :  { %168 = vst.msk [vmem:[%s325_s3] sm:$0xff] %vm167_vm1, %v163_v59 }
 0x106   :  { %170 = vst.msk [vmem:[%s325_s3 + $0x10] sm:$0xff] %vm167_vm1, %v165_v60 }

// kernel: mixformer_forward_pallas.19
= control target key start
LH: loop header
LB: loop body
LE: loop exit
PB: predicated region body
PF: predicated region fallthrough
CT: control target
= control target key end

     0   :  { %v144_v0 = vmov 0.0|0.0   ;;  %vm145_vm0 = vmmov 0   ;;  %v146_v4 = vmov 0.0   ;;  %vm26_vm1 = vcmask 261120   ;;  %s188_s1 = inlined_call_operand.vmem [shape: f32[32,64], index: 1, kind: input, shape index: {}]   ;;  %s189_s0 = inlined_call_operand.vmem [shape: f32[2,32], index: 0, kind: input, shape index: {}]   ;;  %s190_s2 = inlined_call_operand.vmem [shape: f32[1,64], index: 2, kind: input, shape index: {}]   ;;  %s191_s3 = inlined_call_operand.vmem [shape: f32[2,64], index: 3, kind: output, shape index: {}]  }
   0x1   :  { %133 = vmatprep.subr.bf16.mxu0 %v144_v0  ;;  %v15_v1 = vld [vmem:[%s188_s1] sm:$0xff]  ;;  %v16_v2 = vld [vmem:[%s188_s1 + $0x8] sm:$0xff]  ;;  %v17_v3 = vld [vmem:[%s188_s1 + $0x10] sm:$0xff]  ;;  %130 = vmatprep.mubr.msk.f32.mxu0 %vm145_vm0, %v146_v4  ;;  %vm109_vm2 = vcmask 517120  }
   0x2   :  { %v134_v5 = vpack.c.bf16 %v16_v2, %v15_v1  ;;  %v18_v6 = vld [vmem:[%s188_s1 + $0x18] sm:$0xff]  ;;  %v14_v8 = vld [vmem:[%s189_s0] sm:$0x3] }
   0x3   :  { %v137_v7 = vpack.c.bf16 %v18_v6, %v17_v3  ;;  %v115_v9 = vld [vmem:[%s190_s2] ss:$0 sm:$0xff] }
   0x4   :  { %135 = vmatpush3.bf16.msra.mxu0 %v134_v5 }
   0x5   :  { %136 = vmatprep.subr.bf16.mxu0 %v144_v0 }
   0x8   :  { %138 = vmatpush3.bf16.msra.mxu0 %v137_v7 }
   0xb   :  { %131 = vmatmul.mubr.msk.f32.vlgmr.msra.gmra.mrb[0].mxu0 %vm26_vm1, %v14_v8 }
  0xde   :  { %v96_v10 = vpop.f32.mrb[0].mxu0 }
  0xdf   :  { %v97_v11 = vadd.f32 %v115_v9, %v96_v10  ;;  %v132_v12 = vpop.f32.mrb[1].mxu0 }
  0xe1   :  { %v101_v13 = vmul.f32 %v97_v11, %v97_v11  ;;  %v100_v19 = vmul.f32 0.5, %v97_v11 }
  0xe3   :  { %v102_v14 = vmul.f32 %v101_v13, %v97_v11 }
  0xe5   :  { %v103_v15 = vmul.f32 0.044715, %v102_v14 }
  0xe7   :  { %v104_v16 = vadd.f32 %v103_v15, %v97_v11 }
  0xe9   :  { %v105_v17 = vmul.f32 0.7978846, %v104_v16 }
  0xeb   :  { %142 = vtanh.f32 %v105_v17 }
  0xf5   :  { %v143_v18 = vpop.eup %142 }
  0xf6   :  { %v107_v20 = vadd.f32 1.0, %v143_v18 }
  0xf8   :  { %v108_v21 = vmul.f32 %v107_v20, %v100_v19 }
  0xfa   :  { %110 = vst.msk [vmem:[%s191_s3] sm:$0x3] %vm109_vm2, %v108_v21 }

// kernel: mixformer_forward_pallas.18
= control target key start
LH: loop header
LB: loop body
LE: loop exit
PB: predicated region body
PF: predicated region fallthrough
CT: control target
= control target key end

     0   :  { %vm446_vm0 = vcmask 257024   ;;  %s729_s0 = inlined_call_operand.vmem [shape: f32[2,6,6,32], index: 0, kind: input, shape index: {}]   ;;  %s730_s1 = inlined_call_operand.vmem [shape: f32[9,32], index: 1, kind: input, shape index: {}]   ;;  %s731_s2 = inlined_call_operand.vmem [shape: f32[1,32], index: 2, kind: input, shape index: {}]   ;;  %s732_s3 = inlined_call_operand.vmem [shape: f32[2,4,4,32], index: 3, kind: output, shape index: {}]  }
   0x1   :  { %v14_v0 = vld [vmem:[%s729_s0] sm:$0x3f]  ;;  %v15_v1 = vld [vmem:[%s729_s0 + $0x8] sm:$0x3f]  ;;  %v549_v13 = vld [vmem:[%s730_s1 + $0x6] ss:$0 sm:$0xff] }
   0x2   :  { %v514_v2 = vld [vmem:[%s730_s1] ss:$0 sm:$0xff]  ;;  %v519_v3 = vld [vmem:[%s730_s1 + $0x1] ss:$0 sm:$0xff]  ;;  %v524_v4 = vld [vmem:[%s730_s1 + $0x2] ss:$0 sm:$0xff] }
   0x3   :  { %v31_v5 = vmul.f32 %v514_v2, %v14_v0  ;;  %v52_v6 = vmul.f32 %v519_v3, %v14_v0  ;;  %v97_v7 = vmul.f32 %v524_v4, %v14_v0  ;;  %v532_v8 = vld [vmem:[%s730_s1 + $0x3] ss:$0 sm:$0xff]  ;;  %v537_v9 = vld [vmem:[%s730_s1 + $0x4] ss:$0 sm:$0xff]  ;;  %v542_v10 = vld [vmem:[%s730_s1 + $0x5] ss:$0 sm:$0xff]  ;;  %v32_v16 = vmul.f32 %v514_v2, %v15_v1 }
   0x4   :  { %v163_v11 = vmul.f32 %v537_v9, %v15_v1  ;;  %v208_v12 = vmul.f32 %v542_v10, %v15_v1  ;;  %v554_v14 = vld [vmem:[%s730_s1 + $0x7] ss:$0 sm:$0xff]  ;;  %v559_v15 = vld [vmem:[%s730_s1 + $0x8] ss:$0 sm:$0xff]  ;;  %v53_v17 = vmul.f32 %v519_v3, %v15_v1  ;;  %v16_v18 = vld [vmem:[%s729_s0 + $0x10] sm:$0x3f]  ;;  %v142_v21 = vmul.f32 %v532_v8, %v15_v1 }
   0x5   :  { %v68_v19 = vrot.slane %v52_v6, 1  ;;  %v113_v20 = vrot.slane %v97_v7, 2  ;;  %v274_v22 = vmul.f32 %v554_v14, %v16_v18  ;;  %v569_v23 = vmul.f32 %v559_v15, %v16_v18  ;;  %v17_v30 = vld [vmem:[%s729_s0 + $0x18] sm:$0x3f]  ;;  %v18_v60 = vld [vmem:[%s729_s0 + $0x20] sm:$0x3f] }
   0x6   :  { %v69_v24 = vrot.slane %v53_v17, 1  ;;  %v179_v26 = vrot.slane %v163_v11, 1  ;;  %v253_v27 = vmul.f32 %v549_v13, %v16_v18  ;;  %v98_v28 = vmul.f32 %v524_v4, %v15_v1 }
   0x7   :  { %v84_v25 = vadd.f32 %v68_v19, %v31_v5  ;;  %v224_v29 = vrot.slane %v208_v12, 2  ;;  %v164_v32 = vmul.f32 %v537_v9, %v16_v18  ;;  %v209_v33 = vmul.f32 %v542_v10, %v16_v18 }
   0x8   :  { %v85_v31 = vadd.f32 %v69_v24, %v32_v16  ;;  %v114_v35 = vrot.slane %v98_v28, 2  ;;  %v143_v36 = vmul.f32 %v532_v8, %v16_v18  ;;  %v275_v37 = vmul.f32 %v554_v14, %v17_v30 }
   0x9   :  { %v129_v34 = vadd.f32 %v113_v20, %v84_v25  ;;  %v290_v38 = vrot.slane %v274_v22, 1  ;;  %v335_v39 = vrot.slane %v569_v23, 2  ;;  %v180_v40 = vrot.slane %v164_v32, 1  ;;  %v19_v23 = vld [vmem:[%s729_s0 + $0x28] sm:$0x3f] }
   0xa   :  { %v320_v41 = vmul.f32 %v559_v15, %v17_v30  ;;  %v130_v43 = vadd.f32 %v114_v35, %v85_v31  ;;  %v33_v44 = vmul.f32 %v514_v2, %v16_v18  ;;  %v54_v45 = vmul.f32 %v519_v3, %v16_v18  ;;  %v605_v25 = vld [vmem:[%s731_s2] ss:$0 sm:$0xff] }
   0xb   :  { %v150_v42 = vadd.f32 %v142_v21, %v129_v34  ;;  %v225_v46 = vrot.slane %v209_v33, 2  ;;  %v254_v47 = vmul.f32 %v549_v13, %v17_v30  ;;  %v99_v48 = vmul.f32 %v524_v4, %v16_v18  ;;  %v20_v34 = vld [vmem:[%s729_s0 + $0x30] sm:$0x3f] }
   0xc   :  { %v165_v49 = vmul.f32 %v537_v9, %v17_v30  ;;  %v151_v51 = vadd.f32 %v143_v36, %v130_v43  ;;  %v291_v52 = vrot.slane %v275_v37, 1  ;;  %v70_v53 = vrot.slane %v54_v45, 1 }
   0xd   :  { %v195_v50 = vadd.f32 %v179_v26, %v150_v42  ;;  %v336_v54 = vrot.slane %v320_v41, 2  ;;  %v115_v55 = vrot.slane %v99_v48, 2  ;;  %v144_v56 = vmul.f32 %v532_v8, %v17_v30 }
   0xe   :  { %v210_v57 = vmul.f32 %v542_v10, %v17_v30  ;;  %v196_v59 = vadd.f32 %v180_v40, %v151_v51  ;;  %v86_v61 = vadd.f32 %v70_v53, %v33_v44  ;;  %v181_v62 = vrot.slane %v165_v49, 1  ;;  %v21_v53 = vld [vmem:[%s729_s0 + $0x38] sm:$0x3f] }
   0xf   :  { %v240_v58 = vadd.f32 %v224_v29, %v195_v50  ;;  %v276_v63 = vmul.f32 %v554_v14, %v18_v60  ;;  %v321_v0 = vmul.f32 %v559_v15, %v18_v60  ;;  %v34_v1 = vmul.f32 %v514_v2, %v17_v30 }
  0x10   :  { %v55_v5 = vmul.f32 %v519_v3, %v17_v30  ;;  %v241_v7 = vadd.f32 %v225_v46, %v196_v59  ;;  %v131_v11 = vadd.f32 %v115_v55, %v86_v61  ;;  %v100_v12 = vmul.f32 %v524_v4, %v17_v30 }
  0x11   :  { %v261_v6 = vadd.f32 %v253_v27, %v240_v58  ;;  %v226_v16 = vrot.slane %v210_v57, 2  ;;  %v255_v17 = vmul.f32 %v549_v13, %v18_v60  ;;  %v166_v19 = vmul.f32 %v537_v9, %v18_v60 }
  0x12   :  { %v71_v18 = vrot.slane %v55_v5, 1  ;;  %v262_v21 = vadd.f32 %v254_v47, %v241_v7  ;;  %v152_v22 = vadd.f32 %v144_v56, %v131_v11  ;;  %v116_v24 = vrot.slane %v100_v12, 2 }
  0x13   :  { %v306_v20 = vadd.f32 %v290_v38, %v261_v6  ;;  %v292_v26 = vrot.slane %v276_v63, 1  ;;  %v145_v28 = vmul.f32 %v532_v8, %v18_v60  ;;  %v211_v29 = vmul.f32 %v542_v10, %v18_v60 }
  0x14   :  { %v87_v27 = vadd.f32 %v71_v18, %v34_v1  ;;  %v307_v31 = vadd.f32 %v291_v52, %v262_v21  ;;  %v197_v32 = vadd.f32 %v181_v62, %v152_v22  ;;  %v337_v33 = vrot.slane %v321_v0, 2  ;;  %v22_v21 = vld [vmem:[%s729_s0 + $0x40] sm:$0x3f] }
  0x15   :  { %v351_v30 = vadd.f32 %v335_v39, %v306_v20  ;;  %v182_v36 = vrot.slane %v166_v19, 1  ;;  %v256_v37 = vmul.f32 %v549_v13, %v19_v23  ;;  %v277_v38 = vmul.f32 %v554_v14, %v19_v23 }
  0x16   :  { %v132_v35 = vadd.f32 %v116_v24, %v87_v27  ;;  %v352_v41 = vadd.f32 %v336_v54, %v307_v31  ;;  %v242_v42 = vadd.f32 %v226_v16, %v197_v32  ;;  %v227_v43 = vrot.slane %v211_v29, 2 }
  0x17   :  { %v366_v40 = vadd.f32 %v605_v25, %v351_v30  ;;  %v35_v39 = vmul.f32 %v514_v2, %v20_v34  ;;  %v56_v45 = vmul.f32 %v519_v3, %v20_v34  ;;  %v101_v46 = vmul.f32 %v524_v4, %v20_v34 }
  0x18   :  { %v153_v44 = vadd.f32 %v145_v28, %v132_v35  ;;  %v367_v48 = vadd.f32 %v605_v25, %v352_v41  ;;  %v263_v49 = vadd.f32 %v255_v17, %v242_v42  ;;  %v322_v50 = vmul.f32 %v559_v15, %v19_v23 }
  0x19   :  { %v382_v47 = vmul.f32 %v366_v40, %v366_v40  ;;  %v293_v52 = vrot.slane %v277_v38, 1  ;;  %v72_v54 = vrot.slane %v56_v45, 1  ;;  %v117_v55 = vrot.slane %v101_v46, 2 }
  0x1a   :  { %v198_v51 = vadd.f32 %v182_v36, %v153_v44  ;;  %v383_v57 = vmul.f32 %v367_v48, %v367_v48  ;;  %v308_v58 = vadd.f32 %v292_v26, %v263_v49  ;;  %v146_v59 = vmul.f32 %v532_v8, %v21_v53 }
  0x1b   :  { %v390_v56 = vmul.f32 %v382_v47, %v366_v40  ;;  %v88_v61 = vadd.f32 %v72_v54, %v35_v39  ;;  %v167_v62 = vmul.f32 %v537_v9, %v21_v53  ;;  %v212_v63 = vmul.f32 %v542_v10, %v21_v53 }
  0x1c   :  { %v243_v60 = vadd.f32 %v227_v43, %v198_v51  ;;  %v391_v1 = vmul.f32 %v383_v57, %v367_v48  ;;  %v353_v5 = vadd.f32 %v337_v33, %v308_v58  ;;  %v338_v6 = vrot.slane %v322_v50, 2  ;;  %v23_v50 = vld [vmem:[%s729_s0 + $0x48] sm:$0x3f] }
  0x1d   :  { %v398_v0 = vmul.f32 0.044715, %v390_v56  ;;  %v626_v7 = vmul.f32 0.5, %v366_v40  ;;  %v133_v12 = vadd.f32 %v117_v55, %v88_v61  ;;  %v183_v16 = vrot.slane %v167_v62, 1 }
  0x1e   :  { %v264_v11 = vadd.f32 %v256_v37, %v243_v60  ;;  %v628_v18 = vmul.f32 0.5, %v367_v48  ;;  %v399_v19 = vmul.f32 0.044715, %v391_v1  ;;  %v368_v20 = vadd.f32 %v605_v25, %v353_v5 }
  0x1f   :  { %v406_v17 = vadd.f32 %v398_v0, %v366_v40  ;;  %v154_v23 = vadd.f32 %v146_v59, %v133_v12  ;;  %v228_v24 = vrot.slane %v212_v63, 2  ;;  %v278_v26 = vmul.f32 %v554_v14, %v22_v21 }
  0x20   :  { %v309_v22 = vadd.f32 %v293_v52, %v264_v11  ;;  %v407_v28 = vadd.f32 %v399_v19, %v367_v48  ;;  %v384_v29 = vmul.f32 %v368_v20, %v368_v20  ;;  %v257_v30 = vmul.f32 %v549_v13, %v22_v21 }
  0x21   :  { %v414_v27 = vmul.f32 0.7978846, %v406_v17  ;;  %v199_v32 = vadd.f32 %v183_v16, %v154_v23  ;;  %v323_v33 = vmul.f32 %v559_v15, %v22_v21  ;;  %v36_v34 = vmul.f32 %v514_v2, %v21_v53 }
  0x22   :  { %v354_v31 = vadd.f32 %v338_v6, %v309_v22  ;;  %v415_v35 = vmul.f32 0.7978846, %v407_v28  ;;  %v392_v36 = vmul.f32 %v384_v29, %v368_v20  ;;  %v57_v37 = vmul.f32 %v519_v3, %v21_v53 }
  0x23   :  { %469 = vtanh.f32 %v414_v27  ;;  %v244_v40 = vadd.f32 %v228_v24, %v199_v32  ;;  %v294_v41 = vrot.slane %v278_v26, 1  ;;  %v102_v42 = vmul.f32 %v524_v4, %v21_v53 }
  0x24   :  { %v640_v38 = vadd.f32 %v605_v25, %v354_v31  ;;  %471 = vtanh.f32 %v415_v35  ;;  %v400_v43 = vmul.f32 0.044715, %v392_v36  ;;  %v73_v44 = vrot.slane %v57_v37, 1 }
  0x25   :  { %v168_v39 = vmul.f32 %v537_v9, %v22_v21  ;;  %v265_v46 = vadd.f32 %v257_v30, %v244_v40  ;;  %v339_v47 = vrot.slane %v323_v33, 2  ;;  %v118_v48 = vrot.slane %v102_v42, 2 }
  0x26   :  { %v385_v45 = vmul.f32 %v640_v38, %v640_v38  ;;  %v408_v49 = vadd.f32 %v400_v43, %v368_v20  ;;  %v89_v51 = vadd.f32 %v73_v44, %v36_v34  ;;  %v147_v52 = vmul.f32 %v532_v8, %v22_v21 }
  0x27   :  { %v213_v53 = vmul.f32 %v542_v10, %v22_v21  ;;  %v651_v54 = vmul.f32 0.5, %v368_v20  ;;  %v310_v56 = vadd.f32 %v294_v41, %v265_v46  ;;  %v279_v57 = vmul.f32 %v554_v14, %v23_v50  ;;  %v24_v41 = vld [vmem:[%s729_s0 + $0x50] sm:$0x3f] }
  0x28   :  { %v393_v55 = vmul.f32 %v385_v45, %v640_v38  ;;  %v416_v58 = vmul.f32 0.7978846, %v408_v49  ;;  %v134_v59 = vadd.f32 %v118_v48, %v89_v51  ;;  %v184_v60 = vrot.slane %v168_v39, 1 }
  0x29   :  { %v258_v61 = vmul.f32 %v549_v13, %v23_v50  ;;  %v355_v63 = vadd.f32 %v339_v47, %v310_v56  ;;  %v229_v0 = vrot.slane %v213_v53, 2  ;;  %v324_v1 = vmul.f32 %v559_v15, %v23_v50 }
  0x2a   :  { %v401_v62 = vmul.f32 0.044715, %v393_v55  ;;  %473 = vtanh.f32 %v416_v58  ;;  %v155_v5 = vadd.f32 %v147_v52, %v134_v59  ;;  %v37_v6 = vmul.f32 %v514_v2, %v22_v21 }
  0x2b   :  { %v58_v11 = vmul.f32 %v519_v3, %v22_v21  ;;  %v661_v16 = vadd.f32 %v605_v25, %v355_v63  ;;  %v295_v17 = vrot.slane %v279_v57, 1  ;;  %v103_v19 = vmul.f32 %v524_v4, %v22_v21 }
  0x2c   :  { %v409_v12 = vadd.f32 %v401_v62, %v640_v38  ;;  %v200_v22 = vadd.f32 %v184_v60, %v155_v5  ;;  %v169_v24 = vmul.f32 %v537_v9, %v23_v50  ;;  %v214_v26 = vmul.f32 %v542_v10, %v23_v50 }
  0x2d   :  { %v470_v20 = vpop.eup %469  ;;  %v74_v23 = vrot.slane %v58_v11, 1  ;;  %v386_v29 = vmul.f32 %v661_v16, %v661_v16  ;;  %v340_v30 = vrot.slane %v324_v1, 2  ;;  %v119_v34 = vrot.slane %v103_v19, 2  ;;  %v25_v1 = vld [vmem:[%s729_s0 + $0x58] sm:$0x3f] }
  0x2e   :  { %v430_v27 = vadd.f32 1.0, %v470_v20  ;;  %v417_v28 = vmul.f32 0.7978846, %v409_v12  ;;  %v472_v31 = vpop.eup %471  ;;  %v245_v32 = vadd.f32 %v229_v0, %v200_v22  ;;  %v148_v35 = vmul.f32 %v532_v8, %v23_v50 }
  0x2f   :  { %v90_v33 = vadd.f32 %v74_v23, %v37_v6  ;;  %v431_v36 = vadd.f32 1.0, %v472_v31  ;;  %v394_v37 = vmul.f32 %v386_v29, %v661_v16  ;;  %v185_v43 = vrot.slane %v169_v24, 1 }
  0x30   :  { %v438_v21 = vmul.f32 %v430_v27, %v626_v7  ;;  %475 = vtanh.f32 %v417_v28  ;;  %v266_v40 = vadd.f32 %v258_v61, %v245_v32  ;;  %v230_v44 = vrot.slane %v214_v26, 2 }
  0x31   :  { %v135_v42 = vadd.f32 %v119_v34, %v90_v33  ;;  %v439_v39 = vmul.f32 %v431_v36, %v628_v18  ;;  %v402_v7 = vmul.f32 0.044715, %v394_v37  ;;  %v259_v45 = vmul.f32 %v549_v13, %v24_v41 }
  0x32   :  { %447 = vst.msk [vmem:[%s732_s3] sm:$0xf] %vm446_vm0, %v438_v21  ;;  %v280_v46 = vmul.f32 %v554_v14, %v24_v41  ;;  %v311_v47 = vadd.f32 %v295_v17, %v266_v40  ;;  %v38_v49 = vmul.f32 %v514_v2, %v23_v50  ;;  %v59_v51 = vmul.f32 %v519_v3, %v23_v50 }
  0x33   :  { %v156_v48 = vadd.f32 %v148_v35, %v135_v42  ;;  %448 = vst.msk [vmem:[%s732_s3 + $0x4] sm:$0xf] %vm446_vm0, %v439_v39  ;;  %v410_v52 = vadd.f32 %v402_v7, %v661_v16  ;;  %v325_v18 = vmul.f32 %v559_v15, %v24_v41  ;;  %v104_v55 = vmul.f32 %v524_v4, %v23_v50 }
  0x34   :  { %v296_v53 = vrot.slane %v280_v46, 1  ;;  %v474_v56 = vpop.eup %473  ;;  %v356_v57 = vadd.f32 %v340_v30, %v311_v47  ;;  %v75_v59 = vrot.slane %v59_v51, 1  ;;  %v149_v2 = vmul.f32 %v532_v8, %v24_v41 }
  0x35   :  { %v201_v58 = vadd.f32 %v185_v43, %v156_v48  ;;  %v432_v60 = vadd.f32 1.0, %v474_v56  ;;  %v418_v3 = vmul.f32 0.7978846, %v410_v52  ;;  %v120_v61 = vrot.slane %v104_v55, 2 }
  0x36   :  { %v170_v62 = vmul.f32 %v537_v9, %v24_v41  ;;  %v371_v63 = vadd.f32 %v605_v25, %v356_v57  ;;  %v91_v5 = vadd.f32 %v75_v59, %v38_v49  ;;  %v215_v4 = vmul.f32 %v542_v10, %v24_v41 }
  0x37   :  { %v246_v0 = vadd.f32 %v230_v44, %v201_v58  ;;  %v440_v50 = vmul.f32 %v432_v60, %v651_v54  ;;  %v377_v6 = vmul.f32 0.5, %v640_v38  ;;  %477 = vtanh.f32 %v418_v3 }
  0x38   :  { %v341_v8 = vrot.slane %v325_v18, 2  ;;  %v387_v11 = vmul.f32 %v371_v63, %v371_v63  ;;  %v136_v17 = vadd.f32 %v120_v61, %v91_v5  ;;  %v186_v9 = vrot.slane %v170_v62, 1 }
  0x39   :  { %v267_v12 = vadd.f32 %v259_v45, %v246_v0  ;;  %449 = vst.msk [vmem:[%s732_s3 + $0x8] sm:$0xf] %vm446_vm0, %v440_v50  ;;  %v231_v20 = vrot.slane %v215_v4, 2  ;;  %v281_v22 = vmul.f32 %v554_v14, %v25_v1  ;;  %v260_v38 = vmul.f32 %v549_v13, %v25_v1 }
  0x3a   :  { %v476_v19 = vpop.eup %475  ;;  %v395_v23 = vmul.f32 %v387_v11, %v371_v63  ;;  %v157_v24 = vadd.f32 %v149_v2, %v136_v17  ;;  %v326_v26 = vmul.f32 %v559_v15, %v25_v1  ;;  %v378_v34 = vmul.f32 0.5, %v661_v16 }
  0x3b   :  { %v433_v10 = vadd.f32 1.0, %v476_v19  ;;  %v312_v54 = vadd.f32 %v296_v53, %v267_v12  ;;  %v297_v33 = vrot.slane %v281_v22, 1  ;;  %v379_v47 = vmul.f32 0.5, %v371_v63 }
  0x3c   :  { %v403_v28 = vmul.f32 0.044715, %v395_v23  ;;  %v202_v30 = vadd.f32 %v186_v9, %v157_v24  ;;  %v342_v15 = vrot.slane %v326_v26, 2 }
  0x3d   :  { %v441_v27 = vmul.f32 %v433_v10, %v377_v6  ;;  %v357_v29 = vadd.f32 %v341_v8, %v312_v54 }
  0x3e   :  { %v411_v31 = vadd.f32 %v403_v28, %v371_v63  ;;  %v247_v32 = vadd.f32 %v231_v20, %v202_v30 }
  0x3f   :  { %450 = vst.msk [vmem:[%s732_s3 + $0xc] sm:$0xf] %vm446_vm0, %v441_v27  ;;  %v372_v14 = vadd.f32 %v605_v25, %v357_v29 }
  0x40   :  { %v419_v35 = vmul.f32 0.7978846, %v411_v31  ;;  %v268_v21 = vadd.f32 %v260_v38, %v247_v32 }
  0x41   :  { %v388_v13 = vmul.f32 %v372_v14, %v372_v14  ;;  %v478_v36 = vpop.eup %477  ;;  %v380_v55 = vmul.f32 0.5, %v372_v14 }
  0x42   :  { %v434_v37 = vadd.f32 1.0, %v478_v36  ;;  %479 = vtanh.f32 %v419_v35  ;;  %v313_v41 = vadd.f32 %v297_v33, %v268_v21 }
  0x43   :  { %v396_v40 = vmul.f32 %v388_v13, %v372_v14 }
  0x44   :  { %v442_v42 = vmul.f32 %v434_v37, %v378_v34  ;;  %v358_v44 = vadd.f32 %v342_v15, %v313_v41 }
  0x45   :  { %v404_v43 = vmul.f32 0.044715, %v396_v40 }
  0x46   :  { %451 = vst.msk [vmem:[%s732_s3 + $0x10] sm:$0xf] %vm446_vm0, %v442_v42  ;;  %v373_v16 = vadd.f32 %v605_v25, %v358_v44 }
  0x47   :  { %v412_v39 = vadd.f32 %v404_v43, %v372_v14 }
  0x48   :  { %v389_v45 = vmul.f32 %v373_v16, %v373_v16  ;;  %v381_v58 = vmul.f32 0.5, %v373_v16 }
  0x49   :  { %v420_v7 = vmul.f32 0.7978846, %v412_v39 }
  0x4a   :  { %v397_v46 = vmul.f32 %v389_v45, %v373_v16 }
  0x4b   :  { %481 = vtanh.f32 %v420_v7 }
  0x4c   :  { %v480_v48 = vpop.eup %479  ;;  %v405_v49 = vmul.f32 0.044715, %v397_v46 }
  0x4d   :  { %v435_v51 = vadd.f32 1.0, %v480_v48 }
  0x4e   :  { %v413_v52 = vadd.f32 %v405_v49, %v373_v16 }
  0x4f   :  { %v443_v53 = vmul.f32 %v435_v51, %v379_v47 }
  0x50   :  { %v421_v18 = vmul.f32 0.7978846, %v413_v52 }
  0x51   :  { %452 = vst.msk [vmem:[%s732_s3 + $0x14] sm:$0xf] %vm446_vm0, %v443_v53 }
  0x52   :  { %483 = vtanh.f32 %v421_v18 }
  0x55   :  { %v482_v56 = vpop.eup %481 }
  0x56   :  { %v436_v25 = vadd.f32 1.0, %v482_v56 }
  0x58   :  { %v444_v57 = vmul.f32 %v436_v25, %v380_v55 }
  0x5a   :  { %453 = vst.msk [vmem:[%s732_s3 + $0x18] sm:$0xf] %vm446_vm0, %v444_v57 }
  0x5c   :  { %v484_v59 = vpop.eup %483 }
  0x5d   :  { %v437_v2 = vadd.f32 1.0, %v484_v59 }
  0x5f   :  { %v445_v60 = vmul.f32 %v437_v2, %v381_v58 }
  0x61   :  { %454 = vst.msk [vmem:[%s732_s3 + $0x1c] sm:$0xf] %vm446_vm0, %v445_v60 }

// kernel: mixformer_forward_pallas.20
= control target key start
LH: loop header
LB: loop body
LE: loop exit
PB: predicated region body
PF: predicated region fallthrough
CT: control target
= control target key end

     0   :  { %v165_v0 = vmov 0.0|0.0   ;;  %vm166_vm0 = vmmov 0   ;;  %v167_v4 = vmov 0.0   ;;  %vm30_vm1 = vcmask 523264   ;;  %s221_s1 = inlined_call_operand.vmem [shape: f32[64,32], index: 1, kind: input, shape index: {}]   ;;  %s222_s0 = inlined_call_operand.vmem [shape: f32[2,64], index: 0, kind: input, shape index: {}]   ;;  %s223_s2 = inlined_call_operand.vmem [shape: f32[1,32], index: 2, kind: input, shape index: {}]   ;;  %s224_s3 = inlined_call_operand.vmem [shape: f32[2,32], index: 3, kind: output, shape index: {}]  }
   0x1   :  { %146 = vmatprep.subr.bf16.mxu0 %v165_v0  ;;  %v15_v1 = vld [vmem:[%s221_s1] sm:$0xff]  ;;  %v16_v2 = vld [vmem:[%s221_s1 + $0x8] sm:$0xff]  ;;  %v17_v3 = vld [vmem:[%s221_s1 + $0x10] sm:$0xff]  ;;  %143 = vmatprep.mubr.msk.f32.mxu0 %vm166_vm0, %v167_v4  ;;  %vm110_vm2 = vcmask 254976  }
   0x2   :  { %v147_v5 = vpack.c.bf16 %v16_v2, %v15_v1  ;;  %v18_v6 = vld [vmem:[%s221_s1 + $0x18] sm:$0xff]  ;;  %v19_v8 = vld [vmem:[%s221_s1 + $0x20] sm:$0xff]  ;;  %v20_v9 = vld [vmem:[%s221_s1 + $0x28] sm:$0xff] }
   0x3   :  { %v150_v7 = vpack.c.bf16 %v18_v6, %v17_v3  ;;  %v153_v10 = vpack.c.bf16 %v20_v9, %v19_v8  ;;  %v21_v11 = vld [vmem:[%s221_s1 + $0x30] sm:$0xff]  ;;  %v22_v12 = vld [vmem:[%s221_s1 + $0x38] sm:$0xff]  ;;  %v14_v14 = vld [vmem:[%s222_s0] sm:$0x3] }
   0x4   :  { %148 = vmatpush3.bf16.msra.mxu0 %v147_v5  ;;  %v156_v13 = vpack.c.bf16 %v22_v12, %v21_v11  ;;  %v116_v15 = vld [vmem:[%s223_s2] ss:$0 sm:$0xff] }
   0x5   :  { %149 = vmatprep.subr.bf16.mxu0 %v165_v0 }
   0x8   :  { %151 = vmatpush3.bf16.msra.mxu0 %v150_v7 }
   0x9   :  { %152 = vmatprep.subr.bf16.mxu0 %v165_v0 }
   0xc   :  { %154 = vmatpush3.bf16.msra.mxu0 %v153_v10 }
   0xd   :  { %155 = vmatprep.subr.bf16.mxu0 %v165_v0 }
  0x10   :  { %157 = vmatpush3.bf16.msra.mxu0 %v156_v13 }
  0x13   :  { %144 = vmatmul.mubr.msk.f32.vlgmr.msra.gmra.mrb[0].mxu0 %vm30_vm1, %v14_v14 }
  0xe6   :  { %v100_v16 = vpop.f32.mrb[0].mxu0 }
  0xe7   :  { %v101_v17 = vadd.f32 %v116_v15, %v100_v16  ;;  %v145_v18 = vpop.f32.mrb[1].mxu0 }
  0xe9   :  { %v104_v19 = vsub.f32 0.0, %v101_v17 }
  0xeb   :  { %v105_v20 = vmul.f32 1.442695, %v104_v19 }
  0xed   :  { %161 = vpow2.f32 %v105_v20 }
  0xf7   :  { %v162_v21 = vpop.eup %161 }
  0xf8   :  { %v107_v22 = vadd.f32 1.0, %v162_v21 }
  0xfa   :  { %163 = vrcp.f32 %v107_v22 }
 0x104   :  { %v164_v23 = vpop.eup %163 }
 0x105   :  { %111 = vst.msk [vmem:[%s224_s3] sm:$0x3] %vm110_vm2, %v164_v23 }

// kernel: mixformer_forward_pallas.21
= control target key start
LH: loop header
LB: loop body
LE: loop exit
PB: predicated region body
PF: predicated region fallthrough
CT: control target
= control target key end

     0   :  { %vm29_vm0 = vcmask 261120   ;;  %vm127_vm1 = vcmask 785408   ;;  %s238_s1 = inlined_call_operand.vmem [shape: f32[32,96], index: 1, kind: input, shape index: {}]   ;;  %s239_s0 = inlined_call_operand.vmem [shape: f32[32,32], index: 0, kind: input, shape index: {}]   ;;  %s240_s2 = inlined_call_operand.vmem [shape: f32[1,96], index: 2, kind: input, shape index: {}]   ;;  %s241_s3 = inlined_call_operand.vmem [shape: f32[32,96], index: 3, kind: output, shape index: {}]  }
   0x1   :  { %v18_v0 = vld [vmem:[%s238_s1] sm:$0xff]  ;;  %v19_v1 = vld [vmem:[%s238_s1 + $0x8] sm:$0xff]  ;;  %v20_v2 = vld [vmem:[%s238_s1 + $0x10] sm:$0xff] }
   0x2   :  { %v163_v3 = vpack.c.bf16 %v19_v1, %v18_v0  ;;  %v21_v4 = vld [vmem:[%s238_s1 + $0x18] sm:$0xff]  ;;  %v14_v5 = vld [vmem:[%s239_s0] sm:$0xff]  ;;  %v16_v6 = vld [vmem:[%s239_s0 + $0x10] sm:$0xff] }
   0x3   :  { %v167_v7 = vpack.c.bf16 %v21_v4, %v20_v2  ;;  %157 = vmatprep.mubr.msk.f32.mxu0 %vm29_vm0, %v14_v5  ;;  %160 = vmatprep.mubr.msk.f32.mxu1 %vm29_vm0, %v16_v6  ;;  %v15_v8 = vld [vmem:[%s239_s0 + $0x8] sm:$0xff]  ;;  %v17_v9 = vld [vmem:[%s239_s0 + $0x18] sm:$0xff]  ;;  %v136_v10 = vld [vmem:[%s240_s2] ss:$0 sm:$0xff] }
   0x4   :  { %164 = vmatprep.subr.bf16.mxu0 %v163_v3  ;;  %171 = vmatprep.subr.bf16.mxu1 %v163_v3 }
   0x5   :  { %166 = vmatpush3.bf16.msra.mxu0 %v163_v3  ;;  %173 = vmatpush3.bf16.msra.mxu1 %v163_v3 }
   0x6   :  { %168 = vmatprep.subr.bf16.mxu0 %v167_v7  ;;  %172 = vmatprep.subr.bf16.mxu1 %v167_v7 }
   0x9   :  { %170 = vmatpush3.bf16.msra.mxu0 %v167_v7  ;;  %174 = vmatpush3.bf16.msra.mxu1 %v167_v7 }
   0xc   :  { %158 = vmatmul.mubr.msk.f32.vlgmr.msra.gmra.mrb[0].mxu0 %vm29_vm0, %v15_v8  ;;  %161 = vmatmul.mubr.msk.f32.vlgmr.msra.gmra.mrb[0].mxu1 %vm29_vm0, %v17_v9 }
  0xdf   :  { %v159_v11 = vpop.f32.mrb[0].mxu0  ;;  %v162_v12 = vpop.f32.mrb[0].mxu1 }
  0xe0   :  { %v114_v13 = vadd.f32 %v159_v11, %v136_v10  ;;  %v124_v14 = vadd.f32 %v162_v12, %v136_v10  ;;  %v108_v15 = vpop.f32.mrb[1].mxu0  ;;  %v118_v16 = vpop.f32.mrb[1].mxu1 }
  0xe1   :  { %v109_v17 = vadd.f32 %v136_v10, %v108_v15  ;;  %v119_v18 = vadd.f32 %v136_v10, %v118_v16 }
  0xe2   :  { %129 = vst.msk [vmem:[%s241_s3 + $0x8] sm:$0xff] %vm127_vm1, %v114_v13  ;;  %131 = vst.msk [vmem:[%s241_s3 + $0x18] sm:$0xff] %vm127_vm1, %v124_v14 }
  0xe3   :  { %128 = vst.msk [vmem:[%s241_s3] sm:$0xff] %vm127_vm1, %v109_v17  ;;  %130 = vst.msk [vmem:[%s241_s3 + $0x10] sm:$0xff] %vm127_vm1, %v119_v18 }

// kernel: mixformer_forward_pallas.22
= control target key start
LH: loop header
LB: loop body
LE: loop exit
PB: predicated region body
PF: predicated region fallthrough
CT: control target
= control target key end

     0   :  { %vm29_vm0 = vcmask 261120   ;;  %s241_s1 = inlined_call_operand.vmem [shape: f32[32,32], index: 1, kind: input, shape index: {}]   ;;  %s242_s0 = inlined_call_operand.vmem [shape: f32[32,32], index: 0, kind: input, shape index: {}]   ;;  %s243_s2 = inlined_call_operand.vmem [shape: f32[1,32], index: 2, kind: input, shape index: {}]   ;;  %s244_s3 = inlined_call_operand.vmem [shape: f32[32,32], index: 3, kind: output, shape index: {}]  }
   0x1   :  { %v18_v0 = vld [vmem:[%s241_s1] sm:$0xff]  ;;  %v19_v1 = vld [vmem:[%s241_s1 + $0x8] sm:$0xff]  ;;  %v20_v2 = vld [vmem:[%s241_s1 + $0x10] sm:$0xff] }
   0x2   :  { %v162_v3 = vpack.c.bf16 %v19_v1, %v18_v0  ;;  %v21_v4 = vld [vmem:[%s241_s1 + $0x18] sm:$0xff]  ;;  %v14_v5 = vld [vmem:[%s242_s0] sm:$0xff]  ;;  %v16_v6 = vld [vmem:[%s242_s0 + $0x10] sm:$0xff] }
   0x3   :  { %v166_v7 = vpack.c.bf16 %v21_v4, %v20_v2  ;;  %156 = vmatprep.mubr.msk.f32.mxu0 %vm29_vm0, %v14_v5  ;;  %159 = vmatprep.mubr.msk.f32.mxu1 %vm29_vm0, %v16_v6  ;;  %v15_v8 = vld [vmem:[%s242_s0 + $0x8] sm:$0xff]  ;;  %v17_v9 = vld [vmem:[%s242_s0 + $0x18] sm:$0xff]  ;;  %v135_v10 = vld [vmem:[%s243_s2] ss:$0 sm:$0xff] }
   0x4   :  { %163 = vmatprep.subr.bf16.mxu0 %v162_v3  ;;  %170 = vmatprep.subr.bf16.mxu1 %v162_v3 }
   0x5   :  { %165 = vmatpush3.bf16.msra.mxu0 %v162_v3  ;;  %172 = vmatpush3.bf16.msra.mxu1 %v162_v3 }
   0x6   :  { %167 = vmatprep.subr.bf16.mxu0 %v166_v7  ;;  %171 = vmatprep.subr.bf16.mxu1 %v166_v7 }
   0x9   :  { %169 = vmatpush3.bf16.msra.mxu0 %v166_v7  ;;  %173 = vmatpush3.bf16.msra.mxu1 %v166_v7 }
   0xc   :  { %157 = vmatmul.mubr.msk.f32.vlgmr.msra.gmra.mrb[0].mxu0 %vm29_vm0, %v15_v8  ;;  %160 = vmatmul.mubr.msk.f32.vlgmr.msra.gmra.mrb[0].mxu1 %vm29_vm0, %v17_v9 }
  0xdf   :  { %v158_v11 = vpop.f32.mrb[0].mxu0  ;;  %v161_v12 = vpop.f32.mrb[0].mxu1 }
  0xe0   :  { %v114_v13 = vadd.f32 %v158_v11, %v135_v10  ;;  %v124_v14 = vadd.f32 %v161_v12, %v135_v10  ;;  %v108_v15 = vpop.f32.mrb[1].mxu0  ;;  %v118_v16 = vpop.f32.mrb[1].mxu1 }
  0xe1   :  { %v109_v17 = vadd.f32 %v135_v10, %v108_v15  ;;  %v119_v18 = vadd.f32 %v135_v10, %v118_v16 }
  0xe2   :  { %128 = vst.msk [vmem:[%s244_s3 + $0x8] sm:$0xff] %vm29_vm0, %v114_v13  ;;  %130 = vst.msk [vmem:[%s244_s3 + $0x18] sm:$0xff] %vm29_vm0, %v124_v14 }
  0xe3   :  { %127 = vst.msk [vmem:[%s244_s3] sm:$0xff] %vm29_vm0, %v109_v17  ;;  %129 = vst.msk [vmem:[%s244_s3 + $0x10] sm:$0xff] %vm29_vm0, %v119_v18 }

// kernel: mixformer_forward_pallas.25
= control target key start
LH: loop header
LB: loop body
LE: loop exit
PB: predicated region body
PF: predicated region fallthrough
CT: control target
= control target key end

     0   :  { %vm64_vm0 = vcmask 64512   ;;  %s1066_s0 = inlined_call_operand.vmem [shape: f32[2,64,8], index: 0, kind: input, shape index: {}]   ;;  %s1067_s1 = inlined_call_operand.vmem [shape: f32[2,64,8], index: 1, kind: input, shape index: {}]   ;;  %s1068_s2 = inlined_call_operand.vmem [shape: f32[2,64,8], index: 2, kind: input, shape index: {}]   ;;  %s1069_s3 = inlined_call_operand.vmem [shape: f32[2,64,8], index: 3, kind: output, shape index: {}]  }
   0x1   :  { %v638_v0 = vld [vmem:[%s1067_s1 + $0x10] sm:$0xff]  ;;  %v646_v2 = vld [vmem:[%s1067_s1] sm:$0xff]  ;;  %v655_v5 = vld [vmem:[%s1067_s1 + $0x18] sm:$0xff] }
   0x2   :  { %v50_v1 = vld [vmem:[%s1066_s0 + $0x10] sm:$0xff]  ;;  %v48_v4 = vld [vmem:[%s1066_s0] sm:$0xff]  ;;  %v51_v6 = vld [vmem:[%s1066_s0 + $0x18] sm:$0xff] }
   0x3   :  { %v58_v3 = vmul.f32 %v50_v1, %v638_v0  ;;  %v56_v7 = vmul.f32 %v48_v4, %v646_v2  ;;  %v59_v8 = vmul.f32 %v51_v6, %v655_v5  ;;  %v15_v9 = vld [vmem:[%s1067_s1 + $0x8] sm:$0xff]  ;;  %v680_v15 = vld [vmem:[%s1067_s1 + $0x20] sm:$0xff]  ;;  %v693_v22 = vld [vmem:[%s1067_s1 + $0x38] sm:$0xff] }
   0x4   :  { %v49_v10 = vld [vmem:[%s1066_s0 + $0x8] sm:$0xff]  ;;  %v52_v16 = vld [vmem:[%s1066_s0 + $0x20] sm:$0xff]  ;;  %v55_v23 = vld [vmem:[%s1066_s0 + $0x38] sm:$0xff] }
   0x5   :  { %v671_v11 = vld [vmem:[%s1067_s1 + $0x28] sm:$0xff]  ;;  %v71_v12 = vsel %vm64_vm0, %v58_v3, 0.0  ;;  %v57_v13 = vmul.f32 %v49_v10, %v15_v9  ;;  %v65_v17 = vsel %vm64_vm0, %v56_v7, 0.0  ;;  %v74_v18 = vsel %vm64_vm0, %v59_v8, 0.0  ;;  %v701_v24 = vld [vmem:[%s1067_s1 + $0x30] sm:$0xff]  ;;  %v718_v31 = vld [vmem:[%s1067_s1 + $0x40] sm:$0xff] }
   0x6   :  { %v53_v14 = vld [vmem:[%s1066_s0 + $0x28] sm:$0xff]  ;;  %72 = vadd.xlane.f32.xlu1 %v71_v12  ;;  %66 = vadd.xlane.f32.xlu0 %v65_v17  ;;  %v60_v21 = vmul.f32 %v52_v16, %v680_v15  ;;  %v54_v25 = vld [vmem:[%s1066_s0 + $0x30] sm:$0xff]  ;;  %v63_v27 = vmul.f32 %v55_v23, %v693_v22  ;;  %v97_v35 = vmul.f32 %v718_v31, %v48_v4  ;;  %v727_v36 = vld [vmem:[%s1067_s1 + $0x58] sm:$0xff] }
   0x7   :  { %v61_v19 = vmul.f32 %v53_v14, %v671_v11  ;;  %v68_v20 = vsel %vm64_vm0, %v57_v13, 0.0  ;;  %v62_v29 = vmul.f32 %v54_v25, %v701_v24  ;;  %v713_v30 = vld [vmem:[%s1067_s1 + $0x48] sm:$0xff]  ;;  %v732_v37 = vld [vmem:[%s1067_s1 + $0x50] sm:$0xff]  ;;  %v100_v39 = vmul.f32 %v727_v36, %v51_v6  ;;  %v746_v43 = vld [vmem:[%s1067_s1 + $0x60] sm:$0xff] }
   0x8   :  { %v77_v28 = vsel %vm64_vm0, %v60_v21, 0.0  ;;  %v86_v32 = vsel %vm64_vm0, %v63_v27, 0.0  ;;  %v98_v33 = vmul.f32 %v713_v30, %v49_v10  ;;  %v105_v40 = vsel %vm64_vm0, %v97_v35, 0.0  ;;  %v741_v42 = vld [vmem:[%s1067_s1 + $0x68] sm:$0xff]  ;;  %v494_v48 = vld [vmem:[%s1067_s1 + $0x78] sm:$0xff]  ;;  %v493_v49 = vld [vmem:[%s1067_s1 + $0x70] sm:$0xff] }
   0x9   :  { %v80_v26 = vsel %vm64_vm0, %v61_v19, 0.0  ;;  %v83_v34 = vsel %vm64_vm0, %v62_v29, 0.0  ;;  %v99_v41 = vmul.f32 %v732_v37, %v50_v1  ;;  %v114_v44 = vsel %vm64_vm0, %v100_v39, 0.0  ;;  %v504_v54 = vld [vmem:[%s1066_s0 + $0x48] sm:$0xff]  ;;  %v503_v55 = vld [vmem:[%s1066_s0 + $0x40] sm:$0xff]  ;;  %v506_v60 = vld [vmem:[%s1066_s0 + $0x58] sm:$0xff] }
   0xa   :  { %75 = vadd.xlane.f32.xlu1 %v74_v18  ;;  %69 = vadd.xlane.f32.xlu0 %v68_v20  ;;  %v108_v38 = vsel %vm64_vm0, %v98_v33, 0.0  ;;  %v102_v45 = vmul.f32 %v741_v42, %v53_v14  ;;  %v101_v47 = vmul.f32 %v746_v43, %v52_v16  ;;  %v104_v51 = vmul.f32 %v494_v48, %v55_v23  ;;  %v505_v61 = vld [vmem:[%s1066_s0 + $0x50] sm:$0xff]  ;;  %v507_v4 = vld [vmem:[%s1066_s0 + $0x60] sm:$0xff] }
   0xb   :  { %v111_v46 = vsel %vm64_vm0, %v99_v41, 0.0  ;;  %v103_v53 = vmul.f32 %v493_v49, %v54_v25  ;;  %v275_v57 = vmul.f32 %v504_v54, %v15_v9  ;;  %v274_v59 = vmul.f32 %v503_v55, %v646_v2  ;;  %v508_v2 = vld [vmem:[%s1066_s0 + $0x68] sm:$0xff]  ;;  %v509_v9 = vld [vmem:[%s1066_s0 + $0x70] sm:$0xff] }
   0xc   :  { %v120_v50 = vsel %vm64_vm0, %v102_v45, 0.0  ;;  %v117_v52 = vsel %vm64_vm0, %v101_v47, 0.0  ;;  %v126_v56 = vsel %vm64_vm0, %v104_v51, 0.0  ;;  %v277_v63 = vmul.f32 %v506_v60, %v655_v5 }
   0xd   :  { %v123_v58 = vsel %vm64_vm0, %v103_v53, 0.0  ;;  %v285_v62 = vsel %vm64_vm0, %v275_v57, 0.0  ;;  %v282_v1 = vsel %vm64_vm0, %v274_v59, 0.0  ;;  %v276_v3 = vmul.f32 %v505_v61, %v638_v0  ;;  %v510_v0 = vld [vmem:[%s1066_s0 + $0x78] sm:$0xff] }
   0xe   :  { %81 = vadd.xlane.f32.xlu1 %v80_v26  ;;  %78 = vadd.xlane.f32.xlu0 %v77_v28  ;;  %v291_v6 = vsel %vm64_vm0, %v277_v63, 0.0  ;;  %v279_v7 = vmul.f32 %v508_v2, %v671_v11  ;;  %v278_v8 = vmul.f32 %v507_v4, %v680_v15  ;;  %v281_v12 = vmul.f32 %v510_v0, %v693_v22 }
   0xf   :  { %v288_v5 = vsel %vm64_vm0, %v276_v3, 0.0  ;;  %v280_v13 = vmul.f32 %v509_v9, %v701_v24  ;;  %v315_v15 = vmul.f32 %v504_v54, %v713_v30  ;;  %v314_v17 = vmul.f32 %v503_v55, %v718_v31 }
  0x10   :  { %v297_v10 = vsel %vm64_vm0, %v279_v7, 0.0  ;;  %v294_v11 = vsel %vm64_vm0, %v278_v8, 0.0  ;;  %v303_v14 = vsel %vm64_vm0, %v281_v12, 0.0  ;;  %v317_v19 = vmul.f32 %v506_v60, %v727_v36 }
  0x11   :  { %v300_v16 = vsel %vm64_vm0, %v280_v13, 0.0  ;;  %v325_v18 = vsel %vm64_vm0, %v315_v15, 0.0  ;;  %v322_v20 = vsel %vm64_vm0, %v314_v17, 0.0  ;;  %v316_v21 = vmul.f32 %v505_v61, %v732_v37 }
  0x12   :  { %87 = vadd.xlane.f32.xlu1 %v86_v32  ;;  %84 = vadd.xlane.f32.xlu0 %v83_v34  ;;  %v331_v22 = vsel %vm64_vm0, %v317_v19, 0.0  ;;  %v319_v23 = vmul.f32 %v508_v2, %v741_v42  ;;  %v318_v25 = vmul.f32 %v507_v4, %v746_v43  ;;  %v321_v27 = vmul.f32 %v510_v0, %v494_v48 }
  0x13   :  { %v328_v24 = vsel %vm64_vm0, %v316_v21, 0.0  ;;  %v320_v29 = vmul.f32 %v509_v9, %v493_v49 }
  0x14   :  { %v337_v26 = vsel %vm64_vm0, %v319_v23, 0.0  ;;  %v334_v28 = vsel %vm64_vm0, %v318_v25, 0.0  ;;  %v343_v30 = vsel %vm64_vm0, %v321_v27, 0.0 }
  0x15   :  { %v340_v31 = vsel %vm64_vm0, %v320_v29, 0.0 }
  0x16   :  { %109 = vadd.xlane.f32.xlu1 %v108_v38  ;;  %106 = vadd.xlane.f32.xlu0 %v105_v40 }
  0x1a   :  { %115 = vadd.xlane.f32.xlu1 %v114_v44  ;;  %112 = vadd.xlane.f32.xlu0 %v111_v46 }
  0x1e   :  { %121 = vadd.xlane.f32.xlu1 %v120_v50  ;;  %118 = vadd.xlane.f32.xlu0 %v117_v52 }
  0x22   :  { %127 = vadd.xlane.f32.xlu1 %v126_v56  ;;  %124 = vadd.xlane.f32.xlu0 %v123_v58 }
  0x26   :  { %286 = vadd.xlane.f32.xlu1 %v285_v62  ;;  %283 = vadd.xlane.f32.xlu0 %v282_v1 }
  0x2a   :  { %292 = vadd.xlane.f32.xlu1 %v291_v6  ;;  %289 = vadd.xlane.f32.xlu0 %v288_v5 }
  0x2e   :  { %298 = vadd.xlane.f32.xlu1 %v297_v10  ;;  %295 = vadd.xlane.f32.xlu0 %v294_v11 }
  0x32   :  { %304 = vadd.xlane.f32.xlu1 %v303_v14  ;;  %301 = vadd.xlane.f32.xlu0 %v300_v16 }
  0x36   :  { %326 = vadd.xlane.f32.xlu1 %v325_v18  ;;  %323 = vadd.xlane.f32.xlu0 %v322_v20 }
  0x3a   :  { %332 = vadd.xlane.f32.xlu1 %v331_v22  ;;  %329 = vadd.xlane.f32.xlu0 %v328_v24 }
  0x3e   :  { %338 = vadd.xlane.f32.xlu1 %v337_v26  ;;  %335 = vadd.xlane.f32.xlu0 %v334_v28 }
  0x42   :  { %344 = vadd.xlane.f32.xlu1 %v343_v30  ;;  %341 = vadd.xlane.f32.xlu0 %v340_v31 }
  0x93   :  { %v73_v32 = vpop.xlane.xlu1 %72  ;;  %v67_v33 = vpop.xlane.xlu0 %66 }
  0x94   :  { %v89_v44 = vmul.f32 0.35355338, %v67_v33  ;;  %v91_v47 = vmul.f32 0.35355338, %v73_v32 }
  0x97   :  { %v76_v34 = vpop.xlane.xlu1 %75  ;;  %v70_v35 = vpop.xlane.xlu0 %69 }
  0x98   :  { %v90_v41 = vmul.f32 0.35355338, %v70_v35  ;;  %v92_v48 = vmul.f32 0.35355338, %v76_v34 }
  0x9b   :  { %v82_v36 = vpop.xlane.xlu1 %81  ;;  %v79_v37 = vpop.xlane.xlu0 %78 }
  0x9c   :  { %v94_v51 = vmul.f32 0.35355338, %v82_v36  ;;  %v93_v56 = vmul.f32 0.35355338, %v79_v37 }
  0x9f   :  { %v88_v38 = vpop.xlane.xlu1 %87  ;;  %v85_v39 = vpop.xlane.xlu0 %84 }
  0xa0   :  { %v96_v60 = vmul.f32 0.35355338, %v88_v38  ;;  %v95_v1 = vmul.f32 0.35355338, %v85_v39 }
  0xa3   :  { %v110_v40 = vpop.xlane.xlu1 %109  ;;  %v107_v43 = vpop.xlane.xlu0 %106 }
  0xa4   :  { %v130_v42 = vmul.f32 0.35355338, %v110_v40  ;;  %v129_v45 = vmul.f32 0.35355338, %v107_v43 }
  0xa6   :  { %v138_v46 = vmax.f32 %v90_v41, %v130_v42  ;;  %v137_v49 = vmax.f32 %v89_v44, %v129_v45 }
  0xa7   :  { %v116_v50 = vpop.xlane.xlu1 %115  ;;  %v113_v55 = vpop.xlane.xlu0 %112 }
  0xa8   :  { %v146_v52 = vsub.f32 %v90_v41, %v138_v46  ;;  %v170_v53 = vsub.f32 %v130_v42, %v138_v46  ;;  %v132_v54 = vmul.f32 0.35355338, %v116_v50  ;;  %v145_v57 = vsub.f32 %v89_v44, %v137_v49 }
  0xa9   :  { %v169_v58 = vsub.f32 %v129_v45, %v137_v49  ;;  %v131_v59 = vmul.f32 0.35355338, %v113_v55 }
  0xaa   :  { %v155_v61 = vmul.f32 1.442695, %v146_v52  ;;  %v179_v62 = vmul.f32 1.442695, %v170_v53  ;;  %v140_v63 = vmax.f32 %v92_v48, %v132_v54  ;;  %v153_v3 = vmul.f32 1.442695, %v145_v57 }
  0xab   :  { %v177_v2 = vmul.f32 1.442695, %v169_v58  ;;  %v139_v4 = vmax.f32 %v91_v47, %v131_v59  ;;  %v122_v6 = vpop.xlane.xlu1 %121  ;;  %v119_v0 = vpop.xlane.xlu0 %118 }
  0xac   :  { %519 = vpow2.f32 %v155_v61  ;;  %v148_v7 = vsub.f32 %v92_v48, %v140_v63  ;;  %v172_v5 = vsub.f32 %v132_v54, %v140_v63  ;;  %v134_v8 = vmul.f32 0.35355338, %v122_v6 }
  0xad   :  { %521 = vpow2.f32 %v179_v62  ;;  %v147_v9 = vsub.f32 %v91_v47, %v139_v4  ;;  %v171_v10 = vsub.f32 %v131_v59, %v139_v4  ;;  %v133_v12 = vmul.f32 0.35355338, %v119_v0 }
  0xae   :  { %523 = vpow2.f32 %v153_v3  ;;  %v159_v11 = vmul.f32 1.442695, %v148_v7  ;;  %v183_v13 = vmul.f32 1.442695, %v172_v5  ;;  %v142_v14 = vmax.f32 %v94_v51, %v134_v8 }
  0xaf   :  { %525 = vpow2.f32 %v177_v2  ;;  %v157_v15 = vmul.f32 1.442695, %v147_v9  ;;  %v181_v16 = vmul.f32 1.442695, %v171_v10  ;;  %v141_v17 = vmax.f32 %v93_v56, %v133_v12  ;;  %v128_v18 = vpop.xlane.xlu1 %127  ;;  %v125_v22 = vpop.xlane.xlu0 %124  ;;  %v852_v9 = vld [vmem:[%s1068_s2 + $0x8] sm:$0xff] }
  0xb0   :  { %527 = vpow2.f32 %v159_v11  ;;  %v150_v19 = vsub.f32 %v94_v51, %v142_v14  ;;  %v174_v20 = vsub.f32 %v134_v8, %v142_v14  ;;  %v136_v21 = vmul.f32 0.35355338, %v128_v18  ;;  %v857_v10 = vld [vmem:[%s1068_s2 + $0x48] sm:$0xff] }
  0xb1   :  { %529 = vpow2.f32 %v183_v13  ;;  %v149_v23 = vsub.f32 %v93_v56, %v141_v17  ;;  %v173_v24 = vsub.f32 %v133_v12, %v141_v17  ;;  %v135_v25 = vmul.f32 0.35355338, %v125_v22  ;;  %v875_v22 = vld [vmem:[%s1068_s2 + $0x40] sm:$0xff] }
  0xb2   :  { %531 = vpow2.f32 %v157_v15  ;;  %v163_v26 = vmul.f32 1.442695, %v150_v19  ;;  %v187_v27 = vmul.f32 1.442695, %v174_v20  ;;  %v144_v28 = vmax.f32 %v96_v60, %v136_v21 }
  0xb3   :  { %533 = vpow2.f32 %v181_v16  ;;  %v161_v29 = vmul.f32 1.442695, %v149_v23  ;;  %v185_v30 = vmul.f32 1.442695, %v173_v24  ;;  %v143_v31 = vmax.f32 %v95_v1, %v135_v25  ;;  %v287_v32 = vpop.xlane.xlu1 %286  ;;  %v284_v35 = vpop.xlane.xlu0 %283 }
  0xb4   :  { %535 = vpow2.f32 %v163_v26  ;;  %v152_v33 = vsub.f32 %v96_v60, %v144_v28  ;;  %v176_v34 = vsub.f32 %v136_v21, %v144_v28  ;;  %v307_v6 = vmul.f32 0.35355338, %v287_v32  ;;  %v870_v21 = vld [vmem:[%s1068_s2] sm:$0xff]  ;;  %v888_v32 = vld [vmem:[%s1068_s2 + $0x18] sm:$0xff] }
  0xb5   :  { %537 = vpow2.f32 %v187_v27  ;;  %v151_v36 = vsub.f32 %v95_v1, %v143_v31  ;;  %v175_v37 = vsub.f32 %v135_v25, %v143_v31  ;;  %v845_v7 = vmul.f32 0.35355338, %v284_v35 }
  0xb6   :  { %v520_v38 = vpop.eup %519  ;;  %539 = vpow2.f32 %v161_v29  ;;  %v167_v39 = vmul.f32 1.442695, %v152_v33  ;;  %v191_v40 = vmul.f32 1.442695, %v176_v34 }
  0xb7   :  { %v522_v41 = vpop.eup %521  ;;  %541 = vpow2.f32 %v185_v30  ;;  %v165_v42 = vmul.f32 1.442695, %v151_v36  ;;  %v293_v43 = vpop.xlane.xlu1 %292  ;;  %v189_v48 = vmul.f32 1.442695, %v175_v37 }
  0xb8   :  { %v524_v44 = vpop.eup %523  ;;  %v194_v45 = vadd.f32 %v522_v41, %v520_v38  ;;  %543 = vpow2.f32 %v167_v39  ;;  %v290_v46 = vpop.xlane.xlu0 %289  ;;  %v847_v5 = vmul.f32 0.35355338, %v293_v43 }
  0xb9   :  { %v526_v47 = vpop.eup %525  ;;  %545 = vpow2.f32 %v191_v40  ;;  %v861_v11 = vmul.f32 0.35355338, %v290_v46  ;;  %v898_v40 = vld [vmem:[%s1068_s2 + $0x58] sm:$0xff]  ;;  %v910_v46 = vld [vmem:[%s1068_s2 + $0x50] sm:$0xff] }
  0xba   :  { %v815_v49 = vpop.eup %527  ;;  %547 = vrcp.f32 %v194_v45  ;;  %v193_v50 = vadd.f32 %v526_v47, %v524_v44  ;;  %v905_v45 = vld [vmem:[%s1068_s2 + $0x10] sm:$0xff] }
  0xbb   :  { %v817_v51 = vpop.eup %529  ;;  %549 = vpow2.f32 %v165_v42  ;;  %v299_v52 = vpop.xlane.xlu1 %298 }
  0xbc   :  { %v819_v53 = vpop.eup %531  ;;  %551 = vrcp.f32 %v193_v50  ;;  %v196_v54 = vadd.f32 %v817_v51, %v815_v49  ;;  %v296_v55 = vpop.xlane.xlu0 %295  ;;  %v865_v18 = vmul.f32 0.35355338, %v299_v52 }
  0xbd   :  { %v823_v56 = vpop.eup %533  ;;  %553 = vpow2.f32 %v189_v48  ;;  %v877_v23 = vmul.f32 0.35355338, %v296_v55 }
  0xbe   :  { %v825_v57 = vpop.eup %535  ;;  %555 = vrcp.f32 %v196_v54  ;;  %v195_v58 = vadd.f32 %v823_v56, %v819_v53 }
  0xbf   :  { %v829_v59 = vpop.eup %537  ;;  %v305_v60 = vpop.xlane.xlu1 %304 }
  0xc0   :  { %v831_v61 = vpop.eup %539  ;;  %557 = vrcp.f32 %v195_v58  ;;  %v198_v62 = vadd.f32 %v829_v59, %v825_v57  ;;  %v835_v63 = vpop.xlane.xlu0 %301  ;;  %v879_v24 = vmul.f32 0.35355338, %v305_v60  ;;  %v923_v60 = vld [vmem:[%s1068_s2 + $0x28] sm:$0xff] }
  0xc1   :  { %v837_v1 = vpop.eup %541 }
  0xc2   :  { %v839_v3 = vpop.eup %543  ;;  %559 = vrcp.f32 %v198_v62  ;;  %v197_v2 = vadd.f32 %v837_v1, %v831_v61  ;;  %v928_v62 = vld [vmem:[%s1068_s2 + $0x68] sm:$0xff] }
  0xc3   :  { %v843_v4 = vpop.eup %545  ;;  %v327_v8 = vpop.xlane.xlu1 %326 }
  0xc4   :  { %v548_v0 = vpop.eup %547  ;;  %561 = vrcp.f32 %v197_v2  ;;  %v200_v12 = vadd.f32 %v843_v4, %v839_v3  ;;  %v347_v13 = vmul.f32 0.35355338, %v327_v8  ;;  %v324_v14 = vpop.xlane.xlu0 %323 }
  0xc5   :  { %v863_v15 = vpop.eup %549  ;;  %v218_v16 = vmul.f32 %v548_v0, %v520_v38  ;;  %v234_v17 = vmul.f32 %v548_v0, %v522_v41  ;;  %v346_v19 = vmul.f32 0.35355338, %v324_v14 }
  0xc6   :  { %v552_v20 = vpop.eup %551  ;;  %563 = vrcp.f32 %v200_v12  ;;  %v355_v25 = vmax.f32 %v307_v6, %v347_v13 }
  0xc7   :  { %v881_v26 = vpop.eup %553  ;;  %v226_v27 = vmul.f32 %v218_v16, %v852_v9  ;;  %v242_v28 = vmul.f32 %v857_v10, %v234_v17  ;;  %v217_v29 = vmul.f32 %v552_v20, %v524_v44  ;;  %v233_v30 = vmul.f32 %v552_v20, %v526_v47  ;;  %v333_v42 = vpop.xlane.xlu1 %332 }
  0xc8   :  { %v556_v31 = vpop.eup %555  ;;  %v199_v33 = vadd.f32 %v881_v26, %v863_v15  ;;  %v363_v34 = vsub.f32 %v307_v6, %v355_v25  ;;  %v387_v35 = vsub.f32 %v347_v13, %v355_v25  ;;  %v354_v36 = vmax.f32 %v845_v7, %v346_v19  ;;  %v330_v50 = vpop.xlane.xlu0 %329 }
  0xc9   :  { %v250_v37 = vadd.f32 %v242_v28, %v226_v27  ;;  %v225_v38 = vmul.f32 %v217_v29, %v870_v21  ;;  %v241_v39 = vmul.f32 %v875_v22, %v233_v30  ;;  %v220_v41 = vmul.f32 %v556_v31, %v815_v49  ;;  %v960_v29 = vld [vmem:[%s1068_s2 + $0x38] sm:$0xff] }
  0xca   :  { %v558_v43 = vpop.eup %557  ;;  %v236_v44 = vmul.f32 %v556_v31, %v817_v51  ;;  %565 = vrcp.f32 %v199_v33  ;;  %v372_v47 = vmul.f32 1.442695, %v363_v34  ;;  %v396_v48 = vmul.f32 1.442695, %v387_v35  ;;  %v965_v30 = vld [vmem:[%s1068_s2 + $0x78] sm:$0xff] }
  0xcb   :  { %258 = vst.msk [vmem:[%s1069_s3 + $0x8] sm:$0xff] %vm64_vm0, %v250_v37  ;;  %v249_v49 = vadd.f32 %v241_v39, %v225_v38  ;;  %v228_v51 = vmul.f32 %v220_v41, %v888_v32  ;;  %v219_v52 = vmul.f32 %v558_v43, %v819_v53  ;;  %v235_v54 = vmul.f32 %v558_v43, %v823_v56  ;;  %v339_v25 = vpop.xlane.xlu1 %338 }
  0xcc   :  { %v560_v55 = vpop.eup %559  ;;  %v244_v58 = vmul.f32 %v898_v40, %v236_v44  ;;  %567 = vpow2.f32 %v372_v47  ;;  %v362_v2 = vsub.f32 %v845_v7, %v354_v36  ;;  %v386_v6 = vsub.f32 %v346_v19, %v354_v36  ;;  %v942_v7 = vld [vmem:[%s1068_s2 + $0x20] sm:$0xff]  ;;  %v336_v33 = vpop.xlane.xlu0 %335  ;;  %v986_v47 = vld [vmem:[%s1068_s2 + $0x30] sm:$0xff] }
  0xcd   :  { %257 = vst.msk [vmem:[%s1069_s3] sm:$0xff] %vm64_vm0, %v249_v49  ;;  %v227_v53 = vmul.f32 %v219_v52, %v905_v45  ;;  %v243_v56 = vmul.f32 %v910_v46, %v235_v54  ;;  %v222_v8 = vmul.f32 %v560_v55, %v825_v57  ;;  %v238_v0 = vmul.f32 %v560_v55, %v829_v59  ;;  %v949_v57 = vld [vmem:[%s1068_s2 + $0x60] sm:$0xff] }
  0xce   :  { %v562_v12 = vpop.eup %561  ;;  %v252_v13 = vadd.f32 %v244_v58, %v228_v51  ;;  %569 = vpow2.f32 %v396_v48  ;;  %v370_v14 = vmul.f32 1.442695, %v362_v2  ;;  %v394_v16 = vmul.f32 1.442695, %v386_v6  ;;  %v991_v48 = vld [vmem:[%s1068_s2 + $0x70] sm:$0xff] }
  0xcf   :  { %v251_v17 = vadd.f32 %v243_v56, %v227_v53  ;;  %v230_v19 = vmul.f32 %v222_v8, %v923_v60  ;;  %v246_v20 = vmul.f32 %v928_v62, %v238_v0  ;;  %v221_v59 = vmul.f32 %v562_v12, %v831_v61  ;;  %v345_v2 = vpop.xlane.xlu1 %344 }
  0xd0   :  { %v564_v27 = vpop.eup %563  ;;  %260 = vst.msk [vmem:[%s1069_s3 + $0x18] sm:$0xff] %vm64_vm0, %v252_v13  ;;  %v237_v28 = vmul.f32 %v562_v12, %v837_v1  ;;  %571 = vpow2.f32 %v370_v14  ;;  %v349_v61 = vmul.f32 0.35355338, %v333_v42  ;;  %v348_v31 = vmul.f32 0.35355338, %v330_v50 }
  0xd1   :  { %259 = vst.msk [vmem:[%s1069_s3 + $0x10] sm:$0xff] %vm64_vm0, %v251_v17  ;;  %v254_v1 = vadd.f32 %v246_v20, %v230_v19  ;;  %v229_v34 = vmul.f32 %v221_v59, %v942_v7  ;;  %v224_v35 = vmul.f32 %v564_v27, %v839_v3  ;;  %v240_v36 = vmul.f32 %v564_v27, %v843_v4  ;;  %v342_v17 = vpop.xlane.xlu0 %341 }
  0xd2   :  { %v245_v37 = vmul.f32 %v949_v57, %v237_v28  ;;  %573 = vpow2.f32 %v394_v16  ;;  %v357_v38 = vmax.f32 %v847_v5, %v349_v61  ;;  %v356_v39 = vmax.f32 %v861_v11, %v348_v31 }
  0xd3   :  { %262 = vst.msk [vmem:[%s1069_s3 + $0x28] sm:$0xff] %vm64_vm0, %v254_v1  ;;  %v232_v41 = vmul.f32 %v224_v35, %v960_v29  ;;  %v248_v42 = vmul.f32 %v965_v30, %v240_v36  ;;  %v351_v43 = vmul.f32 0.35355338, %v339_v25  ;;  %v350_v3 = vmul.f32 0.35355338, %v336_v33 }
  0xd4   :  { %v566_v44 = vpop.eup %565  ;;  %v253_v4 = vadd.f32 %v245_v37, %v229_v34  ;;  %v365_v50 = vsub.f32 %v847_v5, %v357_v38  ;;  %v389_v49 = vsub.f32 %v349_v61, %v357_v38  ;;  %v364_v51 = vsub.f32 %v861_v11, %v356_v39 }
  0xd5   :  { %v256_v52 = vadd.f32 %v248_v42, %v232_v41  ;;  %v223_v54 = vmul.f32 %v566_v44, %v863_v15  ;;  %v239_v55 = vmul.f32 %v566_v44, %v881_v26  ;;  %v388_v58 = vsub.f32 %v348_v31, %v356_v39 }
  0xd6   :  { %v568_v6 = vpop.eup %567  ;;  %261 = vst.msk [vmem:[%s1069_s3 + $0x20] sm:$0xff] %vm64_vm0, %v253_v4  ;;  %v376_v53 = vmul.f32 1.442695, %v365_v50  ;;  %v400_v56 = vmul.f32 1.442695, %v389_v49  ;;  %v359_v5 = vmax.f32 %v865_v18, %v351_v43  ;;  %v358_v0 = vmax.f32 %v877_v23, %v350_v3 }
  0xd7   :  { %v374_v8 = vmul.f32 1.442695, %v364_v51  ;;  %264 = vst.msk [vmem:[%s1069_s3 + $0x38] sm:$0xff] %vm64_vm0, %v256_v52  ;;  %v231_v11 = vmul.f32 %v223_v54, %v986_v47  ;;  %v247_v15 = vmul.f32 %v991_v48, %v239_v55  ;;  %v398_v26 = vmul.f32 1.442695, %v388_v58 }
  0xd8   :  { %v570_v12 = vpop.eup %569  ;;  %575 = vpow2.f32 %v376_v53  ;;  %v367_v13 = vsub.f32 %v865_v18, %v359_v5  ;;  %v391_v14 = vsub.f32 %v351_v43, %v359_v5  ;;  %v353_v16 = vmul.f32 0.35355338, %v345_v2 }
  0xd9   :  { %v255_v19 = vadd.f32 %v247_v15, %v231_v11  ;;  %v411_v20 = vadd.f32 %v570_v12, %v568_v6  ;;  %577 = vpow2.f32 %v400_v56  ;;  %v366_v59 = vsub.f32 %v877_v23, %v358_v0 }
  0xda   :  { %v572_v25 = vpop.eup %571  ;;  %579 = vpow2.f32 %v374_v8  ;;  %v380_v27 = vmul.f32 1.442695, %v367_v13  ;;  %v404_v28 = vmul.f32 1.442695, %v391_v14  ;;  %v390_v61 = vsub.f32 %v350_v3, %v358_v0 }
  0xdb   :  { %263 = vst.msk [vmem:[%s1069_s3 + $0x30] sm:$0xff] %vm64_vm0, %v255_v19  ;;  %581 = vrcp.f32 %v411_v20  ;;  %v361_v18 = vmax.f32 %v879_v24, %v353_v16  ;;  %v352_v31 = vmul.f32 0.35355338, %v342_v17  ;;  %v312_v1 = vmul.f32 0.35355338, %v835_v63 }
  0xdc   :  { %v574_v33 = vpop.eup %573  ;;  %583 = vpow2.f32 %v398_v26  ;;  %v378_v34 = vmul.f32 1.442695, %v366_v59  ;;  %v402_v23 = vmul.f32 1.442695, %v390_v61 }
  0xdd   :  { %v410_v35 = vadd.f32 %v574_v33, %v572_v25  ;;  %585 = vpow2.f32 %v380_v27  ;;  %v369_v36 = vsub.f32 %v879_v24, %v361_v18  ;;  %v393_v37 = vsub.f32 %v353_v16, %v361_v18 }
  0xde   :  { %587 = vpow2.f32 %v404_v28  ;;  %v360_v38 = vmax.f32 %v312_v1, %v352_v31 }
  0xdf   :  { %589 = vrcp.f32 %v410_v35  ;;  %v384_v39 = vmul.f32 1.442695, %v369_v36  ;;  %v408_v41 = vmul.f32 1.442695, %v393_v37 }
  0xe0   :  { %591 = vpow2.f32 %v378_v34  ;;  %v368_v42 = vsub.f32 %v312_v1, %v360_v38  ;;  %v392_v43 = vsub.f32 %v352_v31, %v360_v38 }
  0xe1   :  { %593 = vpow2.f32 %v402_v23 }
  0xe2   :  { %v576_v3 = vpop.eup %575  ;;  %595 = vpow2.f32 %v384_v39  ;;  %v382_v63 = vmul.f32 1.442695, %v368_v42  ;;  %v406_v44 = vmul.f32 1.442695, %v392_v43 }
  0xe3   :  { %v578_v4 = vpop.eup %577  ;;  %597 = vpow2.f32 %v408_v41 }
  0xe4   :  { %v580_v50 = vpop.eup %579  ;;  %v413_v49 = vadd.f32 %v578_v4, %v576_v3  ;;  %599 = vpow2.f32 %v382_v63 }
  0xe5   :  { %v582_v24 = vpop.eup %581  ;;  %601 = vpow2.f32 %v406_v44 }
  0xe6   :  { %v584_v51 = vpop.eup %583  ;;  %v435_v52 = vmul.f32 %v582_v24, %v568_v6  ;;  %v451_v54 = vmul.f32 %v582_v24, %v570_v12  ;;  %603 = vrcp.f32 %v413_v49 }
  0xe7   :  { %v586_v55 = vpop.eup %585  ;;  %v412_v58 = vadd.f32 %v584_v51, %v580_v50 }
  0xe8   :  { %v588_v2 = vpop.eup %587  ;;  %v443_v53 = vmul.f32 %v435_v52, %v852_v9  ;;  %v459_v56 = vmul.f32 %v857_v10, %v451_v54 }
  0xe9   :  { %v590_v8 = vpop.eup %589  ;;  %605 = vrcp.f32 %v412_v58  ;;  %v415_v5 = vadd.f32 %v588_v2, %v586_v55 }
  0xea   :  { %v592_v11 = vpop.eup %591  ;;  %v467_v15 = vadd.f32 %v459_v56, %v443_v53  ;;  %v434_v26 = vmul.f32 %v590_v8, %v572_v25  ;;  %v450_v0 = vmul.f32 %v590_v8, %v574_v33 }
  0xeb   :  { %v594_v13 = vpop.eup %593  ;;  %607 = vrcp.f32 %v415_v5 }
  0xec   :  { %v596_v14 = vpop.eup %595  ;;  %512 = vst.msk [vmem:[%s1069_s3 + $0x48] sm:$0xff] %vm64_vm0, %v467_v15  ;;  %v442_v6 = vmul.f32 %v434_v26, %v870_v21  ;;  %v458_v9 = vmul.f32 %v875_v22, %v450_v0  ;;  %v414_v10 = vadd.f32 %v594_v13, %v592_v11 }
  0xed   :  { %v598_v12 = vpop.eup %597 }
  0xee   :  { %v600_v16 = vpop.eup %599  ;;  %v466_v17 = vadd.f32 %v458_v9, %v442_v6  ;;  %609 = vrcp.f32 %v414_v10  ;;  %v417_v19 = vadd.f32 %v598_v12, %v596_v14 }
  0xef   :  { %v602_v20 = vpop.eup %601 }
  0xf0   :  { %v604_v59 = vpop.eup %603  ;;  %511 = vst.msk [vmem:[%s1069_s3 + $0x40] sm:$0xff] %vm64_vm0, %v466_v17  ;;  %611 = vrcp.f32 %v417_v19  ;;  %v416_v25 = vadd.f32 %v602_v20, %v600_v16 }
  0xf1   :  { %v437_v27 = vmul.f32 %v604_v59, %v576_v3  ;;  %v453_v28 = vmul.f32 %v604_v59, %v578_v4 }
  0xf2   :  { %613 = vrcp.f32 %v416_v25 }
  0xf3   :  { %v606_v21 = vpop.eup %605  ;;  %v445_v22 = vmul.f32 %v437_v27, %v888_v32  ;;  %v461_v61 = vmul.f32 %v898_v40, %v453_v28 }
  0xf4   :  { %v436_v18 = vmul.f32 %v606_v21, %v580_v50  ;;  %v452_v31 = vmul.f32 %v606_v21, %v584_v51 }
  0xf5   :  { %v608_v33 = vpop.eup %607  ;;  %v469_v1 = vadd.f32 %v461_v61, %v445_v22 }
  0xf6   :  { %v444_v34 = vmul.f32 %v436_v18, %v905_v45  ;;  %v460_v23 = vmul.f32 %v910_v46, %v452_v31  ;;  %v439_v35 = vmul.f32 %v608_v33, %v586_v55  ;;  %v455_v36 = vmul.f32 %v608_v33, %v588_v2 }
  0xf7   :  { %514 = vst.msk [vmem:[%s1069_s3 + $0x58] sm:$0xff] %vm64_vm0, %v469_v1 }
  0xf8   :  { %v610_v37 = vpop.eup %609  ;;  %v468_v38 = vadd.f32 %v460_v23, %v444_v34  ;;  %v447_v32 = vmul.f32 %v439_v35, %v923_v60  ;;  %v463_v40 = vmul.f32 %v928_v62, %v455_v36 }
  0xf9   :  { %v438_v39 = vmul.f32 %v610_v37, %v592_v11  ;;  %v454_v41 = vmul.f32 %v610_v37, %v594_v13 }
  0xfa   :  { %v612_v42 = vpop.eup %611  ;;  %513 = vst.msk [vmem:[%s1069_s3 + $0x50] sm:$0xff] %vm64_vm0, %v468_v38  ;;  %v471_v45 = vadd.f32 %v463_v40, %v447_v32 }
  0xfb   :  { %v446_v46 = vmul.f32 %v438_v39, %v942_v7  ;;  %v462_v43 = vmul.f32 %v949_v57, %v454_v41  ;;  %v441_v3 = vmul.f32 %v612_v42, %v596_v14  ;;  %v457_v63 = vmul.f32 %v612_v42, %v598_v12 }
  0xfc   :  { %v614_v44 = vpop.eup %613  ;;  %516 = vst.msk [vmem:[%s1069_s3 + $0x68] sm:$0xff] %vm64_vm0, %v471_v45 }
  0xfd   :  { %v470_v60 = vadd.f32 %v462_v43, %v446_v46  ;;  %v449_v62 = vmul.f32 %v441_v3, %v960_v29  ;;  %v465_v4 = vmul.f32 %v965_v30, %v457_v63  ;;  %v440_v50 = vmul.f32 %v614_v44, %v600_v16 }
  0xfe   :  { %v456_v49 = vmul.f32 %v614_v44, %v602_v20 }
  0xff   :  { %515 = vst.msk [vmem:[%s1069_s3 + $0x60] sm:$0xff] %vm64_vm0, %v470_v60  ;;  %v473_v7 = vadd.f32 %v465_v4, %v449_v62  ;;  %v448_v57 = vmul.f32 %v440_v50, %v986_v47 }
 0x100   :  { %v464_v24 = vmul.f32 %v991_v48, %v456_v49 }
 0x101   :  { %518 = vst.msk [vmem:[%s1069_s3 + $0x78] sm:$0xff] %vm64_vm0, %v473_v7 }
 0x102   :  { %v472_v29 = vadd.f32 %v464_v24, %v448_v57 }
 0x104   :  { %517 = vst.msk [vmem:[%s1069_s3 + $0x70] sm:$0xff] %vm64_vm0, %v472_v29 }

// kernel: mixformer_forward_pallas.27
= control target key start
LH: loop header
LB: loop body
LE: loop exit
PB: predicated region body
PF: predicated region fallthrough
CT: control target
= control target key end

     0   :  { %vm29_vm0 = vcmask 261120   ;;  %vm163_vm1 = vcmask 523264   ;;  %s282_s1 = inlined_call_operand.vmem [shape: f32[32,64], index: 1, kind: input, shape index: {}]   ;;  %s283_s0 = inlined_call_operand.vmem [shape: f32[32,32], index: 0, kind: input, shape index: {}]   ;;  %s284_s2 = inlined_call_operand.vmem [shape: f32[1,64], index: 2, kind: input, shape index: {}]   ;;  %s285_s3 = inlined_call_operand.vmem [shape: f32[32,64], index: 3, kind: output, shape index: {}]  }
   0x1   :  { %v18_v0 = vld [vmem:[%s282_s1] sm:$0xff]  ;;  %v19_v1 = vld [vmem:[%s282_s1 + $0x8] sm:$0xff]  ;;  %v20_v2 = vld [vmem:[%s282_s1 + $0x10] sm:$0xff] }
   0x2   :  { %v199_v3 = vpack.c.bf16 %v19_v1, %v18_v0  ;;  %v21_v4 = vld [vmem:[%s282_s1 + $0x18] sm:$0xff]  ;;  %v14_v5 = vld [vmem:[%s283_s0] sm:$0xff]  ;;  %v16_v6 = vld [vmem:[%s283_s0 + $0x10] sm:$0xff] }
   0x3   :  { %v203_v7 = vpack.c.bf16 %v21_v4, %v20_v2  ;;  %193 = vmatprep.mubr.msk.f32.mxu0 %vm29_vm0, %v14_v5  ;;  %196 = vmatprep.mubr.msk.f32.mxu1 %vm29_vm0, %v16_v6  ;;  %v15_v8 = vld [vmem:[%s283_s0 + $0x8] sm:$0xff]  ;;  %v17_v9 = vld [vmem:[%s283_s0 + $0x18] sm:$0xff]  ;;  %v172_v10 = vld [vmem:[%s284_s2] ss:$0 sm:$0xff] }
   0x4   :  { %200 = vmatprep.subr.bf16.mxu0 %v199_v3  ;;  %207 = vmatprep.subr.bf16.mxu1 %v199_v3 }
   0x5   :  { %202 = vmatpush3.bf16.msra.mxu0 %v199_v3  ;;  %209 = vmatpush3.bf16.msra.mxu1 %v199_v3 }
   0x6   :  { %204 = vmatprep.subr.bf16.mxu0 %v203_v7  ;;  %208 = vmatprep.subr.bf16.mxu1 %v203_v7 }
   0x9   :  { %206 = vmatpush3.bf16.msra.mxu0 %v203_v7  ;;  %210 = vmatpush3.bf16.msra.mxu1 %v203_v7 }
   0xc   :  { %194 = vmatmul.mubr.msk.f32.vlgmr.msra.gmra.mrb[0].mxu0 %vm29_vm0, %v15_v8  ;;  %197 = vmatmul.mubr.msk.f32.vlgmr.msra.gmra.mrb[0].mxu1 %vm29_vm0, %v17_v9 }
  0xdf   :  { %v195_v11 = vpop.f32.mrb[0].mxu0  ;;  %v198_v12 = vpop.f32.mrb[0].mxu1 }
  0xe0   :  { %v114_v13 = vadd.f32 %v195_v11, %v172_v10  ;;  %v124_v14 = vadd.f32 %v198_v12, %v172_v10  ;;  %v108_v15 = vpop.f32.mrb[1].mxu0  ;;  %v118_v16 = vpop.f32.mrb[1].mxu1 }
  0xe1   :  { %v109_v17 = vadd.f32 %v172_v10, %v108_v15  ;;  %v119_v18 = vadd.f32 %v172_v10, %v118_v16 }
  0xe2   :  { %v132_v19 = vmul.f32 %v114_v13, %v114_v13  ;;  %v134_v20 = vmul.f32 %v124_v14, %v124_v14  ;;  %v128_v41 = vmul.f32 0.5, %v114_v13  ;;  %v130_v44 = vmul.f32 0.5, %v124_v14 }
  0xe3   :  { %v131_v21 = vmul.f32 %v109_v17, %v109_v17  ;;  %v133_v22 = vmul.f32 %v119_v18, %v119_v18  ;;  %v127_v48 = vmul.f32 0.5, %v109_v17  ;;  %v129_v51 = vmul.f32 0.5, %v119_v18 }
  0xe4   :  { %v136_v23 = vmul.f32 %v132_v19, %v114_v13  ;;  %v138_v24 = vmul.f32 %v134_v20, %v124_v14 }
  0xe5   :  { %v135_v25 = vmul.f32 %v131_v21, %v109_v17  ;;  %v137_v26 = vmul.f32 %v133_v22, %v119_v18 }
  0xe6   :  { %v140_v27 = vmul.f32 0.044715, %v136_v23  ;;  %v142_v28 = vmul.f32 0.044715, %v138_v24 }
  0xe7   :  { %v139_v29 = vmul.f32 0.044715, %v135_v25  ;;  %v141_v30 = vmul.f32 0.044715, %v137_v26 }
  0xe8   :  { %v144_v31 = vadd.f32 %v140_v27, %v114_v13  ;;  %v146_v32 = vadd.f32 %v142_v28, %v124_v14 }
  0xe9   :  { %v143_v33 = vadd.f32 %v139_v29, %v109_v17  ;;  %v145_v34 = vadd.f32 %v141_v30, %v119_v18 }
  0xea   :  { %v148_v35 = vmul.f32 0.7978846, %v144_v31  ;;  %v150_v36 = vmul.f32 0.7978846, %v146_v32 }
  0xeb   :  { %v147_v37 = vmul.f32 0.7978846, %v143_v33  ;;  %v149_v38 = vmul.f32 0.7978846, %v145_v34 }
  0xec   :  { %211 = vtanh.f32 %v148_v35 }
  0xed   :  { %213 = vtanh.f32 %v150_v36 }
  0xee   :  { %215 = vtanh.f32 %v147_v37 }
  0xef   :  { %217 = vtanh.f32 %v149_v38 }
  0xf6   :  { %v212_v39 = vpop.eup %211 }
  0xf7   :  { %v214_v40 = vpop.eup %213  ;;  %v156_v42 = vadd.f32 1.0, %v212_v39 }
  0xf8   :  { %v216_v43 = vpop.eup %215  ;;  %v158_v45 = vadd.f32 1.0, %v214_v40 }
  0xf9   :  { %v218_v46 = vpop.eup %217  ;;  %v160_v47 = vmul.f32 %v156_v42, %v128_v41  ;;  %v155_v49 = vadd.f32 1.0, %v216_v43 }
  0xfa   :  { %v162_v50 = vmul.f32 %v158_v45, %v130_v44  ;;  %v157_v52 = vadd.f32 1.0, %v218_v46 }
  0xfb   :  { %165 = vst.msk [vmem:[%s285_s3 + $0x8] sm:$0xff] %vm163_vm1, %v160_v47  ;;  %v159_v53 = vmul.f32 %v155_v49, %v127_v48 }
  0xfc   :  { %167 = vst.msk [vmem:[%s285_s3 + $0x18] sm:$0xff] %vm163_vm1, %v162_v50  ;;  %v161_v54 = vmul.f32 %v157_v52, %v129_v51 }
  0xfd   :  { %164 = vst.msk [vmem:[%s285_s3] sm:$0xff] %vm163_vm1, %v159_v53 }
  0xfe   :  { %166 = vst.msk [vmem:[%s285_s3 + $0x10] sm:$0xff] %vm163_vm1, %v161_v54 }

// kernel: mixformer_forward_pallas.28
= control target key start
LH: loop header
LB: loop body
LE: loop exit
PB: predicated region body
PF: predicated region fallthrough
CT: control target
= control target key end

     0   :  { %vm33_vm0 = vcmask 523264   ;;  %vm131_vm1 = vcmask 261120   ;;  %s278_s1 = inlined_call_operand.vmem [shape: f32[64,32], index: 1, kind: input, shape index: {}]   ;;  %s279_s0 = inlined_call_operand.vmem [shape: f32[32,64], index: 0, kind: input, shape index: {}]   ;;  %s280_s2 = inlined_call_operand.vmem [shape: f32[1,32], index: 2, kind: input, shape index: {}]   ;;  %s281_s3 = inlined_call_operand.vmem [shape: f32[32,32], index: 3, kind: output, shape index: {}]  }
   0x1   :  { %v18_v0 = vld [vmem:[%s278_s1] sm:$0xff]  ;;  %v19_v1 = vld [vmem:[%s278_s1 + $0x8] sm:$0xff]  ;;  %v20_v2 = vld [vmem:[%s278_s1 + $0x10] sm:$0xff] }
   0x2   :  { %v179_v3 = vpack.c.bf16 %v19_v1, %v18_v0  ;;  %v21_v4 = vld [vmem:[%s278_s1 + $0x18] sm:$0xff]  ;;  %v22_v6 = vld [vmem:[%s278_s1 + $0x20] sm:$0xff]  ;;  %v23_v7 = vld [vmem:[%s278_s1 + $0x28] sm:$0xff] }
   0x3   :  { %v183_v5 = vpack.c.bf16 %v21_v4, %v20_v2  ;;  %v14_v8 = vld [vmem:[%s279_s0] sm:$0xff]  ;;  %v16_v9 = vld [vmem:[%s279_s0 + $0x10] sm:$0xff]  ;;  %v187_v10 = vpack.c.bf16 %v23_v7, %v22_v6  ;;  %v25_v12 = vld [vmem:[%s278_s1 + $0x38] sm:$0xff] }
   0x4   :  { %180 = vmatprep.subr.bf16.mxu0 %v179_v3  ;;  %195 = vmatprep.subr.bf16.mxu1 %v179_v3  ;;  %v24_v11 = vld [vmem:[%s278_s1 + $0x30] sm:$0xff]  ;;  %v15_v14 = vld [vmem:[%s279_s0 + $0x8] sm:$0xff]  ;;  %v17_v15 = vld [vmem:[%s279_s0 + $0x18] sm:$0xff] }
   0x5   :  { %182 = vmatpush3.bf16.msra.mxu0 %v179_v3  ;;  %199 = vmatpush3.bf16.msra.mxu1 %v179_v3  ;;  %v191_v13 = vpack.c.bf16 %v25_v12, %v24_v11  ;;  %v140_v16 = vld [vmem:[%s280_s2] ss:$0 sm:$0xff] }
   0x6   :  { %184 = vmatprep.subr.bf16.mxu0 %v183_v5  ;;  %196 = vmatprep.subr.bf16.mxu1 %v183_v5 }
   0x7   :  { %173 = vmatprep.mubr.msk.f32.mxu0 %vm33_vm0, %v14_v8  ;;  %176 = vmatprep.mubr.msk.f32.mxu1 %vm33_vm0, %v16_v9 }
   0x9   :  { %186 = vmatpush3.bf16.msra.mxu0 %v183_v5  ;;  %200 = vmatpush3.bf16.msra.mxu1 %v183_v5 }
   0xa   :  { %188 = vmatprep.subr.bf16.mxu0 %v187_v10  ;;  %197 = vmatprep.subr.bf16.mxu1 %v187_v10 }
   0xd   :  { %190 = vmatpush3.bf16.msra.mxu0 %v187_v10  ;;  %201 = vmatpush3.bf16.msra.mxu1 %v187_v10 }
   0xe   :  { %192 = vmatprep.subr.bf16.mxu0 %v191_v13  ;;  %198 = vmatprep.subr.bf16.mxu1 %v191_v13 }
  0x11   :  { %194 = vmatpush3.bf16.msra.mxu0 %v191_v13  ;;  %202 = vmatpush3.bf16.msra.mxu1 %v191_v13 }
  0x14   :  { %174 = vmatmul.mubr.msk.f32.vlgmr.msra.gmra.mrb[0].mxu0 %vm33_vm0, %v15_v14  ;;  %177 = vmatmul.mubr.msk.f32.vlgmr.msra.gmra.mrb[0].mxu1 %vm33_vm0, %v17_v15 }
  0xe7   :  { %v175_v17 = vpop.f32.mrb[0].mxu0  ;;  %v178_v18 = vpop.f32.mrb[0].mxu1 }
  0xe8   :  { %v118_v19 = vadd.f32 %v175_v17, %v140_v16  ;;  %v128_v20 = vadd.f32 %v178_v18, %v140_v16  ;;  %v112_v21 = vpop.f32.mrb[1].mxu0  ;;  %v122_v22 = vpop.f32.mrb[1].mxu1 }
  0xe9   :  { %v113_v23 = vadd.f32 %v140_v16, %v112_v21  ;;  %v123_v24 = vadd.f32 %v140_v16, %v122_v22 }
  0xea   :  { %133 = vst.msk [vmem:[%s281_s3 + $0x8] sm:$0xff] %vm131_vm1, %v118_v19  ;;  %135 = vst.msk [vmem:[%s281_s3 + $0x18] sm:$0xff] %vm131_vm1, %v128_v20 }
  0xeb   :  { %132 = vst.msk [vmem:[%s281_s3] sm:$0xff] %vm131_vm1, %v113_v23  ;;  %134 = vst.msk [vmem:[%s281_s3 + $0x10] sm:$0xff] %vm131_vm1, %v123_v24 }

// kernel: mixformer_forward_pallas.30
= control target key start
LH: loop header
LB: loop body
LE: loop exit
PB: predicated region body
PF: predicated region fallthrough
CT: control target
= control target key end

     0   :  { %vm33_vm0 = vcmask 523264   ;;  %vm155_vm1 = vcmask 261120   ;;  %s318_s1 = inlined_call_operand.vmem [shape: f32[64,32], index: 1, kind: input, shape index: {}]   ;;  %s319_s0 = inlined_call_operand.vmem [shape: f32[32,64], index: 0, kind: input, shape index: {}]   ;;  %s320_s2 = inlined_call_operand.vmem [shape: f32[1,32], index: 2, kind: input, shape index: {}]   ;;  %s321_s3 = inlined_call_operand.vmem [shape: f32[32,32], index: 3, kind: output, shape index: {}]  }
   0x1   :  { %v18_v0 = vld [vmem:[%s318_s1] sm:$0xff]  ;;  %v19_v1 = vld [vmem:[%s318_s1 + $0x8] sm:$0xff]  ;;  %v20_v2 = vld [vmem:[%s318_s1 + $0x10] sm:$0xff] }
   0x2   :  { %v203_v3 = vpack.c.bf16 %v19_v1, %v18_v0  ;;  %v21_v4 = vld [vmem:[%s318_s1 + $0x18] sm:$0xff]  ;;  %v22_v6 = vld [vmem:[%s318_s1 + $0x20] sm:$0xff]  ;;  %v23_v7 = vld [vmem:[%s318_s1 + $0x28] sm:$0xff] }
   0x3   :  { %v207_v5 = vpack.c.bf16 %v21_v4, %v20_v2  ;;  %v14_v8 = vld [vmem:[%s319_s0] sm:$0xff]  ;;  %v16_v9 = vld [vmem:[%s319_s0 + $0x10] sm:$0xff]  ;;  %v211_v10 = vpack.c.bf16 %v23_v7, %v22_v6  ;;  %v25_v12 = vld [vmem:[%s318_s1 + $0x38] sm:$0xff] }
   0x4   :  { %204 = vmatprep.subr.bf16.mxu0 %v203_v3  ;;  %219 = vmatprep.subr.bf16.mxu1 %v203_v3  ;;  %v24_v11 = vld [vmem:[%s318_s1 + $0x30] sm:$0xff]  ;;  %v15_v14 = vld [vmem:[%s319_s0 + $0x8] sm:$0xff]  ;;  %v17_v15 = vld [vmem:[%s319_s0 + $0x18] sm:$0xff] }
   0x5   :  { %206 = vmatpush3.bf16.msra.mxu0 %v203_v3  ;;  %223 = vmatpush3.bf16.msra.mxu1 %v203_v3  ;;  %v215_v13 = vpack.c.bf16 %v25_v12, %v24_v11  ;;  %v164_v16 = vld [vmem:[%s320_s2] ss:$0 sm:$0xff] }
   0x6   :  { %208 = vmatprep.subr.bf16.mxu0 %v207_v5  ;;  %220 = vmatprep.subr.bf16.mxu1 %v207_v5 }
   0x7   :  { %197 = vmatprep.mubr.msk.f32.mxu0 %vm33_vm0, %v14_v8  ;;  %200 = vmatprep.mubr.msk.f32.mxu1 %vm33_vm0, %v16_v9 }
   0x9   :  { %210 = vmatpush3.bf16.msra.mxu0 %v207_v5  ;;  %224 = vmatpush3.bf16.msra.mxu1 %v207_v5 }
   0xa   :  { %212 = vmatprep.subr.bf16.mxu0 %v211_v10  ;;  %221 = vmatprep.subr.bf16.mxu1 %v211_v10 }
   0xd   :  { %214 = vmatpush3.bf16.msra.mxu0 %v211_v10  ;;  %225 = vmatpush3.bf16.msra.mxu1 %v211_v10 }
   0xe   :  { %216 = vmatprep.subr.bf16.mxu0 %v215_v13  ;;  %222 = vmatprep.subr.bf16.mxu1 %v215_v13 }
  0x11   :  { %218 = vmatpush3.bf16.msra.mxu0 %v215_v13  ;;  %226 = vmatpush3.bf16.msra.mxu1 %v215_v13 }
  0x14   :  { %198 = vmatmul.mubr.msk.f32.vlgmr.msra.gmra.mrb[0].mxu0 %vm33_vm0, %v15_v14  ;;  %201 = vmatmul.mubr.msk.f32.vlgmr.msra.gmra.mrb[0].mxu1 %vm33_vm0, %v17_v15 }
  0xe7   :  { %v199_v17 = vpop.f32.mrb[0].mxu0  ;;  %v202_v18 = vpop.f32.mrb[0].mxu1 }
  0xe8   :  { %v118_v19 = vadd.f32 %v199_v17, %v164_v16  ;;  %v128_v20 = vadd.f32 %v202_v18, %v164_v16  ;;  %v112_v21 = vpop.f32.mrb[1].mxu0  ;;  %v122_v22 = vpop.f32.mrb[1].mxu1 }
  0xe9   :  { %v113_v23 = vadd.f32 %v164_v16, %v112_v21  ;;  %v123_v24 = vadd.f32 %v164_v16, %v122_v22 }
  0xea   :  { %v132_v25 = vsub.f32 0.0, %v118_v19  ;;  %v134_v26 = vsub.f32 0.0, %v128_v20 }
  0xeb   :  { %v131_v27 = vsub.f32 0.0, %v113_v23  ;;  %v133_v28 = vsub.f32 0.0, %v123_v24 }
  0xec   :  { %v137_v29 = vmul.f32 1.442695, %v132_v25  ;;  %v141_v30 = vmul.f32 1.442695, %v134_v26 }
  0xed   :  { %v135_v31 = vmul.f32 1.442695, %v131_v27  ;;  %v139_v32 = vmul.f32 1.442695, %v133_v28 }
  0xee   :  { %227 = vpow2.f32 %v137_v29 }
  0xef   :  { %229 = vpow2.f32 %v141_v30 }
  0xf0   :  { %231 = vpow2.f32 %v135_v31 }
  0xf1   :  { %233 = vpow2.f32 %v139_v32 }
  0xf8   :  { %v228_v33 = vpop.eup %227 }
  0xf9   :  { %v230_v34 = vpop.eup %229  ;;  %v144_v35 = vadd.f32 1.0, %v228_v33 }
  0xfa   :  { %v232_v36 = vpop.eup %231  ;;  %v146_v37 = vadd.f32 1.0, %v230_v34 }
  0xfb   :  { %v234_v38 = vpop.eup %233  ;;  %235 = vrcp.f32 %v144_v35  ;;  %v143_v39 = vadd.f32 1.0, %v232_v36 }
  0xfc   :  { %237 = vrcp.f32 %v146_v37  ;;  %v145_v40 = vadd.f32 1.0, %v234_v38 }
  0xfd   :  { %239 = vrcp.f32 %v143_v39 }
  0xfe   :  { %241 = vrcp.f32 %v145_v40 }
 0x105   :  { %v236_v41 = vpop.eup %235 }
 0x106   :  { %v238_v42 = vpop.eup %237  ;;  %157 = vst.msk [vmem:[%s321_s3 + $0x8] sm:$0xff] %vm155_vm1, %v236_v41 }
 0x107   :  { %v240_v43 = vpop.eup %239  ;;  %159 = vst.msk [vmem:[%s321_s3 + $0x18] sm:$0xff] %vm155_vm1, %v238_v42 }
 0x108   :  { %v242_v44 = vpop.eup %241  ;;  %156 = vst.msk [vmem:[%s321_s3] sm:$0xff] %vm155_vm1, %v240_v43 }
 0x109   :  { %158 = vst.msk [vmem:[%s321_s3 + $0x10] sm:$0xff] %vm155_vm1, %v242_v44 }

// kernel: mixformer_forward_pallas.33
= control target key start
LH: loop header
LB: loop body
LE: loop exit
PB: predicated region body
PF: predicated region fallthrough
CT: control target
= control target key end

     0   :  { %v169_v3 = vmov 0.0|0.0   ;;  %vm170_vm0 = vmmov 0   ;;  %v171_v6 = vmov 0.0   ;;  %s223_s0 = inlined_call_operand.vmem [shape: f32[2,32], index: 0, kind: input, shape index: {}]   ;;  %s224_s1 = inlined_call_operand.vmem [shape: f32[32,10], index: 1, kind: input, shape index: {}]   ;;  %s225_s2 = inlined_call_operand.vmem [shape: f32[1,10], index: 2, kind: input, shape index: {}]   ;;  %s226_s3 = inlined_call_operand.hbm [shape: f32[2,10], index: 3, kind: output, shape index: {}]  }
   0x1   :  { %v16_v0 = vld [vmem:[%s224_s1] sm:$0xff]  ;;  %v17_v1 = vld [vmem:[%s224_s1 + $0x8] sm:$0xff]  ;;  %v18_v2 = vld [vmem:[%s224_s1 + $0x10] sm:$0xff]  ;;  %135 = vmatprep.subr.bf16.mxu0 %v169_v3  ;;  %132 = vmatprep.mubr.msk.f32.mxu0 %vm170_vm0, %v171_v6 }
   0x2   :  { %v136_v4 = vpack.c.bf16 %v17_v1, %v16_v0  ;;  %v19_v5 = vld [vmem:[%s224_s1 + $0x18] sm:$0xff] }
   0x3   :  { %8 = vsyncpa [#allocation3], 0  ;;  %v139_v7 = vpack.c.bf16 %v19_v5, %v18_v2  ;;  %v15_v8 = vld [vmem:[%s223_s0] sm:$0x3]  ;;  %vm27_vm1 = vcmask 261120   ;;  %s172_s24 = smov [#allocation2]  }
   0x4   :  { %137 = vmatpush3.bf16.msra.mxu0 %v136_v4  ;;  %v117_v9 = vld [vmem:[%s225_s2] ss:$0 sm:$0xff]  ;;  %s109_s1 = sshll.u32 %s172_s24, 4  ;;  %vm101_vm2 = vcmask 74752   ;;  %s110_s1 = int_to_ptr.vmem [resolvable:$true] %s109_s1 }
   0x5   :  { %138 = vmatprep.subr.bf16.mxu0 %v169_v3  ;;  %s145_s25 = scalar_lea.vmem %s110_s1, 32  ;;  %p150_p1 = scmp.lt.s32.totalorder %s110_s1, %s110_s1 }
   0x6   :  { %p146_p0 = scmp.ne.s32.totalorder %s110_s1, %s145_s25  ;;  %p151_p2 = scmp.lt.s32.totalorder %s145_s25, %s145_s25 }
   0x8   :  { %140 = vmatpush3.bf16.msra.mxu0 %v139_v7  ;;  %p152_p3 = por %p151_p2, %p150_p1 }
   0xa   :  { %p153_p4 = pnand %p152_p3, %p146_p0 }
   0xb   :  { %133 = vmatmul.mubr.msk.f32.vlgmr.msra.gmra.mrb[0].mxu0 %vm27_vm1, %v15_v8 }
  0xde   :  { %v97_v10 = vpop.f32.mrb[0].mxu0 }
  0xdf   :  { %v98_v11 = vadd.f32 %v117_v9, %v97_v10  ;;  %v134_v12 = vpop.f32.mrb[1].mxu0 }
  0xe1   :  { %102 = vst.msk [vmem:[#allocation2] sm:$0x3] %vm101_vm2, %v98_v11 }
  0xe2   :  { %156 = shalt.err (!%p153_p4)
}
  0xe3   :  { %s157_s27 = scalar_lea.hbm %s226_s3, 32 }
  0xe4   :  { %p158_p5 = scmp.ne.s32.totalorder %s226_s3, %s157_s27  ;;  %p161_p6 = scmp.lt.u32.totalorder %s157_s27, %s226_s3 }
  0xe6   :  { %p163_p7 = pnand %p161_p6, %p158_p5 }
  0xe8   :  { %166 = shalt.err (!%p163_p7)
}
  0xe9   :  { %112 = dma.vmem_to_hbm [thread:$0]  %s110_s1, 32, %s226_s3, [#allocation3]  }
  0xea   :  { %167 = dma.done.wait [#allocation3], 32  }
  0xeb   :  { %168 = vsyncadd [#allocation3], 4294967264 }
  0xec   :  { %116 = vsyncpa [#allocation3], 1 }

// kernel: mixformer_forward_pallas.32
= control target key start
LH: loop header
LB: loop body
LE: loop exit
PB: predicated region body
PF: predicated region fallthrough
CT: control target
= control target key end

     0   :  { %v188_v0 = vmov 0.0|0.0   ;;  %vm189_vm0 = vmmov 0   ;;  %v190_v4 = vmov 0.0   ;;  %vm34_vm1 = vcmask 785408   ;;  %s256_s1 = inlined_call_operand.vmem [shape: f32[96,32], index: 1, kind: input, shape index: {}]   ;;  %s257_s0 = inlined_call_operand.vmem [shape: f32[2,96], index: 0, kind: input, shape index: {}]   ;;  %s258_s2 = inlined_call_operand.vmem [shape: f32[1,32], index: 2, kind: input, shape index: {}]   ;;  %s259_s3 = inlined_call_operand.vmem [shape: f32[2,32], index: 3, kind: output, shape index: {}]  }
   0x1   :  { %165 = vmatprep.subr.bf16.mxu0 %v188_v0  ;;  %v15_v1 = vld [vmem:[%s256_s1] sm:$0xff]  ;;  %v16_v2 = vld [vmem:[%s256_s1 + $0x8] sm:$0xff]  ;;  %v17_v3 = vld [vmem:[%s256_s1 + $0x10] sm:$0xff]  ;;  %162 = vmatprep.mubr.msk.f32.mxu0 %vm189_vm0, %v190_v4  ;;  %vm117_vm2 = vcmask 254976  }
   0x2   :  { %v166_v5 = vpack.c.bf16 %v16_v2, %v15_v1  ;;  %v18_v6 = vld [vmem:[%s256_s1 + $0x18] sm:$0xff]  ;;  %v19_v8 = vld [vmem:[%s256_s1 + $0x20] sm:$0xff]  ;;  %v20_v9 = vld [vmem:[%s256_s1 + $0x28] sm:$0xff] }
   0x3   :  { %v169_v7 = vpack.c.bf16 %v18_v6, %v17_v3  ;;  %v172_v10 = vpack.c.bf16 %v20_v9, %v19_v8  ;;  %v21_v11 = vld [vmem:[%s256_s1 + $0x30] sm:$0xff]  ;;  %v22_v12 = vld [vmem:[%s256_s1 + $0x38] sm:$0xff]  ;;  %v23_v14 = vld [vmem:[%s256_s1 + $0x40] sm:$0xff] }
   0x4   :  { %167 = vmatpush3.bf16.msra.mxu0 %v166_v5  ;;  %v175_v13 = vpack.c.bf16 %v22_v12, %v21_v11  ;;  %v24_v15 = vld [vmem:[%s256_s1 + $0x48] sm:$0xff]  ;;  %v25_v17 = vld [vmem:[%s256_s1 + $0x50] sm:$0xff]  ;;  %v26_v18 = vld [vmem:[%s256_s1 + $0x58] sm:$0xff] }
   0x5   :  { %168 = vmatprep.subr.bf16.mxu0 %v188_v0  ;;  %v178_v16 = vpack.c.bf16 %v24_v15, %v23_v14  ;;  %v181_v19 = vpack.c.bf16 %v26_v18, %v25_v17  ;;  %v14_v20 = vld [vmem:[%s257_s0] sm:$0x3] }
   0x6   :  { %v123_v21 = vld [vmem:[%s258_s2] ss:$0 sm:$0xff] }
   0x8   :  { %170 = vmatpush3.bf16.msra.mxu0 %v169_v7 }
   0x9   :  { %171 = vmatprep.subr.bf16.mxu0 %v188_v0 }
   0xc   :  { %173 = vmatpush3.bf16.msra.mxu0 %v172_v10 }
   0xd   :  { %174 = vmatprep.subr.bf16.mxu0 %v188_v0 }
  0x10   :  { %176 = vmatpush3.bf16.msra.mxu0 %v175_v13 }
  0x11   :  { %177 = vmatprep.subr.bf16.mxu0 %v188_v0 }
  0x14   :  { %179 = vmatpush3.bf16.msra.mxu0 %v178_v16 }
  0x15   :  { %180 = vmatprep.subr.bf16.mxu0 %v188_v0 }
  0x18   :  { %182 = vmatpush3.bf16.msra.mxu0 %v181_v19 }
  0x1b   :  { %163 = vmatmul.mubr.msk.f32.vlgmr.msra.gmra.mrb[0].mxu0 %vm34_vm1, %v14_v20 }
  0xee   :  { %v104_v22 = vpop.f32.mrb[0].mxu0 }
  0xef   :  { %v105_v23 = vadd.f32 %v123_v21, %v104_v22  ;;  %v164_v24 = vpop.f32.mrb[1].mxu0 }
  0xf1   :  { %v109_v25 = vmul.f32 %v105_v23, %v105_v23  ;;  %v108_v31 = vmul.f32 0.5, %v105_v23 }
  0xf3   :  { %v110_v26 = vmul.f32 %v109_v25, %v105_v23 }
  0xf5   :  { %v111_v27 = vmul.f32 0.044715, %v110_v26 }
  0xf7   :  { %v112_v28 = vadd.f32 %v111_v27, %v105_v23 }
  0xf9   :  { %v113_v29 = vmul.f32 0.7978846, %v112_v28 }
  0xfb   :  { %186 = vtanh.f32 %v113_v29 }
 0x105   :  { %v187_v30 = vpop.eup %186 }
 0x106   :  { %v115_v32 = vadd.f32 1.0, %v187_v30 }
 0x108   :  { %v116_v33 = vmul.f32 %v115_v32, %v108_v31 }
 0x10a   :  { %118 = vst.msk [vmem:[%s259_s3] sm:$0x3] %vm117_vm2, %v116_v33 }

// kernel: mixformer_forward_pallas.31
= control target key start
LH: loop header
LB: loop body
LE: loop exit
PB: predicated region body
PF: predicated region fallthrough
CT: control target
= control target key end

     0   :  { %s1295_s12 = smov 0   ;;  %s1722_s0 = inlined_call_operand.vmem [shape: f32[2,128,7], index: 0, kind: input, shape index: {}]   ;;  %s1723_s1 = inlined_call_operand.vmem [shape: f32[96,512], index: 1, kind: input, shape index: {}]   ;;  %s1724_s2 = inlined_call_operand.vmem [shape: f32[96,1], index: 2, kind: input, shape index: {}]   ;;  %s1725_s3 = inlined_call_operand.vmem [shape: f32[2,96,4], index: 3, kind: output, shape index: {}]  }
   0x1 LB: > { %s893_s13 = sadd.s32 4294967295, %s1269_s12   ;;  %p897_p0 = scmp.ge.s32.totalorder %s1269_s12, 1  ;;  %s1269_s12 = sphi %s1295_s12, %s13_s12  }
   0x2   : > { %p137_p1 = scmp.lt.s32.totalorder %s1269_s12, 3 }
   0x4   : > { %p138_p2 = pnand %p897_p0, %p137_p1 }
   0x5   : > { %p161_p3 = scmp.lt.s32.totalorder (!%p138_p2), %s893_s13, 1  ;;  %s1271_s18 = smov (!%p138_p2), 126   ;;  %v172_v31 = vld [vmem:[%s1723_s1 + $0x8] sm:$0xff] (!%p138_p2)  ;;  %v174_v33 = vld [vmem:[%s1723_s1 + $0x18] sm:$0xff] (!%p138_p2)  ;;  %v219_v34 = vld [vmem:[%s1724_s2] sm:$0xff] (!%p138_p2)  ;;  %v1274_v36 = vmov (!%p138_p2), 0  }
   0x6   : > { %141 = sbr.rel (%p138_p2) target bundleno = 473 (0x1d9), region = 32  ;;  %s1272_s19 = smov (!%p138_p2), 127   ;;  %531 = vmatprep.mubr.f32.mxu0 (!%p138_p2), %v172_v31  ;;  %656 = vmatprep.mubr.f32.mxu1 (!%p138_p2), %v174_v33  ;;  %v220_v35 = vld [vmem:[%s1724_s2 + $0x8] sm:$0xff] (!%p138_p2)  ;;  %v221_v37 = vld [vmem:[%s1724_s2 + $0x10] sm:$0xff] (!%p138_p2)  ;;  %v222_v38 = vld [vmem:[%s1724_s2 + $0x18] sm:$0xff] (!%p138_p2)  ;;  %vm825_vm0 = vcmask (!%p138_p2), 31744  }
   0x7   : > { %s1273_s20 = smov (!%p138_p2), 125   ;;  %1237 = vset.pattern.permute.xlu0 (!%p138_p2), %v1274_v36  ;;  %1238 = vset.pattern.permute.xlu1 (!%p138_p2), %v1274_v36  ;;  %v223_v39 = vld [vmem:[%s1724_s2 + $0x20] sm:$0xff] (!%p138_p2)  ;;  %v224_v40 = vld [vmem:[%s1724_s2 + $0x28] sm:$0xff] (!%p138_p2)  ;;  %v225_v41 = vld [vmem:[%s1724_s2 + $0x30] sm:$0xff] (!%p138_p2) }
   0x8   : > { %v226_v42 = vld [vmem:[%s1724_s2 + $0x38] sm:$0xff] (!%p138_p2)  ;;  %v227_v43 = vld [vmem:[%s1724_s2 + $0x40] sm:$0xff] (!%p138_p2)  ;;  %v228_v44 = vld [vmem:[%s1724_s2 + $0x48] sm:$0xff] (!%p138_p2) }
   0x9   : > { %v229_v45 = vld [vmem:[%s1724_s2 + $0x50] sm:$0xff] (!%p138_p2)  ;;  %v230_v46 = vld [vmem:[%s1724_s2 + $0x58] sm:$0xff] (!%p138_p2) }
   0xd   : > { %s1727_s13 = smov (!%p161_p3, %s893_s13), 1 }
   0xe   : > { %s903_s14 = sshll.u32 %s1727_s13, 7  ;;  %s1104_s16 = smul.u32 96, %s1727_s13 }
   0xf   : > { %s1309_s17 = scalar_lea.vmem %s1722_s0, %s903_s14 }
  0x10   : > { %v1312_v0 = vld [vmem:[%s1309_s17] sm:$0xff]  ;;  %v1315_v1 = vld [vmem:[%s1309_s17 + $0x8] sm:$0xff]  ;;  %v1318_v2 = vld [vmem:[%s1309_s17 + $0x10] sm:$0xff] }
  0x11   : > { %v1127_v3 = vpack.i.bf16 %v1315_v1, %v1312_v0  ;;  %v1323_v4 = vld [vmem:[%s1309_s17 + $0x18] sm:$0xff]  ;;  %v1042_v5 = vpack.c.bf16 %v1315_v1, %v1312_v0  ;;  %v1334_v7 = vld [vmem:[%s1309_s17 + $0x20] sm:$0xff]  ;;  %v1337_v8 = vld [vmem:[%s1309_s17 + $0x28] sm:$0xff] }
  0x12   : > { %v1132_v6 = vpack.i.bf16 %v1323_v4, %v1318_v2  ;;  %v1046_v9 = vpack.c.bf16 %v1323_v4, %v1318_v2  ;;  %v1050_v10 = vpack.c.bf16 %v1337_v8, %v1334_v7  ;;  %v1152_v11 = vpack.i.bf16 %v1337_v8, %v1334_v7  ;;  %v1348_v12 = vld [vmem:[%s1309_s17 + $0x30] sm:$0xff]  ;;  %v1351_v13 = vld [vmem:[%s1309_s17 + $0x38] sm:$0xff]  ;;  %v1362_v16 = vld [vmem:[%s1309_s17 + $0x40] sm:$0xff] }
  0x13   : > { %1128 = vrot.lane.b32.xlu1 %v1127_v3, %s1271_s18  ;;  %1118 = vrot.lane.b32.xlu0 %v1127_v3, %s1272_s19  ;;  %v1162_v14 = vpack.i.bf16 %v1351_v13, %v1348_v12  ;;  %v1054_v15 = vpack.c.bf16 %v1351_v13, %v1348_v12  ;;  %v1365_v17 = vld [vmem:[%s1309_s17 + $0x48] sm:$0xff]  ;;  %v1374_v20 = vld [vmem:[%s1309_s17 + $0x50] sm:$0xff] }
  0x14   : > { %v1058_v18 = vpack.c.bf16 %v1365_v17, %v1362_v16  ;;  %v1182_v19 = vpack.i.bf16 %v1365_v17, %v1362_v16  ;;  %v1377_v21 = vld [vmem:[%s1309_s17 + $0x58] sm:$0xff]  ;;  %v1386_v24 = vld [vmem:[%s1309_s17 + $0x60] sm:$0xff]  ;;  %v1389_v25 = vld [vmem:[%s1309_s17 + $0x68] sm:$0xff] }
  0x15   : > { %v1062_v22 = vpack.c.bf16 %v1377_v21, %v1374_v20  ;;  %v1192_v23 = vpack.i.bf16 %v1377_v21, %v1374_v20  ;;  %v1066_v26 = vpack.c.bf16 %v1389_v25, %v1386_v24  ;;  %v1396_v27 = vld [vmem:[%s1309_s17 + $0x70] sm:$0xff]  ;;  %v1399_v28 = vld [vmem:[%s1309_s17 + $0x78] sm:$0xff]  ;;  %v1212_v30 = vpack.i.bf16 %v1389_v25, %v1386_v24 }
  0x16   : > { %v1070_v29 = vpack.c.bf16 %v1399_v28, %v1396_v27  ;;  %v1222_v32 = vpack.i.bf16 %v1399_v28, %v1396_v27  ;;  %v173_v27 = vld [vmem:[%s1723_s1 + $0x10] sm:$0xff]  ;;  %v180_v28 = vld [vmem:[%s1723_s1 + $0x48] sm:$0xff] }
  0x17   : > { %1133 = vrot.lane.b32.xlu1 %v1132_v6, %s1272_s19  ;;  %1123 = vrot.lane.b32.xlu0 %v1127_v3, %s1273_s20 }
  0x1b   : > { %1143 = vrot.lane.b32.xlu1 %v1132_v6, %s1271_s18  ;;  %1138 = vrot.lane.b32.xlu0 %v1132_v6, %s1273_s20 }
  0x1f   : > { %1153 = vrot.lane.b32.xlu1 %v1152_v11, %s1273_s20  ;;  %1148 = vrot.lane.b32.xlu0 %v1152_v11, %s1272_s19 }
  0x23   : > { %1163 = vrot.lane.b32.xlu1 %v1162_v14, %s1272_s19  ;;  %1158 = vrot.lane.b32.xlu0 %v1152_v11, %s1271_s18 }
  0x27   : > { %1173 = vrot.lane.b32.xlu1 %v1162_v14, %s1271_s18  ;;  %1168 = vrot.lane.b32.xlu0 %v1162_v14, %s1273_s20 }
  0x2b   : > { %1183 = vrot.lane.b32.xlu1 %v1182_v19, %s1273_s20  ;;  %1178 = vrot.lane.b32.xlu0 %v1182_v19, %s1272_s19 }
  0x2f   : > { %1193 = vrot.lane.b32.xlu1 %v1192_v23, %s1272_s19  ;;  %1188 = vrot.lane.b32.xlu0 %v1182_v19, %s1271_s18 }
  0x33   : > { %1203 = vrot.lane.b32.xlu1 %v1192_v23, %s1271_s18  ;;  %1198 = vrot.lane.b32.xlu0 %v1192_v23, %s1273_s20 }
  0x37   : > { %1213 = vrot.lane.b32.xlu1 %v1212_v30, %s1273_s20  ;;  %1208 = vrot.lane.b32.xlu0 %v1212_v30, %s1272_s19 }
  0x3b   : > { %1223 = vrot.lane.b32.xlu1 %v1222_v32, %s1272_s19  ;;  %1218 = vrot.lane.b32.xlu0 %v1212_v30, %s1271_s18 }
  0x3f   : > { %1228 = vrot.lane.b32.xlu0 %v1222_v32, %s1273_s20  ;;  %1233 = vrot.lane.b32.xlu1 %v1222_v32, %s1271_s18  ;;  %s1657_s18 = scalar_lea.vmem %s1725_s3, %s1104_s16 }
  0x43   : > { %233 = vperm.xlu0 %1237, %v219_v34   ;;  %238 = vperm.xlu1 %1238, %v220_v35  }
  0x47   : > { %243 = vperm.xlu1 %1238, %v221_v37   ;;  %248 = vperm.xlu0 %1237, %v222_v38  }
  0x4b   : > { %253 = vperm.xlu1 %1238, %v223_v39   ;;  %258 = vperm.xlu0 %1237, %v224_v40  }
  0x4f   : > { %263 = vperm.xlu1 %1238, %v225_v41   ;;  %268 = vperm.xlu0 %1237, %v226_v42  }
  0x53   : > { %273 = vperm.xlu1 %1238, %v227_v43   ;;  %278 = vperm.xlu0 %1237, %v228_v44  }
  0x57   : > { %283 = vperm.xlu1 %1238, %v229_v45   ;;  %288 = vperm.xlu0 %1237, %v230_v46  }
  0x85   : > { %v1129_v47 = vpop.permute.xlu1 %1128  ;;  %v1119_v48 = vpop.permute.xlu0 %1118 }
  0x86   : > { %v1121_v49 = vunpack.i.h.bf16 %v1119_v48  ;;  %v1120_v50 = vunpack.i.l.bf16 %v1119_v48  ;;  %v1131_v52 = vunpack.i.h.bf16 %v1129_v47  ;;  %v1130_v53 = vunpack.i.l.bf16 %v1129_v47 }
  0x88   : > { %v1040_v51 = vpack.c.bf16 %v1121_v49, %v1120_v50  ;;  %v1074_v3 = vpack.c.bf16 %v1131_v52, %v1130_v53 }
  0x89   : > { %v1134_v54 = vpop.permute.xlu1 %1133  ;;  %v1124_v55 = vpop.permute.xlu0 %1123 }
  0x8a   : > { %v1136_v56 = vunpack.i.h.bf16 %v1134_v54  ;;  %v1135_v57 = vunpack.i.l.bf16 %v1134_v54  ;;  %v1126_v58 = vunpack.i.h.bf16 %v1124_v55  ;;  %v1125_v59 = vunpack.i.l.bf16 %v1124_v55  ;;  %1041 = vmatprep.subr.bf16.mxu0 %v1040_v51 }
  0x8b   : > { %1043 = vmatpush3.bf16.msra.mxu0 %v1042_v5 }
  0x8c   : > { %v1044_v60 = vpack.c.bf16 %v1136_v56, %v1135_v57  ;;  %v1072_v61 = vpack.c.bf16 %v1126_v58, %v1125_v59 }
  0x8d   : > { %v1144_v62 = vpop.permute.xlu1 %1143  ;;  %v1139_v63 = vpop.permute.xlu0 %1138 }
  0x8e   : > { %v1146_v6 = vunpack.i.h.bf16 %v1144_v62  ;;  %v1145_v11 = vunpack.i.l.bf16 %v1144_v62  ;;  %v1141_v14 = vunpack.i.h.bf16 %v1139_v63  ;;  %v1140_v19 = vunpack.i.l.bf16 %v1139_v63  ;;  %1073 = vmatprep.subr.bf16.mxu1 %v1072_v61  ;;  %1045 = vmatprep.subr.bf16.mxu0 %v1044_v60 }
  0x8f   : > { %1075 = vmatpush3.bf16.msra.mxu1 %v1074_v3  ;;  %1047 = vmatpush3.bf16.msra.mxu0 %v1046_v9 }
  0x90   : > { %v1078_v23 = vpack.c.bf16 %v1146_v6, %v1145_v11  ;;  %v1076_v30 = vpack.c.bf16 %v1141_v14, %v1140_v19 }
  0x91   : > { %v1154_v0 = vpop.permute.xlu1 %1153  ;;  %v1149_v1 = vpop.permute.xlu0 %1148 }
  0x92   : > { %v1156_v5 = vunpack.i.h.bf16 %v1154_v0  ;;  %v1155_v31 = vunpack.i.l.bf16 %v1154_v0  ;;  %v1151_v32 = vunpack.i.h.bf16 %v1149_v1  ;;  %v1150_v33 = vunpack.i.l.bf16 %v1149_v1  ;;  %1077 = vmatprep.subr.bf16.mxu1 %v1076_v30 }
  0x93   : > { %1079 = vmatpush3.bf16.msra.mxu1 %v1078_v23 }
  0x94   : > { %v1080_v34 = vpack.c.bf16 %v1156_v5, %v1155_v31  ;;  %v1048_v35 = vpack.c.bf16 %v1151_v32, %v1150_v33 }
  0x95   : > { %v1164_v36 = vpop.permute.xlu1 %1163  ;;  %v1159_v37 = vpop.permute.xlu0 %1158 }
  0x96   : > { %v1166_v38 = vunpack.i.h.bf16 %v1164_v36  ;;  %v1165_v39 = vunpack.i.l.bf16 %v1164_v36  ;;  %v1161_v40 = vunpack.i.h.bf16 %v1159_v37  ;;  %v1160_v41 = vunpack.i.l.bf16 %v1159_v37  ;;  %1049 = vmatprep.subr.bf16.mxu0 %v1048_v35  ;;  %1081 = vmatprep.subr.bf16.mxu1 %v1080_v34 }
  0x97   : > { %1051 = vmatpush3.bf16.msra.mxu0 %v1050_v10 }
  0x98   : > { %v1052_v2 = vpack.c.bf16 %v1166_v38, %v1165_v39  ;;  %v1082_v4 = vpack.c.bf16 %v1161_v40, %v1160_v41  ;;  %v171_v40 = vld [vmem:[%s1723_s1] sm:$0xff] }
  0x99   : > { %v1174_v9 = vpop.permute.xlu1 %1173  ;;  %v1169_v42 = vpop.permute.xlu0 %1168  ;;  %v175_v41 = vld [vmem:[%s1723_s1 + $0x20] sm:$0xff] }
  0x9a   : > { %v1176_v43 = vunpack.i.h.bf16 %v1174_v9  ;;  %v1175_v44 = vunpack.i.l.bf16 %v1174_v9  ;;  %v1171_v45 = vunpack.i.h.bf16 %v1169_v42  ;;  %v1170_v46 = vunpack.i.l.bf16 %v1169_v42  ;;  %1083 = vmatpush3.bf16.msra.mxu1 %v1082_v4  ;;  %1053 = vmatprep.subr.bf16.mxu0 %v1052_v2  ;;  %v179_v2 = vld [vmem:[%s1723_s1 + $0x40] sm:$0xff]  ;;  %v177_v4 = vld [vmem:[%s1723_s1 + $0x30] sm:$0xff]  ;;  %v184_v9 = vld [vmem:[%s1723_s1 + $0x68] sm:$0xff] }
  0x9b   : > { %1055 = vmatpush3.bf16.msra.mxu0 %v1054_v15  ;;  %v182_v42 = vld [vmem:[%s1723_s1 + $0x58] sm:$0xff] }
  0x9c   : > { %v1086_v47 = vpack.c.bf16 %v1176_v43, %v1175_v44  ;;  %v1084_v48 = vpack.c.bf16 %v1171_v45, %v1170_v46  ;;  %v183_v43 = vld [vmem:[%s1723_s1 + $0x60] sm:$0xff]  ;;  %v181_v44 = vld [vmem:[%s1723_s1 + $0x50] sm:$0xff]  ;;  %v188_v45 = vld [vmem:[%s1723_s1 + $0x88] sm:$0xff] }
  0x9d   : > { %v1184_v49 = vpop.permute.xlu1 %1183  ;;  %v1179_v50 = vpop.permute.xlu0 %1178  ;;  %v186_v46 = vld [vmem:[%s1723_s1 + $0x78] sm:$0xff] }
  0x9e   : > { %v1186_v7 = vunpack.i.h.bf16 %v1184_v49  ;;  %v1185_v8 = vunpack.i.l.bf16 %v1184_v49  ;;  %v1181_v10 = vunpack.i.h.bf16 %v1179_v50  ;;  %v1180_v51 = vunpack.i.l.bf16 %v1179_v50  ;;  %1085 = vmatprep.subr.bf16.mxu1 %v1084_v48  ;;  %v185_v48 = vld [vmem:[%s1723_s1 + $0x70] sm:$0xff]  ;;  %v192_v49 = vld [vmem:[%s1723_s1 + $0xa8] sm:$0xff]  ;;  %v190_v50 = vld [vmem:[%s1723_s1 + $0x98] sm:$0xff] }
  0x9f   : > { %1087 = vmatpush3.bf16.msra.mxu1 %v1086_v47  ;;  %v187_v47 = vld [vmem:[%s1723_s1 + $0x80] sm:$0xff] }
  0xa0   : > { %v1088_v52 = vpack.c.bf16 %v1186_v7, %v1185_v8  ;;  %v1056_v53 = vpack.c.bf16 %v1181_v10, %v1180_v51  ;;  %v191_v7 = vld [vmem:[%s1723_s1 + $0xa0] sm:$0xff]  ;;  %v189_v8 = vld [vmem:[%s1723_s1 + $0x90] sm:$0xff]  ;;  %v196_v10 = vld [vmem:[%s1723_s1 + $0xc8] sm:$0xff] }
  0xa1   : > { %v1194_v54 = vpop.permute.xlu1 %1193  ;;  %v1189_v55 = vpop.permute.xlu0 %1188  ;;  %v194_v51 = vld [vmem:[%s1723_s1 + $0xb8] sm:$0xff] }
  0xa2   : > { %v1196_v56 = vunpack.i.h.bf16 %v1194_v54  ;;  %v1195_v57 = vunpack.i.l.bf16 %v1194_v54  ;;  %v1191_v58 = vunpack.i.h.bf16 %v1189_v55  ;;  %v1190_v59 = vunpack.i.l.bf16 %v1189_v55  ;;  %1057 = vmatprep.subr.bf16.mxu0 %v1056_v53  ;;  %1089 = vmatprep.subr.bf16.mxu1 %v1088_v52  ;;  %v195_v52 = vld [vmem:[%s1723_s1 + $0xc0] sm:$0xff]  ;;  %v193_v53 = vld [vmem:[%s1723_s1 + $0xb0] sm:$0xff]  ;;  %v200_v54 = vld [vmem:[%s1723_s1 + $0xe8] sm:$0xff] }
  0xa3   : > { %1059 = vmatpush3.bf16.msra.mxu0 %v1058_v18  ;;  %v198_v55 = vld [vmem:[%s1723_s1 + $0xd8] sm:$0xff] }
  0xa4   : > { %v1060_v12 = vpack.c.bf16 %v1196_v56, %v1195_v57  ;;  %v1090_v13 = vpack.c.bf16 %v1191_v58, %v1190_v59  ;;  %v199_v56 = vld [vmem:[%s1723_s1 + $0xe0] sm:$0xff]  ;;  %v197_v57 = vld [vmem:[%s1723_s1 + $0xd0] sm:$0xff]  ;;  %v204_v58 = vld [vmem:[%s1723_s1 + $0x108] sm:$0xff] }
  0xa5   : > { %v1204_v15 = vpop.permute.xlu1 %1203  ;;  %v1199_v60 = vpop.permute.xlu0 %1198  ;;  %v202_v59 = vld [vmem:[%s1723_s1 + $0xf8] sm:$0xff] }
  0xa6   : > { %v1206_v61 = vunpack.i.h.bf16 %v1204_v15  ;;  %v1205_v62 = vunpack.i.l.bf16 %v1204_v15  ;;  %v1201_v63 = vunpack.i.h.bf16 %v1199_v60  ;;  %v1200_v3 = vunpack.i.l.bf16 %v1199_v60  ;;  %1091 = vmatpush3.bf16.msra.mxu1 %v1090_v13  ;;  %1061 = vmatprep.subr.bf16.mxu0 %v1060_v12  ;;  %v203_v12 = vld [vmem:[%s1723_s1 + $0x100] sm:$0xff]  ;;  %v201_v13 = vld [vmem:[%s1723_s1 + $0xf0] sm:$0xff]  ;;  %v208_v15 = vld [vmem:[%s1723_s1 + $0x128] sm:$0xff] }
  0xa7   : > { %1063 = vmatpush3.bf16.msra.mxu0 %v1062_v22  ;;  %v206_v60 = vld [vmem:[%s1723_s1 + $0x118] sm:$0xff] }
  0xa8   : > { %v1094_v6 = vpack.c.bf16 %v1206_v61, %v1205_v62  ;;  %v1092_v11 = vpack.c.bf16 %v1201_v63, %v1200_v3  ;;  %v207_v61 = vld [vmem:[%s1723_s1 + $0x120] sm:$0xff]  ;;  %v205_v62 = vld [vmem:[%s1723_s1 + $0x110] sm:$0xff]  ;;  %v212_v63 = vld [vmem:[%s1723_s1 + $0x148] sm:$0xff] }
  0xa9   : > { %v1214_v14 = vpop.permute.xlu1 %1213  ;;  %v1209_v19 = vpop.permute.xlu0 %1208  ;;  %v210_v3 = vld [vmem:[%s1723_s1 + $0x138] sm:$0xff] }
  0xaa   : > { %v1216_v16 = vunpack.i.h.bf16 %v1214_v14  ;;  %v1215_v17 = vunpack.i.l.bf16 %v1214_v14  ;;  %v1211_v18 = vunpack.i.h.bf16 %v1209_v19  ;;  %v1210_v23 = vunpack.i.l.bf16 %v1209_v19  ;;  %1093 = vmatprep.subr.bf16.mxu1 %v1092_v11  ;;  %v209_v11 = vld [vmem:[%s1723_s1 + $0x130] sm:$0xff]  ;;  %v216_v14 = vld [vmem:[%s1723_s1 + $0x168] sm:$0xff]  ;;  %v214_v19 = vld [vmem:[%s1723_s1 + $0x158] sm:$0xff] }
  0xab   : > { %1095 = vmatpush3.bf16.msra.mxu1 %v1094_v6  ;;  %v211_v6 = vld [vmem:[%s1723_s1 + $0x140] sm:$0xff] }
  0xac   : > { %v1096_v30 = vpack.c.bf16 %v1216_v16, %v1215_v17  ;;  %v1064_v0 = vpack.c.bf16 %v1211_v18, %v1210_v23  ;;  %v215_v16 = vld [vmem:[%s1723_s1 + $0x160] sm:$0xff]  ;;  %v213_v17 = vld [vmem:[%s1723_s1 + $0x150] sm:$0xff]  ;;  %v218_v18 = vld [vmem:[%s1723_s1 + $0x178] sm:$0xff] }
  0xad   : > { %v1224_v1 = vpop.permute.xlu1 %1223  ;;  %v1219_v5 = vpop.permute.xlu0 %1218  ;;  %v217_v23 = vld [vmem:[%s1723_s1 + $0x170] sm:$0xff] }
  0xae   : > { %v1226_v31 = vunpack.i.h.bf16 %v1224_v1  ;;  %v1225_v32 = vunpack.i.l.bf16 %v1224_v1  ;;  %v1221_v33 = vunpack.i.h.bf16 %v1219_v5  ;;  %v1220_v34 = vunpack.i.l.bf16 %v1219_v5  ;;  %1065 = vmatprep.subr.bf16.mxu0 %v1064_v0  ;;  %1097 = vmatprep.subr.bf16.mxu1 %v1096_v30 }
  0xaf   : > { %1067 = vmatpush3.bf16.msra.mxu0 %v1066_v26  ;;  %v176_v26 = vld [vmem:[%s1723_s1 + $0x28] sm:$0xff] }
  0xb0   : > { %v1068_v20 = vpack.c.bf16 %v1226_v31, %v1225_v32  ;;  %v1098_v21 = vpack.c.bf16 %v1221_v33, %v1220_v34 }
  0xb1   : > { %v1229_v22 = vpop.permute.xlu0 %1228  ;;  %v1234_v35 = vpop.permute.xlu1 %1233 }
  0xb2   : > { %v1231_v36 = vunpack.i.h.bf16 %v1229_v22  ;;  %v1230_v37 = vunpack.i.l.bf16 %v1229_v22  ;;  %v1236_v38 = vunpack.i.h.bf16 %v1234_v35  ;;  %v1235_v39 = vunpack.i.l.bf16 %v1234_v35  ;;  %1069 = vmatprep.subr.bf16.mxu0 %v1068_v20  ;;  %1099 = vmatpush3.bf16.msra.mxu1 %v1098_v21 }
  0xb3   : > { %1071 = vmatpush3.bf16.msra.mxu0 %v1070_v29  ;;  %v178_v29 = vld [vmem:[%s1723_s1 + $0x38] sm:$0xff] }
  0xb4   : > { %v1100_v24 = vpack.c.bf16 %v1231_v36, %v1230_v37  ;;  %v1102_v25 = vpack.c.bf16 %v1236_v38, %v1235_v39 }
  0xb6   : > { %532 = vmatmul.mubr.f32.vlgmr.msra.gmra.mrb[0].mxu0 %v171_v40  ;;  %1101 = vmatprep.subr.bf16.mxu1 %v1100_v24 }
  0xb7   : > { %1103 = vmatpush3.bf16.msra.mxu1 %v1102_v25  ;;  %536 = vmatprep.mubr.f32.mxu0 %v176_v26 }
  0xba   : > { %537 = vmatmul.mubr.f32.gmra.mrb[2].mxu0 %v175_v41  ;;  %657 = vmatmul.mubr.f32.vlgmr.msra.gmra.mrb[0].mxu1 %v173_v27 }
  0xbb   : > { %541 = vmatprep.mubr.f32.mxu0 %v180_v28  ;;  %661 = vmatprep.mubr.f32.mxu1 %v178_v29 }
  0xbe   : > { %542 = vmatmul.mubr.f32.gmra.mrb[4].mxu0 %v179_v2  ;;  %662 = vmatmul.mubr.f32.gmra.mrb[2].mxu1 %v177_v4 }
  0xbf   : > { %546 = vmatprep.mubr.f32.mxu0 %v184_v9  ;;  %666 = vmatprep.mubr.f32.mxu1 %v182_v42 }
  0xc2   : > { %547 = vmatmul.mubr.f32.gmra.mrb[6].mxu0 %v183_v43  ;;  %667 = vmatmul.mubr.f32.gmra.mrb[4].mxu1 %v181_v44  ;;  %v234_v0 = vpop.permute.xlu0 %233  ;;  %v239_v5 = vpop.permute.xlu1 %238 }
  0xc3   : > { %551 = vmatprep.mubr.f32.mxu0 %v188_v45  ;;  %671 = vmatprep.mubr.f32.mxu1 %v186_v46 }
  0xc6   : > { %552 = vmatmul.mubr.f32.gmra.mrb[8].mxu0 %v187_v47  ;;  %672 = vmatmul.mubr.f32.gmra.mrb[6].mxu1 %v185_v48  ;;  %v244_v36 = vpop.permute.xlu1 %243  ;;  %v249_v47 = vpop.permute.xlu0 %248 }
  0xc7   : > { %556 = vmatprep.mubr.f32.mxu0 %v192_v49  ;;  %676 = vmatprep.mubr.f32.mxu1 %v190_v50 }
  0xca   : > { %557 = vmatmul.mubr.f32.gmra.mrb[10].mxu0 %v191_v7  ;;  %677 = vmatmul.mubr.f32.gmra.mrb[8].mxu1 %v189_v8 }
  0xcb   : > { %561 = vmatprep.mubr.f32.mxu0 %v196_v10  ;;  %681 = vmatprep.mubr.f32.mxu1 %v194_v51 }
  0xce   : > { %562 = vmatmul.mubr.f32.gmra.mrb[12].mxu0 %v195_v52  ;;  %682 = vmatmul.mubr.f32.gmra.mrb[10].mxu1 %v193_v53 }
  0xcf   : > { %566 = vmatprep.mubr.f32.mxu0 %v200_v54  ;;  %686 = vmatprep.mubr.f32.mxu1 %v198_v55 }
  0xd2   : > { %567 = vmatmul.mubr.f32.gmra.mrb[14].mxu0 %v199_v56  ;;  %687 = vmatmul.mubr.f32.gmra.mrb[12].mxu1 %v197_v57  ;;  %v254_v57 = vpop.permute.xlu1 %253 }
  0xd3   : > { %571 = vmatprep.mubr.f32.mxu0 %v204_v58  ;;  %691 = vmatprep.mubr.f32.mxu1 %v202_v59 }
  0xd6   : > { %572 = vmatmul.mubr.f32.gmra.mrb[16].mxu0 %v203_v12  ;;  %692 = vmatmul.mubr.f32.gmra.mrb[14].mxu1 %v201_v13 }
  0xd7   : > { %576 = vmatprep.mubr.f32.mxu0 %v208_v15  ;;  %696 = vmatprep.mubr.f32.mxu1 %v206_v60 }
  0xda   : > { %577 = vmatmul.mubr.f32.gmra.mrb[18].mxu0 %v207_v61  ;;  %697 = vmatmul.mubr.f32.gmra.mrb[16].mxu1 %v205_v62 }
  0xdb   : > { %581 = vmatprep.mubr.f32.mxu0 %v212_v63  ;;  %701 = vmatprep.mubr.f32.mxu1 %v210_v3 }
  0xde   : > { %582 = vmatmul.mubr.f32.gmra.mrb[20].mxu0 %v211_v6  ;;  %702 = vmatmul.mubr.f32.gmra.mrb[18].mxu1 %v209_v11 }
  0xdf   : > { %586 = vmatprep.mubr.f32.mxu0 %v216_v14  ;;  %706 = vmatprep.mubr.f32.mxu1 %v214_v19 }
  0xe2   : > { %587 = vmatmul.mubr.f32.gmra.mrb[22].mxu0 %v215_v16  ;;  %707 = vmatmul.mubr.f32.gmra.mrb[20].mxu1 %v213_v17  ;;  %v259_v16 = vpop.permute.xlu0 %258 }
  0xe3   : > { %711 = vmatprep.mubr.f32.mxu1 %v218_v18 }
  0xe6   : > { %712 = vmatmul.mubr.f32.gmra.mrb[22].mxu1 %v217_v23 }
 0x189   : > { %v936_v30 = vpop.f32.mrb[0].mxu0 }
 0x18a   : > { %v937_v1 = vpop.f32.mrb[1].mxu0 }
 0x18b   : > { %v938_v31 = vadd.f32 %v937_v1, %v936_v30 }
 0x18d   : > { %v534_v32 = vadd.f32 %v938_v31, %v234_v0  ;;  %v1004_v33 = vpop.f32.mrb[0].mxu1  ;;  %v939_v34 = vpop.f32.mrb[2].mxu0 }
 0x18e   : > { %v1005_v20 = vpop.f32.mrb[1].mxu1  ;;  %v940_v21 = vpop.f32.mrb[3].mxu0 }
 0x18f   : > { %v1006_v22 = vadd.f32 %v1005_v20, %v1004_v33  ;;  %v941_v35 = vadd.f32 %v940_v21, %v939_v34 }
 0x191   : > { %v1619_v37 = vadd.f32 %v1006_v22, %v534_v32  ;;  %v539_v38 = vadd.f32 %v941_v35, %v239_v5  ;;  %v1007_v39 = vpop.f32.mrb[2].mxu1  ;;  %v942_v40 = vpop.f32.mrb[4].mxu0 }
 0x192   : > { %v1008_v24 = vpop.f32.mrb[3].mxu1  ;;  %v943_v25 = vpop.f32.mrb[5].mxu0 }
 0x193   : > { %v729_v26 = vmul.f32 %v1619_v37, %v1619_v37  ;;  %v1009_v41 = vadd.f32 %v1008_v24, %v1007_v39  ;;  %v944_v27 = vadd.f32 %v943_v25, %v942_v40  ;;  %v264_v22 = vpop.permute.xlu1 %263 }
 0x195   : > { %v741_v28 = vmul.f32 %v729_v26, %v1619_v37  ;;  %v1624_v29 = vadd.f32 %v1009_v41, %v539_v38  ;;  %v544_v2 = vadd.f32 %v944_v27, %v244_v36  ;;  %v1010_v4 = vpop.f32.mrb[4].mxu1  ;;  %v945_v9 = vpop.f32.mrb[6].mxu0 }
 0x196   : > { %v1011_v42 = vpop.f32.mrb[5].mxu1  ;;  %v946_v43 = vpop.f32.mrb[7].mxu0 }
 0x197   : > { %v753_v44 = vmul.f32 0.044715, %v741_v28  ;;  %v730_v45 = vmul.f32 %v1624_v29, %v1624_v29  ;;  %v1012_v46 = vadd.f32 %v1011_v42, %v1010_v4  ;;  %v947_v48 = vadd.f32 %v946_v43, %v945_v9 }
 0x198   : > { %v717_v9 = vmul.f32 0.5, %v1619_v37 }
 0x199   : > { %v765_v49 = vadd.f32 %v753_v44, %v1619_v37  ;;  %v742_v50 = vmul.f32 %v730_v45, %v1624_v29  ;;  %v1630_v7 = vadd.f32 %v1012_v46, %v544_v2  ;;  %v1013_v8 = vpop.f32.mrb[6].mxu1  ;;  %v948_v10 = vpop.f32.mrb[8].mxu0  ;;  %v549_v51 = vadd.f32 %v947_v48, %v249_v47 }
 0x19a   : > { %v1014_v52 = vpop.f32.mrb[7].mxu1  ;;  %v949_v53 = vpop.f32.mrb[9].mxu0 }
 0x19b   : > { %v777_v54 = vmul.f32 0.7978846, %v765_v49  ;;  %v754_v55 = vmul.f32 0.044715, %v742_v50  ;;  %v731_v56 = vmul.f32 %v1630_v7, %v1630_v7  ;;  %v1015_v58 = vadd.f32 %v1014_v52, %v1013_v8  ;;  %v269_v44 = vpop.permute.xlu0 %268 }
 0x19c   : > { %v950_v59 = vadd.f32 %v949_v53, %v948_v10 }
 0x19d   : > { %1239 = vtanh.f32 %v777_v54  ;;  %v766_v12 = vadd.f32 %v754_v55, %v1624_v29  ;;  %v743_v13 = vmul.f32 %v731_v56, %v1630_v7  ;;  %v1016_v15 = vpop.f32.mrb[8].mxu1  ;;  %v951_v60 = vpop.f32.mrb[10].mxu0  ;;  %v1636_v61 = vadd.f32 %v1015_v58, %v549_v51 }
 0x19e   : > { %v554_v62 = vadd.f32 %v950_v59, %v254_v57  ;;  %v1017_v63 = vpop.f32.mrb[9].mxu1  ;;  %v952_v3 = vpop.f32.mrb[11].mxu0  ;;  %v718_v57 = vmul.f32 0.5, %v1624_v29  ;;  %v719_v29 = vmul.f32 0.5, %v1630_v7 }
 0x19f   : > { %v778_v6 = vmul.f32 0.7978846, %v766_v12  ;;  %v755_v11 = vmul.f32 0.044715, %v743_v13  ;;  %v1018_v14 = vadd.f32 %v1017_v63, %v1016_v15  ;;  %v953_v19 = vadd.f32 %v952_v3, %v951_v60  ;;  %v274_v59 = vpop.permute.xlu1 %273 }
 0x1a0   : > { %v732_v17 = vmul.f32 %v1636_v61, %v1636_v61 }
 0x1a1   : > { %1241 = vtanh.f32 %v778_v6  ;;  %v767_v18 = vadd.f32 %v755_v11, %v1630_v7  ;;  %v1641_v23 = vadd.f32 %v1018_v14, %v554_v62  ;;  %v559_v30 = vadd.f32 %v953_v19, %v259_v16  ;;  %v1019_v0 = vpop.f32.mrb[10].mxu1  ;;  %v954_v1 = vpop.f32.mrb[12].mxu0 }
 0x1a2   : > { %v744_v5 = vmul.f32 %v732_v17, %v1636_v61  ;;  %v1020_v31 = vpop.f32.mrb[11].mxu1  ;;  %v955_v32 = vpop.f32.mrb[13].mxu0 }
 0x1a3   : > { %v779_v33 = vmul.f32 0.7978846, %v767_v18  ;;  %v733_v34 = vmul.f32 %v1641_v23, %v1641_v23  ;;  %v1021_v20 = vadd.f32 %v1020_v31, %v1019_v0  ;;  %v956_v35 = vadd.f32 %v955_v32, %v954_v1 }
 0x1a4   : > { %v756_v21 = vmul.f32 0.044715, %v744_v5 }
 0x1a5   : > { %1243 = vtanh.f32 %v779_v33  ;;  %v745_v36 = vmul.f32 %v733_v34, %v1641_v23  ;;  %v1648_v38 = vadd.f32 %v1021_v20, %v559_v30  ;;  %v957_v39 = vpop.f32.mrb[14].mxu0  ;;  %v1022_v40 = vpop.f32.mrb[12].mxu1  ;;  %v564_v25 = vadd.f32 %v956_v35, %v264_v22 }
 0x1a6   : > { %v768_v24 = vadd.f32 %v756_v21, %v1636_v61  ;;  %v958_v26 = vpop.f32.mrb[15].mxu0  ;;  %v1023_v41 = vpop.f32.mrb[13].mxu1 }
 0x1a7   : > { %v1240_v27 = vpop.eup %1239  ;;  %v757_v28 = vmul.f32 0.044715, %v745_v36  ;;  %v734_v2 = vmul.f32 %v1648_v38, %v1648_v38  ;;  %v959_v4 = vadd.f32 %v958_v26, %v957_v39  ;;  %v1024_v45 = vadd.f32 %v1023_v41, %v1022_v40  ;;  %v279_v30 = vpop.permute.xlu0 %278 }
 0x1a8   : > { %v801_v42 = vadd.f32 1.0, %v1240_v27  ;;  %v780_v43 = vmul.f32 0.7978846, %v768_v24  ;;  %v720_v27 = vmul.f32 0.5, %v1636_v61 }
 0x1a9   : > { %v769_v46 = vadd.f32 %v757_v28, %v1641_v23  ;;  %v746_v47 = vmul.f32 %v734_v2, %v1648_v38  ;;  %v960_v48 = vpop.f32.mrb[16].mxu0  ;;  %v1025_v49 = vpop.f32.mrb[14].mxu1  ;;  %v569_v37 = vadd.f32 %v959_v4, %v269_v44  ;;  %v1661_v8 = vadd.f32 %v1024_v45, %v564_v25 }
 0x1aa   : > { %v813_v50 = vmul.f32 %v801_v42, %v717_v9  ;;  %1245 = vtanh.f32 %v780_v43  ;;  %v961_v10 = vpop.f32.mrb[17].mxu0  ;;  %v1026_v51 = vpop.f32.mrb[15].mxu1  ;;  %v721_v43 = vmul.f32 0.5, %v1641_v23 }
 0x1ab   : > { %v1242_v52 = vpop.eup %1241  ;;  %v781_v53 = vmul.f32 0.7978846, %v769_v46  ;;  %v758_v54 = vmul.f32 0.044715, %v746_v47  ;;  %v962_v55 = vadd.f32 %v961_v10, %v960_v48  ;;  %v1027_v56 = vadd.f32 %v1026_v51, %v1025_v49  ;;  %v284_v25 = vpop.permute.xlu1 %283 }
 0x1ac   : > { %826 = vst.msk [vmem:[%s1657_s18] sm:$0xff] %vm825_vm0, %v813_v50  ;;  %v802_v58 = vadd.f32 1.0, %v1242_v52  ;;  %v735_v12 = vmul.f32 %v1661_v8, %v1661_v8 }
 0x1ad   : > { %1247 = vtanh.f32 %v781_v53  ;;  %v770_v13 = vadd.f32 %v758_v54, %v1648_v38  ;;  %v1669_v15 = vadd.f32 %v1027_v56, %v569_v37  ;;  %v963_v60 = vpop.f32.mrb[18].mxu0  ;;  %v1028_v62 = vpop.f32.mrb[16].mxu1  ;;  %v574_v1 = vadd.f32 %v962_v55, %v274_v59 }
 0x1ae   : > { %v814_v63 = vmul.f32 %v802_v58, %v718_v57  ;;  %v747_v3 = vmul.f32 %v735_v12, %v1661_v8  ;;  %v964_v6 = vpop.f32.mrb[19].mxu0  ;;  %v1029_v11 = vpop.f32.mrb[17].mxu1 }
 0x1af   : > { %v1244_v14 = vpop.eup %1243  ;;  %v782_v19 = vmul.f32 0.7978846, %v770_v13  ;;  %v736_v16 = vmul.f32 %v1669_v15, %v1669_v15  ;;  %v965_v17 = vadd.f32 %v964_v6, %v963_v60  ;;  %v1030_v5 = vadd.f32 %v1029_v11, %v1028_v62  ;;  %v289_v55 = vpop.permute.xlu0 %288 }
 0x1b0   : > { %827 = vst.msk [vmem:[%s1657_s18 + $0x8] sm:$0xff] %vm825_vm0, %v814_v63  ;;  %v803_v18 = vadd.f32 1.0, %v1244_v14  ;;  %v759_v0 = vmul.f32 0.044715, %v747_v3  ;;  %v722_v62 = vmul.f32 0.5, %v1648_v38 }
 0x1b1   : > { %1249 = vtanh.f32 %v782_v19  ;;  %v748_v31 = vmul.f32 %v736_v16, %v1669_v15  ;;  %v966_v32 = vpop.f32.mrb[20].mxu0  ;;  %v1031_v33 = vpop.f32.mrb[18].mxu1  ;;  %v1679_v20 = vadd.f32 %v1030_v5, %v574_v1  ;;  %v579_v36 = vadd.f32 %v965_v17, %v279_v30 }
 0x1b2   : > { %v815_v34 = vmul.f32 %v803_v18, %v719_v29  ;;  %v771_v7 = vadd.f32 %v759_v0, %v1661_v8  ;;  %v967_v21 = vpop.f32.mrb[21].mxu0  ;;  %v1032_v22 = vpop.f32.mrb[19].mxu1  ;;  %v723_v0 = vmul.f32 0.5, %v1661_v8 }
 0x1b3   : > { %v760_v35 = vmul.f32 0.044715, %v748_v31  ;;  %v968_v39 = vadd.f32 %v967_v21, %v966_v32  ;;  %v1033_v40 = vadd.f32 %v1032_v22, %v1031_v33  ;;  %v737_v41 = vmul.f32 %v1679_v20, %v1679_v20 }
 0x1b4   : > { %v1246_v24 = vpop.eup %1245  ;;  %828 = vst.msk [vmem:[%s1657_s18 + $0x10] sm:$0xff] %vm825_vm0, %v815_v34  ;;  %v783_v26 = vmul.f32 0.7978846, %v771_v7  ;;  %v724_v34 = vmul.f32 0.5, %v1669_v15 }
 0x1b5   : > { %v804_v28 = vadd.f32 1.0, %v1246_v24  ;;  %v772_v2 = vadd.f32 %v760_v35, %v1669_v15  ;;  %v1687_v4 = vadd.f32 %v1033_v40, %v579_v36  ;;  %v969_v9 = vpop.f32.mrb[22].mxu0  ;;  %v1034_v42 = vpop.f32.mrb[20].mxu1  ;;  %v749_v44 = vmul.f32 %v737_v41, %v1679_v20 }
 0x1b6   : > { %1251 = vtanh.f32 %v783_v26  ;;  %v970_v45 = vpop.f32.mrb[23].mxu0  ;;  %v1035_v46 = vpop.f32.mrb[21].mxu1  ;;  %v584_v50 = vadd.f32 %v968_v39, %v284_v25  ;;  %v725_v39 = vmul.f32 0.5, %v1679_v20 }
 0x1b7   : > { %v1248_v47 = vpop.eup %1247  ;;  %v816_v48 = vmul.f32 %v804_v28, %v720_v27  ;;  %v784_v49 = vmul.f32 0.7978846, %v772_v2  ;;  %v738_v61 = vmul.f32 %v1687_v4, %v1687_v4  ;;  %v761_v10 = vmul.f32 0.044715, %v749_v44 }
 0x1b8   : > { %v805_v37 = vadd.f32 1.0, %v1248_v47  ;;  %v971_v51 = vadd.f32 %v970_v45, %v969_v9  ;;  %v1036_v52 = vadd.f32 %v1035_v46, %v1034_v42  ;;  %v726_v25 = vmul.f32 0.5, %v1687_v4 }
 0x1b9   : > { %829 = vst.msk [vmem:[%s1657_s18 + $0x18] sm:$0xff] %vm825_vm0, %v816_v48  ;;  %1253 = vtanh.f32 %v784_v49  ;;  %v750_v23 = vmul.f32 %v738_v61, %v1687_v4  ;;  %v1037_v53 = vpop.f32.mrb[22].mxu1  ;;  %v773_v56 = vadd.f32 %v761_v10, %v1679_v20 }
 0x1ba   : > { %v817_v54 = vmul.f32 %v805_v37, %v721_v43  ;;  %v709_v57 = vadd.f32 %v1036_v52, %v584_v50  ;;  %v1038_v58 = vpop.f32.mrb[23].mxu1  ;;  %v589_v13 = vadd.f32 %v971_v51, %v289_v55 }
 0x1bb   : > { %v1250_v59 = vpop.eup %1249  ;;  %v762_v12 = vmul.f32 0.044715, %v750_v23  ;;  %v1039_v60 = vadd.f32 %v1038_v58, %v1037_v53  ;;  %v785_v3 = vmul.f32 0.7978846, %v773_v56 }
 0x1bc   : > { %830 = vst.msk [vmem:[%s1657_s18 + $0x20] sm:$0xff] %vm825_vm0, %v817_v54  ;;  %v806_v63 = vadd.f32 1.0, %v1250_v59  ;;  %v739_v6 = vmul.f32 %v709_v57, %v709_v57  ;;  %v727_v28 = vmul.f32 0.5, %v709_v57 }
 0x1bd   : > { %v774_v11 = vadd.f32 %v762_v12, %v1687_v4  ;;  %v714_v14 = vadd.f32 %v1039_v60, %v589_v13  ;;  %1255 = vtanh.f32 %v785_v3 }
 0x1be   : > { %v818_v29 = vmul.f32 %v806_v63, %v722_v62  ;;  %v751_v19 = vmul.f32 %v739_v6, %v709_v57 }
 0x1bf   : > { %v786_v16 = vmul.f32 0.7978846, %v774_v11  ;;  %v740_v17 = vmul.f32 %v714_v14, %v714_v14  ;;  %v728_v20 = vmul.f32 0.5, %v714_v14 }
 0x1c0   : > { %v1252_v18 = vpop.eup %1251  ;;  %831 = vst.msk [vmem:[%s1657_s18 + $0x28] sm:$0xff] %vm825_vm0, %v818_v29  ;;  %v763_v30 = vmul.f32 0.044715, %v751_v19 }
 0x1c1   : > { %v807_v1 = vadd.f32 1.0, %v1252_v18  ;;  %1257 = vtanh.f32 %v786_v16  ;;  %v752_v38 = vmul.f32 %v740_v17, %v714_v14 }
 0x1c2   : > { %v775_v5 = vadd.f32 %v763_v30, %v709_v57 }
 0x1c3   : > { %v1254_v31 = vpop.eup %1253  ;;  %v819_v32 = vmul.f32 %v807_v1, %v723_v0  ;;  %v764_v33 = vmul.f32 0.044715, %v752_v38 }
 0x1c4   : > { %v808_v7 = vadd.f32 1.0, %v1254_v31  ;;  %v787_v21 = vmul.f32 0.7978846, %v775_v5 }
 0x1c5   : > { %832 = vst.msk [vmem:[%s1657_s18 + $0x30] sm:$0xff] %vm825_vm0, %v819_v32  ;;  %v776_v22 = vadd.f32 %v764_v33, %v714_v14 }
 0x1c6   : > { %v820_v35 = vmul.f32 %v808_v7, %v724_v34  ;;  %1259 = vtanh.f32 %v787_v21 }
 0x1c7   : > { %v788_v8 = vmul.f32 0.7978846, %v776_v22  ;;  %v1256_v36 = vpop.eup %1255 }
 0x1c8   : > { %833 = vst.msk [vmem:[%s1657_s18 + $0x38] sm:$0xff] %vm825_vm0, %v820_v35  ;;  %v809_v40 = vadd.f32 1.0, %v1256_v36 }
 0x1c9   : > { %1261 = vtanh.f32 %v788_v8 }
 0x1ca   : > { %v821_v15 = vmul.f32 %v809_v40, %v725_v39 }
 0x1cb   : > { %v1258_v24 = vpop.eup %1257 }
 0x1cc   : > { %v810_v26 = vadd.f32 1.0, %v1258_v24  ;;  %834 = vst.msk [vmem:[%s1657_s18 + $0x40] sm:$0xff] %vm825_vm0, %v821_v15 }
 0x1ce   : > { %v822_v41 = vmul.f32 %v810_v26, %v726_v25 }
 0x1d0   : > { %v1260_v27 = vpop.eup %1259  ;;  %835 = vst.msk [vmem:[%s1657_s18 + $0x48] sm:$0xff] %vm825_vm0, %v822_v41 }
 0x1d1   : > { %v811_v2 = vadd.f32 1.0, %v1260_v27 }
 0x1d3   : > { %v1262_v9 = vpop.eup %1261  ;;  %v823_v42 = vmul.f32 %v811_v2, %v727_v28 }
 0x1d4   : > { %v812_v43 = vadd.f32 1.0, %v1262_v9 }
 0x1d5   : > { %836 = vst.msk [vmem:[%s1657_s18 + $0x50] sm:$0xff] %vm825_vm0, %v823_v42 }
 0x1d6   : > { %v824_v44 = vmul.f32 %v812_v43, %v728_v20 }
 0x1d8   : > { %837 = vst.msk [vmem:[%s1657_s18 + $0x58] sm:$0xff] %vm825_vm0, %v824_v44 }
 0x1d9 PF: > { %s13_s12 = sadd.s32 1, %s1269_s12  }
 0x1da   : > { %p10_p4 = scmp.ge.s32.totalorder %s13_s12, 4  }
 0x1dc   :  { %12 = sbr.rel (!%p10_p4) target bundleno = 1 (0x1), region = 62 }

</bundles_post_ra>
